<compile_context>
chip_gen: v7x
topology: tpu7x:2x2x1
jax: 0.10.0
libtpu: 0.0.40
codegen_flags: <defaults>
</compile_context>

<pallas_src>
import jax
import jax.numpy as jnp
from jax.experimental import pallas as pl
from jax.experimental.pallas import tpu as pltpu

# ---------------------------------------------------------------------------
# Model hyper-parameters (match the PyTorch module's forward).
# Encoder: 784 -> 128 -> 64 -> 2*LATENT ; Decoder: LATENT -> 64 -> 128 -> 784
# ---------------------------------------------------------------------------
INPUT_DIM = 28 * 28            # fixed by X.view(-1, 28*28) in Encoder_MLP
PADDED_INPUT = 896             # 784 padded up to a multiple of 128
HIDDEN_DIMS = (128, 64)
LATENT_DIM = 32
PACK_WIDTH = 128               # mu(32) | sigma(32) | z(32) | pad(32)

BATCH = 256                    # effective batch per call
BATCH_TILE = 128               # rows per grid step (multiple of 8)


def _vae_kernel(
    x_ref, eps_ref,
    ew1_ref, eb1_ref, ew2_ref, eb2_ref,
    ew3mu_ref, eb3mu_ref, ew3lv_ref, eb3lv_ref,
    dw1_ref, db1_ref, dw2_ref, db2_ref, dw3_ref, db3_ref,
    xhat_ref, msz_ref,
):
    f32 = jnp.float32
    bf16 = jnp.bfloat16

    x = x_ref[...]                                              # (T, 896) bf16

    # ---------------- Encoder_MLP ----------------
    h = jnp.dot(x, ew1_ref[...], preferred_element_type=f32) + eb1_ref[...]
    h = jnp.maximum(h, 0.0).astype(bf16)                        # (T, 128)
    h = jnp.dot(h, ew2_ref[...], preferred_element_type=f32) + eb2_ref[...]
    h = jnp.maximum(h, 0.0).astype(bf16)                        # (T, 64)

    # Split heads (no mid-vreg lane slice).
    mu = jnp.dot(h, ew3mu_ref[...], preferred_element_type=f32) + eb3mu_ref[...]
    logvar = jnp.dot(h, ew3lv_ref[...], preferred_element_type=f32) + eb3lv_ref[...]
    sigma = 1e-6 + jnp.exp(0.5 * logvar)                        # (T, 32)

    # ---------------- Reparameterization ----------------
    z = mu + sigma * eps_ref[...].astype(f32)                   # (T, 32)

    # ---------------- Decoder_MLP ----------------
    d = jnp.dot(z.astype(bf16), dw1_ref[...], preferred_element_type=f32) + db1_ref[...]
    d = jnp.maximum(d, 0.0).astype(bf16)                        # (T, 64)
    d = jnp.dot(d, dw2_ref[...], preferred_element_type=f32) + db2_ref[...]
    d = jnp.maximum(d, 0.0).astype(bf16)                        # (T, 128)
    logits = jnp.dot(d, dw3_ref[...], preferred_element_type=f32) + db3_ref[...]
    x_hat = jax.nn.sigmoid(logits)                              # (T, 896)

    # Lane-dense stores.
    xhat_ref[...] = x_hat.astype(xhat_ref.dtype)
    msz_ref[...] = jnp.concatenate(
        [mu, sigma, z, jnp.zeros_like(mu)], axis=-1).astype(msz_ref.dtype)


def vae_mlp_forward(x_nchw, eps, kernel_params):
    """Full VAE forward in one batch-tiled Pallas call.

    x_nchw        : (B, 1, 28, 28) float32
    eps           : (B, LATENT_DIM) float32   (the torch.randn_like(mu) draw)
    kernel_params : dict from prepare_kernel_params()
    returns (x_hat, mu, sigma, z)  — all float32, shapes as in the module.
    """
    B = x_nchw.shape[0]
    num_tiles = pl.cdiv(B, BATCH_TILE)
    B_pad = num_tiles * BATCH_TILE

    # X.view(-1, 784), pad features 784 -> 896 and batch -> multiple of tile.
    x_flat = x_nchw.reshape(B, INPUT_DIM).astype(jnp.float32)
    x_pad = jnp.pad(x_flat, ((0, B_pad - B), (0, PADDED_INPUT - INPUT_DIM)))
    x_pad = x_pad.astype(jnp.bfloat16)
    eps_pad = jnp.pad(eps.astype(jnp.float32), ((0, B_pad - B), (0, 0)))

    kp = kernel_params
    args = (
        x_pad, eps_pad,
        kp["ew1"], kp["eb1"], kp["ew2"], kp["eb2"],
        kp["ew3_mu"], kp["eb3_mu"], kp["ew3_lv"], kp["eb3_lv"],
        kp["dw1"], kp["db1"], kp["dw2"], kp["db2"], kp["dw3"], kp["db3"],
    )

    # Batch-tiled specs for activations, resident (constant index_map) specs
    # for weights/biases so their DMA is amortized across the whole grid.
    def tiled(shape):
        return pl.BlockSpec(shape, lambda i: (i, 0))

    def resident(a):
        return pl.BlockSpec(a.shape, lambda i: (0, 0))

    in_specs = [
        tiled((BATCH_TILE, PADDED_INPUT)),       # x
        tiled((BATCH_TILE, LATENT_DIM)),         # eps
    ] + [resident(a) for a in args[2:]]

    out_specs = (
        tiled((BATCH_TILE, PADDED_INPUT)),       # x_hat (padded)
        tiled((BATCH_TILE, PACK_WIDTH)),         # mu | sigma | z | pad
    )
    out_shapes = (
        jax.ShapeDtypeStruct((B_pad, PADDED_INPUT), jnp.float32),
        jax.ShapeDtypeStruct((B_pad, PACK_WIDTH), jnp.float32),
    )

    xhat_pad, msz = pl.pallas_call(
        _vae_kernel,
        out_shape=out_shapes,
        grid=(num_tiles,),
        in_specs=in_specs,
        out_specs=out_specs,
        compiler_params=pltpu.CompilerParams(
            dimension_semantics=("parallel",),
            vmem_limit_bytes=32 * 1024 * 1024,   # tiny footprint; safe on v7x
        ),
    )(*args)

    x_hat = xhat_pad[:B, :INPUT_DIM]
    mu = msz[:B, :LATENT_DIM]
    sigma = msz[:B, LATENT_DIM:2 * LATENT_DIM]
    z = msz[:B, 2 * LATENT_DIM:3 * LATENT_DIM]
    return x_hat, mu, sigma, z


# ---------------------------------------------------------------------------
# Parameter construction
# ---------------------------------------------------------------------------
def init_params(key):
    """Synthetic f32 parameters matching nn.Linear init; layout (in, out)."""
    def linear(k, fan_in, fan_out):
        kw, kb = jax.random.split(k)
        bound = 1.0 / jnp.sqrt(fan_in)
        w = jax.random.uniform(kw, (fan_in, fan_out), jnp.float32, -bound, bound)
        b = jax.random.uniform(kb, (1, fan_out), jnp.float32, -bound, bound)
        return w, b

    keys = jax.random.split(key, 6)
    p = {}
    # Encoder: 784 -> 128 -> 64 -> 2*LATENT
    p["ew1"], p["eb1"] = linear(keys[0], INPUT_DIM, HIDDEN_DIMS[0])
    p["ew2"], p["eb2"] = linear(keys[1], HIDDEN_DIMS[0], HIDDEN_DIMS[1])
    p["ew3"], p["eb3"] = linear(keys[2], HIDDEN_DIMS[1], 2 * LATENT_DIM)
    # Decoder: LATENT -> 64 -> 128 -> 784   (hidden_dims[::-1])
    rev = HIDDEN_DIMS[::-1]
    p["dw1"], p["db1"] = linear(keys[3], LATENT_DIM, rev[0])
    p["dw2"], p["db2"] = linear(keys[4], rev[0], rev[1])
    p["dw3"], p["db3"] = linear(keys[5], rev[1], INPUT_DIM)
    return p


def prepare_kernel_params(p):
    """Pad / split / cast the f32 params into the kernel's bf16 layout."""
    bf16 = jnp.bfloat16
    kp = {}
    # ew1: pad input rows 784 -> 896 with zeros (padded x columns are zero too).
    kp["ew1"] = jnp.pad(p["ew1"], ((0, PADDED_INPUT - INPUT_DIM), (0, 0))).astype(bf16)
    kp["eb1"] = p["eb1"]
    kp["ew2"] = p["ew2"].astype(bf16)
    kp["eb2"] = p["eb2"]
    # Split readout into mu / logvar heads (avoids a lane-32 slice in-kernel).
    kp["ew3_mu"] = p["ew3"][:, :LATENT_DIM].astype(bf16)
    kp["eb3_mu"] = p["eb3"][:, :LATENT_DIM]
    kp["ew3_lv"] = p["ew3"][:, LATENT_DIM:].astype(bf16)
    kp["eb3_lv"] = p["eb3"][:, LATENT_DIM:]
    kp["dw1"] = p["dw1"].astype(bf16)
    kp["db1"] = p["db1"]
    kp["dw2"] = p["dw2"].astype(bf16)
    kp["db2"] = p["db2"]
    # dw3/db3: pad output columns 784 -> 896 (sliced off in the wrapper).
    kp["dw3"] = jnp.pad(p["dw3"], ((0, 0), (0, PADDED_INPUT - INPUT_DIM))).astype(bf16)
    kp["db3"] = jnp.pad(p["db3"], ((0, 0), (0, PADDED_INPUT - INPUT_DIM)))
    return kp


# ---------------------------------------------------------------------------
# Pure-JAX reference with the same bf16-weight / f32-accumulate semantics.
# ---------------------------------------------------------------------------
def _reference_forward(x_nchw, eps, kp):
    f32 = jnp.float32
    bf16 = jnp.bfloat16
    B = x_nchw.shape[0]

    def bdot(a, w_bf16):
        return jnp.dot(a.astype(bf16).astype(f32), w_bf16.astype(f32))

    x = x_nchw.reshape(B, INPUT_DIM).astype(f32)
    x = jnp.pad(x, ((0, 0), (0, PADDED_INPUT - INPUT_DIM)))
    h = jax.nn.relu(bdot(x, kp["ew1"]) + kp["eb1"])
    h = jax.nn.relu(bdot(h, kp["ew2"]) + kp["eb2"])
    mu = bdot(h, kp["ew3_mu"]) + kp["eb3_mu"]
    logvar = bdot(h, kp["ew3_lv"]) + kp["eb3_lv"]
    sigma = 1e-6 + jnp.exp(0.5 * logvar)
    z = mu + sigma * eps
    d = jax.nn.relu(bdot(z, kp["dw1"]) + kp["db1"])
    d = jax.nn.relu(bdot(d, kp["dw2"]) + kp["db2"])
    x_hat = jax.nn.sigmoid(bdot(d, kp["dw3"]) + kp["db3"])[:, :INPUT_DIM]
    return x_hat, mu, sigma, z


if __name__ == "__main__":
    key = jax.random.PRNGKey(0)
    k_param, k_x, k_eps = jax.random.split(key, 3)

    params = init_params(k_param)
    kparams = prepare_kernel_params(params)

    x = jax.random.uniform(k_x, (BATCH, 1, 28, 28), jnp.float32)   # NCHW like PyTorch
    eps = jax.random.normal(k_eps, (BATCH, LATENT_DIM), jnp.float32)

    x_hat, mu, sigma, z = vae_mlp_forward(x, eps, kparams)
    jax.block_until_ready((x_hat, mu, sigma, z))

    # Correctness check against a pure-JAX reference with matching precision.
    rx, rmu, rsig, rz = _reference_forward(x, eps, kparams)
    assert jnp.allclose(x_hat, rx, atol=1e-3, rtol=1e-3), "x_hat mismatch"
    assert jnp.allclose(mu, rmu, atol=1e-3, rtol=1e-3), "mu mismatch"
    assert jnp.allclose(sigma, rsig, atol=1e-3, rtol=1e-3), "sigma mismatch"
    assert jnp.allclose(z, rz, atol=1e-3, rtol=1e-3), "z mismatch"

    print("KERNEL_OK")
</pallas_src>

<mosaic_0001>
module attributes {stable_mosaic.version = 11 : i64} {
  func.func @_vae_kernel(%arg0: i32, %arg1: memref<128x896xbf16, #tpu.memory_space<vmem>>, %arg2: memref<128x32xf32, #tpu.memory_space<vmem>>, %arg3: memref<896x128xbf16, #tpu.memory_space<vmem>>, %arg4: memref<1x128xf32, #tpu.memory_space<vmem>>, %arg5: memref<128x64xbf16, #tpu.memory_space<vmem>>, %arg6: memref<1x64xf32, #tpu.memory_space<vmem>>, %arg7: memref<64x32xbf16, #tpu.memory_space<vmem>>, %arg8: memref<1x32xf32, #tpu.memory_space<vmem>>, %arg9: memref<64x32xbf16, #tpu.memory_space<vmem>>, %arg10: memref<1x32xf32, #tpu.memory_space<vmem>>, %arg11: memref<32x64xbf16, #tpu.memory_space<vmem>>, %arg12: memref<1x64xf32, #tpu.memory_space<vmem>>, %arg13: memref<64x128xbf16, #tpu.memory_space<vmem>>, %arg14: memref<1x128xf32, #tpu.memory_space<vmem>>, %arg15: memref<128x896xbf16, #tpu.memory_space<vmem>>, %arg16: memref<1x896xf32, #tpu.memory_space<vmem>>, %arg17: memref<128x896xf32, #tpu.memory_space<vmem>>, %arg18: memref<128x128xf32, #tpu.memory_space<vmem>>) attributes {dimension_semantics = [#tpu.dimension_semantics<parallel>], iteration_bounds = array<i64: 2>, scalar_prefetch = 0 : i64, scratch_operands = 0 : i64, tpu.core_type = #tpu.core_type<tc>, window_params = [{transform_indices = @transform_0, window_bounds = array<i64: 128, 896>}, {transform_indices = @transform_1, window_bounds = array<i64: 128, 32>}, {pipeline_mode = #tpu.pipeline_mode<synchronous>, transform_indices = @transform_2, window_bounds = array<i64: 896, 128>}, {pipeline_mode = #tpu.pipeline_mode<synchronous>, transform_indices = @transform_3, window_bounds = array<i64: 1, 128>}, {pipeline_mode = #tpu.pipeline_mode<synchronous>, transform_indices = @transform_4, window_bounds = array<i64: 128, 64>}, {pipeline_mode = #tpu.pipeline_mode<synchronous>, transform_indices = @transform_5, window_bounds = array<i64: 1, 64>}, {pipeline_mode = #tpu.pipeline_mode<synchronous>, transform_indices = @transform_6, window_bounds = array<i64: 64, 32>}, {pipeline_mode = #tpu.pipeline_mode<synchronous>, transform_indices = @transform_7, window_bounds = array<i64: 1, 32>}, {pipeline_mode = #tpu.pipeline_mode<synchronous>, transform_indices = @transform_8, window_bounds = array<i64: 64, 32>}, {pipeline_mode = #tpu.pipeline_mode<synchronous>, transform_indices = @transform_9, window_bounds = array<i64: 1, 32>}, {pipeline_mode = #tpu.pipeline_mode<synchronous>, transform_indices = @transform_10, window_bounds = array<i64: 32, 64>}, {pipeline_mode = #tpu.pipeline_mode<synchronous>, transform_indices = @transform_11, window_bounds = array<i64: 1, 64>}, {pipeline_mode = #tpu.pipeline_mode<synchronous>, transform_indices = @transform_12, window_bounds = array<i64: 64, 128>}, {pipeline_mode = #tpu.pipeline_mode<synchronous>, transform_indices = @transform_13, window_bounds = array<i64: 1, 128>}, {pipeline_mode = #tpu.pipeline_mode<synchronous>, transform_indices = @transform_14, window_bounds = array<i64: 128, 896>}, {pipeline_mode = #tpu.pipeline_mode<synchronous>, transform_indices = @transform_15, window_bounds = array<i64: 1, 896>}, {transform_indices = @transform_16, window_bounds = array<i64: 128, 896>}, {transform_indices = @transform_17, window_bounds = array<i64: 128, 128>}]} {
    %c0 = arith.constant 0 : index
    %c0_0 = arith.constant 0 : index
    %0 = vector.load %arg1[%c0, %c0_0] : memref<128x896xbf16, #tpu.memory_space<vmem>>, vector<128x896xbf16>
    %c0_1 = arith.constant 0 : index
    %c0_2 = arith.constant 0 : index
    %1 = vector.load %arg3[%c0_1, %c0_2] : memref<896x128xbf16, #tpu.memory_space<vmem>>, vector<896x128xbf16>
    %cst = arith.constant dense<0.000000e+00> : vector<128x128xf32>
    %2 = tpu.matmul %0, %1, %cst {dimension_numbers = #tpu.dot_dimension_numbers<[1], [0], [0], [1], [0, 0, 1, 1], [], []>} : vector<128x896xbf16>, vector<896x128xbf16>, vector<128x128xf32> -> vector<128x128xf32>
    %c0_3 = arith.constant 0 : index
    %c0_4 = arith.constant 0 : index
    %3 = vector.load %arg4[%c0_3, %c0_4] : memref<1x128xf32, #tpu.memory_space<vmem>>, vector<1x128xf32>
    %4 = vector.broadcast %3 : vector<1x128xf32> to vector<128x128xf32>
    %5 = arith.addf %2, %4 : vector<128x128xf32>
    %cst_5 = arith.constant 0.000000e+00 : f32
    %6 = vector.broadcast %cst_5 : f32 to vector<128x128xf32>
    %7 = arith.maximumf %5, %6 : vector<128x128xf32>
    %8 = arith.truncf %7 : vector<128x128xf32> to vector<128x128xbf16>
    %c0_6 = arith.constant 0 : index
    %c0_7 = arith.constant 0 : index
    %9 = vector.load %arg5[%c0_6, %c0_7] : memref<128x64xbf16, #tpu.memory_space<vmem>>, vector<128x64xbf16>
    %cst_8 = arith.constant dense<0.000000e+00> : vector<128x64xf32>
    %10 = tpu.matmul %8, %9, %cst_8 {dimension_numbers = #tpu.dot_dimension_numbers<[1], [0], [0], [1], [0, 0, 1, 1], [], []>} : vector<128x128xbf16>, vector<128x64xbf16>, vector<128x64xf32> -> vector<128x64xf32>
    %c0_9 = arith.constant 0 : index
    %c0_10 = arith.constant 0 : index
    %11 = vector.load %arg6[%c0_9, %c0_10] : memref<1x64xf32, #tpu.memory_space<vmem>>, vector<1x64xf32>
    %12 = vector.broadcast %11 : vector<1x64xf32> to vector<128x64xf32>
    %13 = arith.addf %10, %12 : vector<128x64xf32>
    %cst_11 = arith.constant 0.000000e+00 : f32
    %14 = vector.broadcast %cst_11 : f32 to vector<128x64xf32>
    %15 = arith.maximumf %13, %14 : vector<128x64xf32>
    %16 = arith.truncf %15 : vector<128x64xf32> to vector<128x64xbf16>
    %c0_12 = arith.constant 0 : index
    %c0_13 = arith.constant 0 : index
    %17 = vector.load %arg7[%c0_12, %c0_13] : memref<64x32xbf16, #tpu.memory_space<vmem>>, vector<64x32xbf16>
    %cst_14 = arith.constant dense<0.000000e+00> : vector<128x32xf32>
    %18 = tpu.matmul %16, %17, %cst_14 {dimension_numbers = #tpu.dot_dimension_numbers<[1], [0], [0], [1], [0, 0, 1, 1], [], []>} : vector<128x64xbf16>, vector<64x32xbf16>, vector<128x32xf32> -> vector<128x32xf32>
    %c0_15 = arith.constant 0 : index
    %c0_16 = arith.constant 0 : index
    %19 = vector.load %arg8[%c0_15, %c0_16] : memref<1x32xf32, #tpu.memory_space<vmem>>, vector<1x32xf32>
    %20 = vector.broadcast %19 : vector<1x32xf32> to vector<128x32xf32>
    %21 = arith.addf %18, %20 : vector<128x32xf32>
    %c0_17 = arith.constant 0 : index
    %c0_18 = arith.constant 0 : index
    %22 = vector.load %arg9[%c0_17, %c0_18] : memref<64x32xbf16, #tpu.memory_space<vmem>>, vector<64x32xbf16>
    %cst_19 = arith.constant dense<0.000000e+00> : vector<128x32xf32>
    %23 = tpu.matmul %16, %22, %cst_19 {dimension_numbers = #tpu.dot_dimension_numbers<[1], [0], [0], [1], [0, 0, 1, 1], [], []>} : vector<128x64xbf16>, vector<64x32xbf16>, vector<128x32xf32> -> vector<128x32xf32>
    %c0_20 = arith.constant 0 : index
    %c0_21 = arith.constant 0 : index
    %24 = vector.load %arg10[%c0_20, %c0_21] : memref<1x32xf32, #tpu.memory_space<vmem>>, vector<1x32xf32>
    %25 = vector.broadcast %24 : vector<1x32xf32> to vector<128x32xf32>
    %26 = arith.addf %23, %25 : vector<128x32xf32>
    %cst_22 = arith.constant 5.000000e-01 : f32
    %27 = vector.broadcast %cst_22 : f32 to vector<128x32xf32>
    %28 = arith.mulf %27, %26 : vector<128x32xf32>
    %29 = math.exp %28 : vector<128x32xf32>
    %cst_23 = arith.constant 9.99999997E-7 : f32
    %30 = vector.broadcast %cst_23 : f32 to vector<128x32xf32>
    %31 = arith.addf %30, %29 : vector<128x32xf32>
    %c0_24 = arith.constant 0 : index
    %c0_25 = arith.constant 0 : index
    %32 = vector.load %arg2[%c0_24, %c0_25] : memref<128x32xf32, #tpu.memory_space<vmem>>, vector<128x32xf32>
    %33 = arith.mulf %31, %32 : vector<128x32xf32>
    %34 = arith.addf %21, %33 : vector<128x32xf32>
    %35 = arith.truncf %34 : vector<128x32xf32> to vector<128x32xbf16>
    %c0_26 = arith.constant 0 : index
    %c0_27 = arith.constant 0 : index
    %36 = vector.load %arg11[%c0_26, %c0_27] : memref<32x64xbf16, #tpu.memory_space<vmem>>, vector<32x64xbf16>
    %cst_28 = arith.constant dense<0.000000e+00> : vector<128x64xf32>
    %37 = tpu.matmul %35, %36, %cst_28 {dimension_numbers = #tpu.dot_dimension_numbers<[1], [0], [0], [1], [0, 0, 1, 1], [], []>} : vector<128x32xbf16>, vector<32x64xbf16>, vector<128x64xf32> -> vector<128x64xf32>
    %c0_29 = arith.constant 0 : index
    %c0_30 = arith.constant 0 : index
    %38 = vector.load %arg12[%c0_29, %c0_30] : memref<1x64xf32, #tpu.memory_space<vmem>>, vector<1x64xf32>
    %39 = vector.broadcast %38 : vector<1x64xf32> to vector<128x64xf32>
    %40 = arith.addf %37, %39 : vector<128x64xf32>
    %cst_31 = arith.constant 0.000000e+00 : f32
    %41 = vector.broadcast %cst_31 : f32 to vector<128x64xf32>
    %42 = arith.maximumf %40, %41 : vector<128x64xf32>
    %43 = arith.truncf %42 : vector<128x64xf32> to vector<128x64xbf16>
    %c0_32 = arith.constant 0 : index
    %c0_33 = arith.constant 0 : index
    %44 = vector.load %arg13[%c0_32, %c0_33] : memref<64x128xbf16, #tpu.memory_space<vmem>>, vector<64x128xbf16>
    %cst_34 = arith.constant dense<0.000000e+00> : vector<128x128xf32>
    %45 = tpu.matmul %43, %44, %cst_34 {dimension_numbers = #tpu.dot_dimension_numbers<[1], [0], [0], [1], [0, 0, 1, 1], [], []>} : vector<128x64xbf16>, vector<64x128xbf16>, vector<128x128xf32> -> vector<128x128xf32>
    %c0_35 = arith.constant 0 : index
    %c0_36 = arith.constant 0 : index
    %46 = vector.load %arg14[%c0_35, %c0_36] : memref<1x128xf32, #tpu.memory_space<vmem>>, vector<1x128xf32>
    %47 = vector.broadcast %46 : vector<1x128xf32> to vector<128x128xf32>
    %48 = arith.addf %45, %47 : vector<128x128xf32>
    %cst_37 = arith.constant 0.000000e+00 : f32
    %49 = vector.broadcast %cst_37 : f32 to vector<128x128xf32>
    %50 = arith.maximumf %48, %49 : vector<128x128xf32>
    %51 = arith.truncf %50 : vector<128x128xf32> to vector<128x128xbf16>
    %c0_38 = arith.constant 0 : index
    %c0_39 = arith.constant 0 : index
    %52 = vector.load %arg15[%c0_38, %c0_39] : memref<128x896xbf16, #tpu.memory_space<vmem>>, vector<128x896xbf16>
    %cst_40 = arith.constant dense<0.000000e+00> : vector<128x896xf32>
    %53 = tpu.matmul %51, %52, %cst_40 {dimension_numbers = #tpu.dot_dimension_numbers<[1], [0], [0], [1], [0, 0, 1, 1], [], []>} : vector<128x128xbf16>, vector<128x896xbf16>, vector<128x896xf32> -> vector<128x896xf32>
    %c0_41 = arith.constant 0 : index
    %c0_42 = arith.constant 0 : index
    %54 = vector.load %arg16[%c0_41, %c0_42] : memref<1x896xf32, #tpu.memory_space<vmem>>, vector<1x896xf32>
    %55 = vector.broadcast %54 : vector<1x896xf32> to vector<128x896xf32>
    %56 = arith.addf %53, %55 : vector<128x896xf32>
    %57 = arith.negf %56 : vector<128x896xf32>
    %58 = math.exp %57 : vector<128x896xf32>
    %cst_43 = arith.constant 1.000000e+00 : f32
    %59 = vector.broadcast %cst_43 : f32 to vector<128x896xf32>
    %60 = arith.addf %59, %58 : vector<128x896xf32>
    %61 = arith.divf %59, %60 : vector<128x896xf32>
    %c0_44 = arith.constant 0 : index
    %c0_45 = arith.constant 0 : index
    %62 = vector.load %arg17[%c0_44, %c0_45] : memref<128x896xf32, #tpu.memory_space<vmem>>, vector<128x896xf32>
    tpu.vector_store %arg17[%c0_44, %c0_45], %61 {strides = array<i32>} : memref<128x896xf32, #tpu.memory_space<vmem>>, vector<128x896xf32>,
    %cst_46 = arith.constant 0.000000e+00 : f32
    %63 = vector.broadcast %cst_46 : f32 to vector<128x32xf32>
    %64 = tpu.concatenate %21, %31, %34, %63 in 1 : vector<128x32xf32>, vector<128x32xf32>, vector<128x32xf32>, vector<128x32xf32> -> vector<128x128xf32>
    %c0_47 = arith.constant 0 : index
    %c0_48 = arith.constant 0 : index
    %65 = vector.load %arg18[%c0_47, %c0_48] : memref<128x128xf32, #tpu.memory_space<vmem>>, vector<128x128xf32>
    tpu.vector_store %arg18[%c0_47, %c0_48], %64 {strides = array<i32>} : memref<128x128xf32, #tpu.memory_space<vmem>>, vector<128x128xf32>,
    return
  }
  func.func @transform_0(%arg0: i32) -> (i32, i32) {
    %c0_i32 = arith.constant 0 : i32
    %c0_i32_0 = arith.constant 0 : i32
    return %arg0, %c0_i32 : i32, i32
  }
  func.func @transform_1(%arg0: i32) -> (i32, i32) {
    %c0_i32 = arith.constant 0 : i32
    %c0_i32_0 = arith.constant 0 : i32
    return %arg0, %c0_i32 : i32, i32
  }
  func.func @transform_2(%arg0: i32) -> (i32, i32) {
    %c0_i32 = arith.constant 0 : i32
    %c0_i32_0 = arith.constant 0 : i32
    %c0_i32_1 = arith.constant 0 : i32
    return %c0_i32, %c0_i32_0 : i32, i32
  }
  func.func @transform_3(%arg0: i32) -> (i32, i32) {
    %c0_i32 = arith.constant 0 : i32
    %c0_i32_0 = arith.constant 0 : i32
    %c0_i32_1 = arith.constant 0 : i32
    return %c0_i32, %c0_i32_0 : i32, i32
  }
  func.func @transform_4(%arg0: i32) -> (i32, i32) {
    %c0_i32 = arith.constant 0 : i32
    %c0_i32_0 = arith.constant 0 : i32
    %c0_i32_1 = arith.constant 0 : i32
    return %c0_i32, %c0_i32_0 : i32, i32
  }
  func.func @transform_5(%arg0: i32) -> (i32, i32) {
    %c0_i32 = arith.constant 0 : i32
    %c0_i32_0 = arith.constant 0 : i32
    %c0_i32_1 = arith.constant 0 : i32
    return %c0_i32, %c0_i32_0 : i32, i32
  }
  func.func @transform_6(%arg0: i32) -> (i32, i32) {
    %c0_i32 = arith.constant 0 : i32
    %c0_i32_0 = arith.constant 0 : i32
    %c0_i32_1 = arith.constant 0 : i32
    return %c0_i32, %c0_i32_0 : i32, i32
  }
  func.func @transform_7(%arg0: i32) -> (i32, i32) {
    %c0_i32 = arith.constant 0 : i32
    %c0_i32_0 = arith.constant 0 : i32
    %c0_i32_1 = arith.constant 0 : i32
    return %c0_i32, %c0_i32_0 : i32, i32
  }
  func.func @transform_8(%arg0: i32) -> (i32, i32) {
    %c0_i32 = arith.constant 0 : i32
    %c0_i32_0 = arith.constant 0 : i32
    %c0_i32_1 = arith.constant 0 : i32
    return %c0_i32, %c0_i32_0 : i32, i32
  }
  func.func @transform_9(%arg0: i32) -> (i32, i32) {
    %c0_i32 = arith.constant 0 : i32
    %c0_i32_0 = arith.constant 0 : i32
    %c0_i32_1 = arith.constant 0 : i32
    return %c0_i32, %c0_i32_0 : i32, i32
  }
  func.func @transform_10(%arg0: i32) -> (i32, i32) {
    %c0_i32 = arith.constant 0 : i32
    %c0_i32_0 = arith.constant 0 : i32
    %c0_i32_1 = arith.constant 0 : i32
    return %c0_i32, %c0_i32_0 : i32, i32
  }
  func.func @transform_11(%arg0: i32) -> (i32, i32) {
    %c0_i32 = arith.constant 0 : i32
    %c0_i32_0 = arith.constant 0 : i32
    %c0_i32_1 = arith.constant 0 : i32
    return %c0_i32, %c0_i32_0 : i32, i32
  }
  func.func @transform_12(%arg0: i32) -> (i32, i32) {
    %c0_i32 = arith.constant 0 : i32
    %c0_i32_0 = arith.constant 0 : i32
    %c0_i32_1 = arith.constant 0 : i32
    return %c0_i32, %c0_i32_0 : i32, i32
  }
  func.func @transform_13(%arg0: i32) -> (i32, i32) {
    %c0_i32 = arith.constant 0 : i32
    %c0_i32_0 = arith.constant 0 : i32
    %c0_i32_1 = arith.constant 0 : i32
    return %c0_i32, %c0_i32_0 : i32, i32
  }
  func.func @transform_14(%arg0: i32) -> (i32, i32) {
    %c0_i32 = arith.constant 0 : i32
    %c0_i32_0 = arith.constant 0 : i32
    %c0_i32_1 = arith.constant 0 : i32
    return %c0_i32, %c0_i32_0 : i32, i32
  }
  func.func @transform_15(%arg0: i32) -> (i32, i32) {
    %c0_i32 = arith.constant 0 : i32
    %c0_i32_0 = arith.constant 0 : i32
    %c0_i32_1 = arith.constant 0 : i32
    return %c0_i32, %c0_i32_0 : i32, i32
  }
  func.func @transform_16(%arg0: i32) -> (i32, i32) {
    %c0_i32 = arith.constant 0 : i32
    %c0_i32_0 = arith.constant 0 : i32
    return %arg0, %c0_i32 : i32, i32
  }
  func.func @transform_17(%arg0: i32) -> (i32, i32) {
    %c0_i32 = arith.constant 0 : i32
    %c0_i32_0 = arith.constant 0 : i32
    return %arg0, %c0_i32 : i32, i32
  }
}

</mosaic_0001>

<bundles_post_ra>
// kernel: tpu_custom_call.1
= control target key start
LH: loop header
LB: loop body
LE: loop exit
PB: predicated region body
PF: predicated region fallthrough
CT: control target
= control target key end

     0   :  { %s8279_s0 = inlined_call_operand.hbm [shape: bf16[256,896], index: 0, kind: input, shape index: {}]   ;;  %s8280_s1 = inlined_call_operand.vmem [shape: f32[256,32], index: 1, kind: input, shape index: {}]   ;;  %s8281_s2 = inlined_call_operand.vmem [shape: bf16[896,128], index: 2, kind: input, shape index: {}]   ;;  %s8282_s3 = inlined_call_operand.vmem [shape: f32[1,128], index: 3, kind: input, shape index: {}]   ;;  %s8283_s4 = inlined_call_operand.vmem [shape: bf16[128,64], index: 4, kind: input, shape index: {}]   ;;  %s8284_s5 = inlined_call_operand.vmem [shape: f32[1,64], index: 5, kind: input, shape index: {}]   ;;  %s8285_s6 = inlined_call_operand.vmem [shape: bf16[64,32], index: 6, kind: input, shape index: {}]   ;;  %s8286_s7 = inlined_call_operand.vmem [shape: f32[1,32], index: 7, kind: input, shape index: {}]   ;;  %s8287_s8 = inlined_call_operand.vmem [shape: bf16[64,32], index: 8, kind: input, shape index: {}]   ;;  %s8288_s9 = inlined_call_operand.vmem [shape: f32[1,32], index: 9, kind: input, shape index: {}]   ;;  %s8289_s10 = inlined_call_operand.vmem [shape: bf16[32,64], index: 10, kind: input, shape index: {}]   ;;  %s8290_s11 = inlined_call_operand.vmem [shape: f32[1,64], index: 11, kind: input, shape index: {}]   ;;  %s8291_s12 = inlined_call_operand.vmem [shape: bf16[64,128], index: 12, kind: input, shape index: {}]   ;;  %s8292_s13 = inlined_call_operand.vmem [shape: f32[1,128], index: 13, kind: input, shape index: {}]   ;;  %s8293_s14 = inlined_call_operand.hbm [shape: bf16[128,896], index: 14, kind: input, shape index: {}]   ;;  %s8294_s15 = inlined_call_operand.vmem [shape: f32[1,896], index: 15, kind: input, shape index: {}]   ;;  %s8295_s16 = inlined_call_operand.hbm [shape: f32[256,896], index: 16, kind: output, shape index: {0}]   ;;  %s8296_s17 = inlined_call_operand.hbm [shape: f32[256,128], index: 17, kind: output, shape index: {1}]  }
   0x1   :  { %8311 = sst [smem:[#allocation21_spill]] %s8279_s0 }
   0x2   :  { %8312 = sst [smem:[#allocation22_spill]] %s8280_s1 }
   0x3   :  { %8313 = sst [smem:[#allocation23_spill]] %s8292_s13 }
   0x4   :  { %8314 = sst [smem:[#allocation24_spill]] %s8293_s14 }
   0x5   :  { %8315 = sst [smem:[#allocation25_spill]] %s8294_s15 }
   0x6   :  { %8316 = sst [smem:[#allocation26_spill]] %s8295_s16 }
   0x7   :  { %8317 = sst [smem:[#allocation27_spill]] %s8296_s17 }
   0x8   :  { %23 = vsyncpa [#allocation3], 0 }
   0x9   :  { %25 = vsyncpa [#allocation3 + $0x1], 0 }
   0xa   :  { %26 = vsyncpa [#allocation6], 0 }
   0xb   :  { %27 = vsyncpa [#allocation4], 0 }
   0xc   :  { %29 = vsyncpa [#allocation4 + $0x1], 0 }
   0xd   :  { %30 = vsyncpa [#allocation9], 0 }
   0xe   :  { %32 = vsyncpa [#allocation9 + $0x1], 0  ;;  %s6669_s24 = smov 0   ;;  %s6671_s25 = smov 0  }
   0xf   :  { %s6673_s26 = smov 0   ;;  %s6675_s27 = smov 0  }
  0x10 LB: > { %8318 = sst [smem:[#allocation14_spill]] %s6552_s24  ;;  %s6690_s28 = sadd.s32 4294967295, %s6564_s27   ;;  %s6564_s27 = sphi %s6675_s27, %s8352_s27   ;;  %s6560_s26 = sphi %s6673_s26, %s8354_s26   ;;  %s6556_s25 = sphi %s6671_s25, %s8356_s25   ;;  %s6552_s24 = sphi %s6669_s24, %s8355_s24  }
  0x11   : > { %8319 = sst [smem:[#allocation15_spill]] %s6560_s26  ;;  %s4766_s29 = sadd.s32 4294967294, %s6564_s27  }
  0x12   : > { %p58_p0 = scmp.ne.s32.totalorder %s6556_s25, %s6552_s24  ;;  %p8305_p1 = scmp.eq.s32.totalorder %s6690_s28, 0 }
  0x13   : > { %p408_p3 = scmp.eq.s32.totalorder %s4766_s29, 1  ;;  %p4767_p5 = scmp.ge.s32.totalorder %s6564_s27, 1 }
  0x14   : > { %p6699_p4 = por %p8305_p1, %p58_p0  ;;  %p441_p7 = scmp.lt.s32.totalorder %s6564_s27, 3 }
  0x15   : > { %p6704_p6 = por %p408_p3, %p58_p0  ;;  %s6566_s19 = smov [#allocation5]  }
  0x16   : > { %s8320_s0 = scalar_select %p6699_p4, 1, 0 }
  0x17   : > { %s8321_s30 = scalar_select %p6704_p6, 1, 0 }
  0x18   : > { %p6709_p8 = pnand %p4767_p5, %p441_p7  ;;  %s489_s1 = sshll.u32 %s6566_s19, 4  ;;  %s6713_s1 = int_to_ptr.vmem [resolvable:$true] %s489_s1 }
  0x19   : > { %8322 = sst [smem:[#allocation16_spill]] %s8321_s30  ;;  %s6725_s21 = sadd.s32 1, %s6564_s27  }
  0x1a   : > { %s8323_s18 = scalar_select %p6709_p8, 1, 0 }
  0x1b   : > { %p5624_p9 = pneg %p6709_p8  ;;  %8325 = sst [smem:[#allocation17_spill]] %s6725_s21 }
  0x1c   : > { %s45_s22 = sadd.s32 1, %s6560_s26  ;;  %s42_s23 = ssub.s32 %s6564_s27, %s6725_s21 }
  0x1d   : > { %p6720_p11 = pnand %p5624_p9, %p8305_p1  ;;  %s8326_s14 = sld [smem:[#allocation24_spill]] }
  0x1f   : > { %p6406_p13 = pneg %p6720_p11 }
  0x23   : > { %s6404_s19 = scalar_lea.hbm %s8326_s14, 7168 }
  0x24   : > { %p6405_p12 = scmp.ne.s32.totalorder %s8326_s14, %s6404_s19  ;;  %p6411_p5 = scmp.lt.u32.totalorder %s6404_s19, %s8326_s14 }
  0x26   : > { %p6407_p0 = pnand %p6406_p13, %p6405_p12 }
  0x28   : > { %p6408_p3 = pneg %p6407_p0 }
  0x2a   : > { %p6413_p7 = pnand %p6411_p5, %p6408_p3 }
  0x2c   : > { %6416 = shalt.err (!%p6413_p7)
}
  0x2d   : > { %s6417_s21 = scalar_lea.vmem %s6713_s1, 7168  ;;  %p6425_p2 = scmp.lt.s32.totalorder %s6713_s1, %s6713_s1 }
  0x2e   : > { %p6418_p9 = scmp.ne.s32.totalorder %s6713_s1, %s6417_s21  ;;  %p6426_p6 = scmp.lt.s32.totalorder %s6417_s21, %s6417_s21 }
  0x30   : > { %p6420_p10 = pnand %p6418_p9, %p6406_p13  ;;  %p6427_p4 = por %p6426_p6, %p6425_p2 }
  0x32   : > { %p6421_p1 = pneg %p6420_p10 }
  0x34   : > { %p6428_p8 = pnand %p6427_p4, %p6421_p1 }
  0x36   : > { %6431 = shalt.err (!%p6428_p8)
}
  0x37   : > { %s8308_s16 = smov 448   ;;  %s8309_s15 = smov 28  }
  0x38   : > { %5627 = dma.hbm_to_vmem [thread:$0]  (!%p6720_p11), %s8326_s14, 7168, %s6713_s1, [#allocation6], %s8308_s16, %s8308_s16, %s8309_s15  }
  0x39   : > { %p43_p1 = scmp.eq.s32.totalorder %s42_s23, 0  ;;  %p52_p2 = scmp.ne.s32.totalorder %s6560_s26, %s6556_s25 }
  0x3a   : > { %p53_p4 = scmp.eq.s32.totalorder %s6564_s27, 0  ;;  %p5640_p6 = scmp.lt.s32.totalorder %s6564_s27, 2 }
  0x3b   : > { %s6759_s30 = scalar_select %p43_p1, %s6560_s26, %s45_s22  }
  0x3c   : > { %p54_p8 = por %p53_p4, %p52_p2  ;;  %p8328_p10 = scmp.eq.s32.totalorder %s6690_s28, 1 }
  0x3d   : > { %8327 = sst [smem:[#allocation18_spill]] %s6759_s30  ;;  %s506_s20 = sand.u32 1, %s6560_s26  }
  0x3e   : > { %p6763_p12 = por %p8328_p10, %p52_p2  ;;  %s5610_s29 = smul.u32 7168, %s6564_s27 }
  0x3f   : > { %s5609_s19 = smul.u32 448, %s506_s20  ;;  %p6769_p13 = pnand %p5640_p6, %p54_p8 }
  0x40   : > { %s8331_s17 = sld [smem:[#allocation21_spill]]  ;;  %s6780_s15 = scalar_lea.sflag [#allocation3], %s506_s20 }
  0x41   : > { %s510_s24 = scalar_lea.vmem [#allocation2], %s5609_s19  ;;  %p6434_p0 = pneg %p6769_p13 }
  0x42   : > { %s518_s16 = sshll.u32 %s510_s24, 4  ;;  %s6778_s16 = int_to_ptr.vmem [resolvable:$true] %s518_s16 }
  0x46   : > { %s6776_s22 = scalar_lea.hbm %s8331_s17, %s5610_s29  ;;  %s6437_s23 = scalar_lea.hbm %s8331_s17, 14336 }
  0x47   : > { %s6432_s14 = scalar_lea.hbm %s6776_s22, 7168  ;;  %p6438_p7 = scmp.lt.u32.totalorder %s6776_s22, %s8331_s17 }
  0x48   : > { %p6433_p11 = scmp.ne.s32.totalorder %s6776_s22, %s6432_s14  ;;  %p6439_p9 = scmp.lt.u32.totalorder %s6437_s23, %s6432_s14 }
  0x49   : > { %p6441_p2 = scmp.lt.u32.totalorder %s6432_s14, %s6776_s22 }
  0x4a   : > { %p6435_p3 = pnand %p6434_p0, %p6433_p11  ;;  %p6440_p1 = por %p6439_p9, %p6438_p7 }
  0x4c   : > { %p6436_p5 = pneg %p6435_p3  ;;  %p6442_p4 = por %p6441_p2, %p6440_p1 }
  0x4e   : > { %p6443_p6 = pnand %p6442_p4, %p6436_p5 }
  0x50   : > { %6446 = shalt.err (!%p6443_p6)
}
  0x51   : > { %s6447_s20 = scalar_lea.vmem %s6778_s16, 7168  ;;  %s6569_s19 = smov [#allocation2]  }
  0x52   : > { %p6448_p8 = scmp.ne.s32.totalorder %s6778_s16, %s6447_s20  ;;  %s6452_s24 = sshll.u32 %s6569_s19, 4  ;;  %s6453_s24 = int_to_ptr.vmem [resolvable:$false] %s6452_s24 }
  0x53   : > { %s6454_s26 = scalar_lea.vmem %s6453_s24, 14336  ;;  %p6455_p3 = scmp.lt.s32.totalorder %s6778_s16, %s6453_s24 }
  0x54   : > { %p6450_p10 = pnand %p6448_p8, %p6434_p0  ;;  %p6456_p7 = scmp.lt.s32.totalorder %s6454_s26, %s6447_s20 }
  0x56   : > { %p6451_p11 = pneg %p6450_p10  ;;  %p6457_p9 = por %p6456_p7, %p6455_p3 }
  0x58   : > { %p6458_p1 = pnand %p6457_p9, %p6451_p11 }
  0x5a   : > { %6461 = shalt.err (!%p6458_p1)
}
  0x5b   : > { %s8332_s14 = smov 28   ;;  %s8333_s30 = smov 448  }
  0x5c   : > { %5631 = dma.hbm_to_vmem [thread:$0]  (!%p6769_p13), %s6776_s22, 7168, %s6778_s16, %s6780_s15, %s8333_s30, %s8333_s30, %s8332_s14  }
  0x5d   : > { %p8334_p0 = scmp.ne.s32.totalorder %s8323_s18, 0 }
  0x5f   : > { %539 = sbr.rel (%p8334_p0) target bundleno = 1887 (0x75f), region = 84 }
  0x66   : > { %s6814_s29 = sand.u32 1, %s6556_s25   ;;  %p8335_p5 = scmp.ne.s32.totalorder %s8320_s0, 0 }
  0x67   : > { %s5611_s1 = smul.u32 448, %s6814_s29  ;;  %s542_s23 = scalar_lea.sflag [#allocation3], %s6814_s29 }
  0x69   : > { %s6818_s20 = scalar_lea.vmem [#allocation2], %s5611_s1 }
  0x6a   : > { %6535 = dma.done.wait (%p8335_p5), %s542_s23, 7168  }
  0x6b   : > { %6537 = vsyncadd (%p8335_p5), %s542_s23, 4294960128  ;;  %p8336_p13 = scmp.eq.s32.totalorder %s6690_s28, 0 }
  0x6d   : > { %6539 = dma.done.wait (%p8336_p13), [#allocation6], 7168   ;;  %p8337_p2 = pmov %p8336_p13 }
  0x6e   : > { %v5685_v0 = vld [vmem:[%s8281_s2 + $0x40] sm:$0xff]   ;;  %v5689_v4 = vld [vmem:[%s8281_s2 + $0x48] sm:$0xff]   ;;  %v5693_v8 = vld [vmem:[%s8281_s2 + $0x50] sm:$0xff]   ;;  %vm2070_vm0 = vcmask 523264   ;;  %s4776_s26 = sshll.u32 %s6690_s28, 4  ;;  %vm2471_vm1 = vcmask 261120  }
  0x6f   : > { %6541 = vsyncadd (%p8337_p2), [#allocation6], 4294960128  ;;  %v5686_v1 = vld [vmem:[%s8281_s2] sm:$0xff]   ;;  %5127 = vmatprep.subr.bf16.mxu0 %v5685_v0  ;;  %v5690_v5 = vld [vmem:[%s8281_s2 + $0x8] sm:$0xff]   ;;  %p612_p4 = scmp.lt.s32.totalorder %s4776_s26, 31  ;;  %s6570_s16 = smov 32  }
  0x70   : > { %v5687_v2 = vld [vmem:[%s8281_s2 + $0xc0] sm:$0xff]   ;;  %5128 = vmatpush3.bf16.msra.mxu0 %v5686_v1  ;;  %v5691_v6 = vld [vmem:[%s8281_s2 + $0xc8] sm:$0xff]   ;;  %v5694_v9 = vld [vmem:[%s8281_s2 + $0x10] sm:$0xff]   ;;  %s6571_s15 = smov 64   ;;  %s4775_s23 = sshll.u32 %s6814_s29, 7  ;;  %vm4570_vm2 = vcmask 785408  }
  0x71   : > { %v5688_v3 = vld [vmem:[%s8281_s2 + $0x80] sm:$0xff]   ;;  %5191 = vmatprep.subr.bf16.mxu1 %v5687_v2  ;;  %5129 = vmatprep.subr.bf16.mxu0 %v5689_v4  ;;  %v5692_v7 = vld [vmem:[%s8281_s2 + $0x88] sm:$0xff]   ;;  %v5695_v10 = vld [vmem:[%s8281_s2 + $0xd0] sm:$0xff]   ;;  %s8358_s26 = smov (!%p612_p4, %s4776_s26), 31  ;;  %s7471_s13 = scalar_lea.vmem [#allocation8], %s4775_s23 }
  0x72   : > { %5192 = vmatpush3.bf16.msra.mxu1 %v5688_v3  ;;  %v5696_v11 = vld [vmem:[%s8281_s2 + $0x90] sm:$0xff]   ;;  %v5697_v12 = vld [vmem:[%s8281_s2 + $0x58] sm:$0xff]   ;;  %v5701_v16 = vld [vmem:[%s8281_s2 + $0x60] sm:$0xff]   ;;  %s4777_s14 = sshll.u32 %s8358_s26, 3  ;;  %s8339_s22 = sld [smem:[#allocation23_spill]] }
  0x73   : > { %5193 = vmatprep.subr.bf16.mxu1 %v5691_v6  ;;  %v5698_v13 = vld [vmem:[%s8281_s2 + $0x18] sm:$0xff]   ;;  %v5702_v17 = vld [vmem:[%s8281_s2 + $0x20] sm:$0xff]   ;;  %v5705_v20 = vld [vmem:[%s8281_s2 + $0x68] sm:$0xff]   ;;  %s8340_s24 = sld [smem:[#allocation25_spill]]  ;;  %s5612_s26 = smul.u32 896, %s6814_s29 }
  0x74   : > { %5130 = vmatpush3.bf16.msra.mxu0 %v5690_v5  ;;  %v5699_v14 = vld [vmem:[%s8281_s2 + $0xd8] sm:$0xff]   ;;  %v5703_v18 = vld [vmem:[%s8281_s2 + $0xe0] sm:$0xff]   ;;  %v5706_v21 = vld [vmem:[%s8281_s2 + $0x28] sm:$0xff]  }
  0x75   : > { %5131 = vmatprep.subr.bf16.mxu0 %v5693_v8  ;;  %v5700_v15 = vld [vmem:[%s8281_s2 + $0x98] sm:$0xff]   ;;  %v5704_v19 = vld [vmem:[%s8281_s2 + $0xa0] sm:$0xff]   ;;  %v5707_v22 = vld [vmem:[%s8281_s2 + $0xe8] sm:$0xff]   ;;  %s7719_s30 = scalar_lea.vmem [#allocation7], %s5612_s26 }
  0x76   : > { %5194 = vmatpush3.bf16.msra.mxu1 %v5692_v7  ;;  %v5708_v23 = vld [vmem:[%s8281_s2 + $0xa8] sm:$0xff]   ;;  %v5709_v24 = vld [vmem:[%s8281_s2 + $0x70] sm:$0xff]   ;;  %v5713_v28 = vld [vmem:[%s8281_s2 + $0x78] sm:$0xff]  }
  0x77   : > { %5195 = vmatprep.subr.bf16.mxu1 %v5695_v10  ;;  %v5710_v25 = vld [vmem:[%s8281_s2 + $0x30] sm:$0xff]   ;;  %v5714_v29 = vld [vmem:[%s8281_s2 + $0x38] sm:$0xff]   ;;  %v5718_v32 = vld [vmem:[%s6818_s20 + $0x4] ss:$28 sps:$4 sm:$0xff]  }
  0x78   : > { %5132 = vmatpush3.bf16.msra.mxu0 %v5694_v9  ;;  %v5711_v26 = vld [vmem:[%s8281_s2 + $0xf0] sm:$0xff]   ;;  %v5715_v30 = vld [vmem:[%s8281_s2 + $0xf8] sm:$0xff]   ;;  %1459 = vmatprep.mubr.bf16.mxu0 %v5718_v32  ;;  %v5720_v34 = vld [vmem:[%s8281_s2 + $0x140] sm:$0xff]  }
  0x79   : > { %5133 = vmatprep.subr.bf16.mxu0 %v5697_v12  ;;  %v5712_v27 = vld [vmem:[%s8281_s2 + $0xb0] sm:$0xff]   ;;  %v5716_v31 = vld [vmem:[%s6818_s20] ss:$28 sps:$4 sm:$0xff]   ;;  %v5721_v35 = vld [vmem:[%s6818_s20 + $0x8] ss:$28 sps:$4 sm:$0xff]  }
  0x7a   : > { %5196 = vmatpush3.bf16.msra.mxu1 %v5696_v11  ;;  %v5719_v33 = vld [vmem:[%s8281_s2 + $0xb8] sm:$0xff]   ;;  %v5723_v36 = vld [vmem:[%s6818_s20 + $0xc] ss:$28 sps:$4 sm:$0xff]   ;;  %v5724_v37 = vld [vmem:[%s8281_s2 + $0x100] sm:$0xff]  }
  0x7b   : > { %5197 = vmatprep.subr.bf16.mxu1 %v5699_v14  ;;  %1556 = vmatprep.mubr.bf16.mxu1 %v5723_v36  ;;  %v5725_v38 = vld [vmem:[%s6818_s20 + $0x3c] ss:$28 sps:$4 sm:$0xff]   ;;  %v5728_v40 = vld [vmem:[%s8281_s2 + $0x148] sm:$0xff]   ;;  %v5729_v41 = vld [vmem:[%s6818_s20 + $0x44] ss:$28 sps:$4 sm:$0xff]  }
  0x7c   : > { %5134 = vmatpush3.bf16.msra.mxu0 %v5698_v13  ;;  %v5727_v39 = vld [vmem:[%s6818_s20 + $0x38] ss:$28 sps:$4 sm:$0xff]   ;;  %v5731_v42 = vld [vmem:[%s8281_s2 + $0x108] sm:$0xff]   ;;  %v5732_v43 = vld [vmem:[%s6818_s20 + $0x40] ss:$28 sps:$4 sm:$0xff]  }
  0x7d   : > { %5135 = vmatprep.subr.bf16.mxu0 %v5701_v16  ;;  %v5733_v44 = vld [vmem:[%s6818_s20 + $0x74] ss:$28 sps:$4 sm:$0xff]   ;;  %v5737_v46 = vld [vmem:[%s6818_s20 + $0x7c] ss:$28 sps:$4 sm:$0xff]   ;;  %v5741_v49 = vld [vmem:[%s6818_s20 + $0xac] ss:$28 sps:$4 sm:$0xff]  }
  0x7e   : > { %5198 = vmatpush3.bf16.msra.mxu1 %v5700_v15  ;;  %v5736_v45 = vld [vmem:[%s8281_s2 + $0x150] sm:$0xff]   ;;  %v5744_v50 = vld [vmem:[%s8281_s2 + $0x158] sm:$0xff]   ;;  %v5752_v54 = vld [vmem:[%s8281_s2 + $0x160] sm:$0xff]  }
  0x7f   : > { %5199 = vmatprep.subr.bf16.mxu1 %v5703_v18  ;;  %v5739_v47 = vld [vmem:[%s8281_s2 + $0x110] sm:$0xff]   ;;  %v5747_v52 = vld [vmem:[%s8281_s2 + $0x118] sm:$0xff]   ;;  %v5743_v55 = vld [vmem:[%s6818_s20 + $0xa8] ss:$28 sps:$4 sm:$0xff]  }
  0x80   : > { %5136 = vmatpush3.bf16.msra.mxu0 %v5702_v17  ;;  %v5735_v48 = vld [vmem:[%s6818_s20 + $0x70] ss:$28 sps:$4 sm:$0xff]   ;;  %v5740_v51 = vld [vmem:[%s6818_s20 + $0x78] ss:$28 sps:$4 sm:$0xff]   ;;  %v5755_v56 = vld [vmem:[%s8281_s2 + $0x120] sm:$0xff]  }
  0x81   : > { %5137 = vmatprep.subr.bf16.mxu0 %v5705_v20  ;;  %v5745_v53 = vld [vmem:[%s6818_s20 + $0xb4] ss:$28 sps:$4 sm:$0xff]   ;;  %v5749_v57 = vld [vmem:[%s6818_s20 + $0xe4] ss:$28 sps:$4 sm:$0xff]   ;;  %v5753_v60 = vld [vmem:[%s6818_s20 + $0xec] ss:$28 sps:$4 sm:$0xff]  }
  0x82   : > { %5200 = vmatpush3.bf16.msra.mxu1 %v5704_v19  ;;  %v5757_v58 = vld [vmem:[%s8281_s2 + $0x180] sm:$0xff]   ;;  %v5748_v59 = vld [vmem:[%s6818_s20 + $0xb0] ss:$28 sps:$4 sm:$0xff]   ;;  %v5758_v3 = vld [vmem:[%s6818_s20 + $0x11c] ss:$28 sps:$4 sm:$0xff]  }
  0x83   : > { %5201 = vmatprep.subr.bf16.mxu1 %v5707_v22  ;;  %v5761_v61 = vld [vmem:[%s8281_s2 + $0x168] sm:$0xff]   ;;  %v5767_v0 = vld [vmem:[%s8281_s2 + $0x190] sm:$0xff]   ;;  %v5751_v1 = vld [vmem:[%s6818_s20 + $0xe0] ss:$28 sps:$4 sm:$0xff]  }
  0x84   : > { %5138 = vmatpush3.bf16.msra.mxu0 %v5706_v21  ;;  %v5762_v62 = vld [vmem:[%s8281_s2 + $0x188] sm:$0xff]   ;;  %v5771_v4 = vld [vmem:[%s8281_s2 + $0x170] sm:$0xff]   ;;  %v5772_v5 = vld [vmem:[%s8281_s2 + $0x198] sm:$0xff]  }
  0x85   : > { %5139 = vmatprep.subr.bf16.mxu0 %v5709_v24  ;;  %v5765_v63 = vld [vmem:[%s8281_s2 + $0x128] sm:$0xff]   ;;  %v5763_v6 = vld [vmem:[%s6818_s20 + $0x124] ss:$28 sps:$4 sm:$0xff]   ;;  %v5775_v7 = vld [vmem:[%s8281_s2 + $0x130] sm:$0xff]  }
  0x86   : > { %5202 = vmatpush3.bf16.msra.mxu1 %v5708_v23  ;;  %v5756_v2 = vld [vmem:[%s6818_s20 + $0xe8] ss:$28 sps:$4 sm:$0xff]   ;;  %v5760_v9 = vld [vmem:[%s6818_s20 + $0x118] ss:$28 sps:$4 sm:$0xff]   ;;  %v5766_v11 = vld [vmem:[%s6818_s20 + $0x120] ss:$28 sps:$4 sm:$0xff]  }
  0x87   : > { %5203 = vmatprep.subr.bf16.mxu1 %v5711_v26  ;;  %v5777_v8 = vld [vmem:[%s8281_s2 + $0x1a0] sm:$0xff]   ;;  %v5781_v10 = vld [vmem:[%s8281_s2 + $0x178] sm:$0xff]   ;;  %v5768_v12 = vld [vmem:[%s6818_s20 + $0x154] ss:$28 sps:$4 sm:$0xff]  }
  0x88   : > { %5140 = vmatpush3.bf16.msra.mxu0 %v5710_v25  ;;  %v5782_v13 = vld [vmem:[%s8281_s2 + $0x1a8] sm:$0xff]   ;;  %v5785_v14 = vld [vmem:[%s8281_s2 + $0x138] sm:$0xff]   ;;  %v5787_v16 = vld [vmem:[%s8281_s2 + $0x1b0] sm:$0xff]  }
  0x89   : > { %5141 = vmatprep.subr.bf16.mxu0 %v5713_v28  ;;  %v5773_v15 = vld [vmem:[%s6818_s20 + $0x15c] ss:$28 sps:$4 sm:$0xff]   ;;  %v5770_v17 = vld [vmem:[%s6818_s20 + $0x150] ss:$28 sps:$4 sm:$0xff]   ;;  %v5780_v22 = vld [vmem:[%s6818_s20 + $0x188] ss:$28 sps:$4 sm:$0xff]  }
  0x8a   : > { %5204 = vmatpush3.bf16.msra.mxu1 %v5712_v27  ;;  %v5778_v18 = vld [vmem:[%s6818_s20 + $0x18c] ss:$28 sps:$4 sm:$0xff]   ;;  %v5791_v19 = vld [vmem:[%s8281_s2 + $0x1b8] sm:$0xff]   ;;  %v5783_v21 = vld [vmem:[%s6818_s20 + $0x194] ss:$28 sps:$4 sm:$0xff]  }
  0x8b   : > { %5205 = vmatprep.subr.bf16.mxu1 %v5715_v30  ;;  %v5776_v20 = vld [vmem:[%s6818_s20 + $0x158] ss:$28 sps:$4 sm:$0xff]   ;;  %v5786_v24 = vld [vmem:[%s6818_s20 + $0x190] ss:$28 sps:$4 sm:$0xff]   ;;  %v5796_v30 = vld [vmem:[%s6818_s20 + $0x48] ss:$28 sps:$4 sm:$0xff]  }
  0x8c   : > { %5142 = vmatpush3.bf16.msra.mxu0 %v5714_v29  ;;  %v5790_v23 = vld [vmem:[%s6818_s20 + $0x14] ss:$28 sps:$4 sm:$0xff]   ;;  %v5794_v27 = vld [vmem:[%s6818_s20 + $0x4c] ss:$28 sps:$4 sm:$0xff]   ;;  %v5801_v32 = vld [vmem:[%s6818_s20 + $0xc0] ss:$28 sps:$4 sm:$0xff]  }
  0x8d   : > { %5255 = vmatprep.subr.bf16.mxu0 %v5720_v34  ;;  %v5792_v25 = vld [vmem:[%s6818_s20 + $0x18] ss:$28 sps:$4 sm:$0xff]   ;;  %v5788_v26 = vld [vmem:[%s6818_s20 + $0x10] ss:$28 sps:$4 sm:$0xff]   ;;  %v5800_v29 = vld [vmem:[%s6818_s20 + $0x88] ss:$28 sps:$4 sm:$0xff]  }
  0x8e   : > { %5206 = vmatpush3.bf16.msra.mxu1 %v5719_v33  ;;  %v5793_v28 = vld [vmem:[%s6818_s20 + $0x50] ss:$28 sps:$4 sm:$0xff]   ;;  %v5808_v33 = vld [vmem:[%s6818_s20 + $0xf8] ss:$28 sps:$4 sm:$0xff]   ;;  %v5799_v34 = vld [vmem:[%s6818_s20 + $0x80] ss:$28 sps:$4 sm:$0xff]  }
  0x8f   : > { %1460 = vmatmul.mubr.bf16.vlgmr.msra.gmra.mrb[0].mxu0 %v5716_v31  ;;  %5413 = vmatprep.subr.bf16.mxu1 %v5757_v58  ;;  %v5797_v31 = vld [vmem:[%s6818_s20 + $0x84] ss:$28 sps:$4 sm:$0xff]   ;;  %v5809_v36 = vld [vmem:[%s6818_s20 + $0x130] ss:$28 sps:$4 sm:$0xff]  }
  0x90   : > { %5256 = vmatpush3.bf16.msra.mxu0 %v5724_v37  ;;  %1467 = vmatprep.mubr.bf16.mxu0 %v5725_v38  ;;  %v5816_v37 = vld [vmem:[%s6818_s20 + $0x168] ss:$28 sps:$4 sm:$0xff]   ;;  %v5804_v38 = vld [vmem:[%s6818_s20 + $0xb8] ss:$28 sps:$4 sm:$0xff]  }
  0x91   : > { %1557 = vmatmul.mubr.bf16.vlgmr.msra.gmra.mrb[0].mxu1 %v5721_v35  ;;  %5257 = vmatprep.subr.bf16.mxu0 %v5728_v40  ;;  %v5802_v35 = vld [vmem:[%s6818_s20 + $0xbc] ss:$28 sps:$4 sm:$0xff]  }
  0x92   : > { %1564 = vmatprep.mubr.bf16.mxu1 %v5729_v41  ;;  %5414 = vmatpush3.bf16.msra.mxu1 %v5757_v58  ;;  %v5817_v40 = vld [vmem:[%s6818_s20 + $0x1a0] ss:$28 sps:$4 sm:$0xff]   ;;  %v5807_v41 = vld [vmem:[%s6818_s20 + $0xf0] ss:$28 sps:$4 sm:$0xff]  }
  0x93   : > { %5415 = vmatprep.subr.bf16.mxu1 %v5762_v62 }
  0x94   : > { %5258 = vmatpush3.bf16.msra.mxu0 %v5731_v42  ;;  %v5810_v42 = vld [vmem:[%s6818_s20 + $0x12c] ss:$28 sps:$4 sm:$0xff]  }
  0x95   : > { %5259 = vmatprep.subr.bf16.mxu0 %v5736_v45  ;;  %v5815_v45 = vld [vmem:[%s6818_s20 + $0x160] ss:$28 sps:$4 sm:$0xff]  }
  0x96   : > { %5416 = vmatpush3.bf16.msra.mxu1 %v5762_v62 }
  0x97   : > { %1468 = vmatmul.mubr.bf16.gmra.mrb[4].mxu0 %v5727_v39  ;;  %5417 = vmatprep.subr.bf16.mxu1 %v5767_v0  ;;  %v5805_v39 = vld [vmem:[%s6818_s20 + $0xf4] ss:$28 sps:$4 sm:$0xff]  }
  0x98   : > { %1475 = vmatprep.mubr.bf16.mxu0 %v5733_v44  ;;  %5260 = vmatpush3.bf16.msra.mxu0 %v5739_v47  ;;  %v5813_v44 = vld [vmem:[%s6818_s20 + $0x164] ss:$28 sps:$4 sm:$0xff]   ;;  %v5820_v47 = vld [vmem:[%s6818_s20 + $0x198] ss:$28 sps:$4 sm:$0xff]  }
  0x99   : > { %1565 = vmatmul.mubr.bf16.gmra.mrb[4].mxu1 %v5732_v43  ;;  %5261 = vmatprep.subr.bf16.mxu0 %v5744_v50  ;;  %v5812_v43 = vld [vmem:[%s6818_s20 + $0x128] ss:$28 sps:$4 sm:$0xff]   ;;  %v5823_v50 = vld [vmem:[%s8283_s4 + $0x10] sm:$0xff]  }
  0x9a   : > { %1572 = vmatprep.mubr.bf16.mxu1 %v5737_v46  ;;  %5418 = vmatpush3.bf16.msra.mxu1 %v5767_v0  ;;  %v5818_v46 = vld [vmem:[%s6818_s20 + $0x19c] ss:$28 sps:$4 sm:$0xff]   ;;  %s8338_s20 = sld [smem:[#allocation22_spill]] }
  0x9b   : > { %5419 = vmatprep.subr.bf16.mxu1 %v5772_v5 }
  0x9c   : > { %5262 = vmatpush3.bf16.msra.mxu0 %v5747_v52  ;;  %v5825_v52 = vld [vmem:[%s8283_s4 + $0x20] sm:$0xff]  }
  0x9d   : > { %5263 = vmatprep.subr.bf16.mxu0 %v5752_v54  ;;  %v5827_v54 = vld [vmem:[%s8283_s4 + $0x30] sm:$0xff]  }
  0x9e   : > { %5420 = vmatpush3.bf16.msra.mxu1 %v5772_v5 }
  0x9f   : > { %1476 = vmatmul.mubr.bf16.gmra.mrb[8].mxu0 %v5735_v48  ;;  %5421 = vmatprep.subr.bf16.mxu1 %v5777_v8  ;;  %v5821_v48 = vld [vmem:[%s8283_s4] sm:$0xff]  }
  0xa0   : > { %1483 = vmatprep.mubr.bf16.mxu0 %v5741_v49  ;;  %5264 = vmatpush3.bf16.msra.mxu0 %v5755_v56  ;;  %v5822_v49 = vld [vmem:[%s8283_s4 + $0x8] sm:$0xff]   ;;  %s7285_s18 = scalar_lea.vmem %s8338_s20, %s4777_s14  ;;  %s8341_s14 = smov %s8340_s24 }
  0xa1   : > { %1573 = vmatmul.mubr.bf16.gmra.mrb[8].mxu1 %v5740_v51  ;;  %5265 = vmatprep.subr.bf16.mxu0 %v5761_v61  ;;  %v5824_v51 = vld [vmem:[%s8283_s4 + $0x18] sm:$0xff]   ;;  %s5126_s20 = sshll.u32 %s6690_s28, 11 }
  0xa2   : > { %1580 = vmatprep.mubr.bf16.mxu1 %v5745_v53  ;;  %5422 = vmatpush3.bf16.msra.mxu1 %v5777_v8  ;;  %v5826_v53 = vld [vmem:[%s8283_s4 + $0x28] sm:$0xff]  }
  0xa3   : > { %5423 = vmatprep.subr.bf16.mxu1 %v5782_v13 }
  0xa4   : > { %5266 = vmatpush3.bf16.msra.mxu0 %v5765_v63 }
  0xa5   : > { %5267 = vmatprep.subr.bf16.mxu0 %v5771_v4 }
  0xa6   : > { %5424 = vmatpush3.bf16.msra.mxu1 %v5782_v13 }
  0xa7   : > { %1484 = vmatmul.mubr.bf16.gmra.mrb[12].mxu0 %v5743_v55  ;;  %5425 = vmatprep.subr.bf16.mxu1 %v5787_v16  ;;  %v5828_v55 = vld [vmem:[%s8283_s4 + $0x38] sm:$0xff]  }
  0xa8   : > { %1491 = vmatprep.mubr.bf16.mxu0 %v5749_v57  ;;  %5268 = vmatpush3.bf16.msra.mxu0 %v5775_v7  ;;  %v7079_v57 = vld [vmem:[%s8282_s3] ss:$0 sm:$0xff]  ;;  %v7091_v7 = vld [vmem:[%s8285_s6 + $0x8] sm:$0xff]  }
  0xa9   : > { %1581 = vmatmul.mubr.bf16.gmra.mrb[12].mxu1 %v5748_v59  ;;  %5269 = vmatprep.subr.bf16.mxu0 %v5781_v10 }
  0xaa   : > { %1588 = vmatprep.mubr.bf16.mxu1 %v5753_v60  ;;  %5426 = vmatpush3.bf16.msra.mxu1 %v5787_v16 }
  0xab   : > { %5427 = vmatprep.subr.bf16.mxu1 %v5791_v19 }
  0xac   : > { %5270 = vmatpush3.bf16.msra.mxu0 %v5785_v14 }
  0xae   : > { %5428 = vmatpush3.bf16.msra.mxu1 %v5791_v19 }
  0xaf   : > { %1492 = vmatmul.mubr.bf16.gmra.mrb[16].mxu0 %v5751_v1  ;;  %5445 = vmatprep.subr.bf16.mxu1 %v5821_v48 }
  0xb0   : > { %1499 = vmatprep.mubr.bf16.mxu0 %v5758_v3 }
  0xb1   : > { %1589 = vmatmul.mubr.bf16.gmra.mrb[16].mxu1 %v5756_v2 }
  0xb2   : > { %1596 = vmatprep.mubr.bf16.mxu1 %v5763_v6  ;;  %v7086_v6 = vld [vmem:[%s8285_s6] sm:$0xff]  }
  0xb3   : > { %5477 = vmatprep.subr.bf16.mxu0 %v7086_v6 }
  0xb7   : > { %1500 = vmatmul.mubr.bf16.gmra.mrb[20].mxu0 %v5760_v9 }
  0xb8   : > { %1507 = vmatprep.mubr.bf16.mxu0 %v5768_v12 }
  0xb9   : > { %1597 = vmatmul.mubr.bf16.gmra.mrb[20].mxu1 %v5766_v11 }
  0xba   : > { %1604 = vmatprep.mubr.bf16.mxu1 %v5773_v15 }
  0xbf   : > { %1508 = vmatmul.mubr.bf16.gmra.mrb[24].mxu0 %v5770_v17 }
  0xc0   : > { %1515 = vmatprep.mubr.bf16.mxu0 %v5778_v18 }
  0xc1   : > { %1605 = vmatmul.mubr.bf16.gmra.mrb[24].mxu1 %v5776_v20 }
  0xc2   : > { %1612 = vmatprep.mubr.bf16.mxu1 %v5783_v21 }
  0xc7   : > { %1516 = vmatmul.mubr.bf16.gmra.mrb[28].mxu0 %v5780_v22 }
  0xc8   : > { %1653 = vmatprep.mubr.bf16.mxu0 %v5790_v23 }
  0xc9   : > { %1613 = vmatmul.mubr.bf16.gmra.mrb[28].mxu1 %v5786_v24 }
  0xca   : > { %5429 = vmatprep.mubr.bf16.mxu1 %v5792_v25 }
  0xcf   : > { %1654 = vmatmul.mubr.bf16.vlgmr.msra.gmra.mrb[32].mxu0 %v5788_v26 }
  0xd0   : > { %1661 = vmatprep.mubr.bf16.mxu0 %v5794_v27  ;;  %5478 = vmatpush3.bf16.msra.mxu0 %v7086_v6 }
  0xd1   : > { %5430 = vmatmul.mubr.bf16.vlgmr.msra.gmra.mrb[32].mxu1 %v5793_v28  ;;  %5479 = vmatprep.subr.bf16.mxu0 %v7091_v7 }
  0xd2   : > { %5433 = vmatprep.mubr.bf16.mxu1 %v5800_v29  ;;  %5446 = vmatpush3.bf16.msra.mxu1 %v5821_v48 }
  0xd3   : > { %5447 = vmatprep.subr.bf16.mxu1 %v5822_v49 }
  0xd4   : > { %5480 = vmatpush3.bf16.msra.mxu0 %v7091_v7 }
  0xd6   : > { %5448 = vmatpush3.bf16.msra.mxu1 %v5822_v49 }
  0xd7   : > { %1662 = vmatmul.mubr.bf16.gmra.mrb[36].mxu0 %v5796_v30  ;;  %5449 = vmatprep.subr.bf16.mxu1 %v5823_v50 }
  0xd8   : > { %1669 = vmatprep.mubr.bf16.mxu0 %v5797_v31 }
  0xd9   : > { %5434 = vmatmul.mubr.bf16.gmra.mrb[36].mxu1 %v5801_v32 }
  0xda   : > { %5437 = vmatprep.mubr.bf16.mxu1 %v5808_v33  ;;  %5450 = vmatpush3.bf16.msra.mxu1 %v5823_v50 }
  0xdb   : > { %5451 = vmatprep.subr.bf16.mxu1 %v5824_v51 }
  0xde   : > { %5452 = vmatpush3.bf16.msra.mxu1 %v5824_v51 }
  0xdf   : > { %1670 = vmatmul.mubr.bf16.gmra.mrb[40].mxu0 %v5799_v34  ;;  %5453 = vmatprep.subr.bf16.mxu1 %v5825_v52 }
  0xe0   : > { %1677 = vmatprep.mubr.bf16.mxu0 %v5802_v35 }
  0xe1   : > { %5438 = vmatmul.mubr.bf16.gmra.mrb[40].mxu1 %v5809_v36 }
  0xe2   : > { %5441 = vmatprep.mubr.bf16.mxu1 %v5816_v37  ;;  %5454 = vmatpush3.bf16.msra.mxu1 %v5825_v52 }
  0xe3   : > { %5455 = vmatprep.subr.bf16.mxu1 %v5826_v53 }
  0xe6   : > { %5456 = vmatpush3.bf16.msra.mxu1 %v5826_v53 }
  0xe7   : > { %1678 = vmatmul.mubr.bf16.gmra.mrb[44].mxu0 %v5804_v38  ;;  %5457 = vmatprep.subr.bf16.mxu1 %v5827_v54 }
  0xe8   : > { %1685 = vmatprep.mubr.bf16.mxu0 %v5805_v39 }
  0xe9   : > { %5442 = vmatmul.mubr.bf16.gmra.mrb[44].mxu1 %v5817_v40 }
  0xea   : > { %5458 = vmatpush3.bf16.msra.mxu1 %v5827_v54 }
  0xeb   : > { %5459 = vmatprep.subr.bf16.mxu1 %v5828_v55 }
  0xee   : > { %5460 = vmatpush3.bf16.msra.mxu1 %v5828_v55 }
  0xef   : > { %1686 = vmatmul.mubr.bf16.gmra.mrb[48].mxu0 %v5807_v41  ;;  %5601 = vmatprep.subr.bf16.mxu1 %v7086_v6 }
  0xf0   : > { %1693 = vmatprep.mubr.bf16.mxu0 %v5810_v42 }
  0xf7   : > { %1694 = vmatmul.mubr.bf16.gmra.mrb[52].mxu0 %v5812_v43 }
  0xf8   : > { %1701 = vmatprep.mubr.bf16.mxu0 %v5813_v44 }
  0xff   : > { %1702 = vmatmul.mubr.bf16.gmra.mrb[56].mxu0 %v5815_v45 }
 0x100   : > { %1709 = vmatprep.mubr.bf16.mxu0 %v5818_v46 }
 0x107   : > { %1710 = vmatmul.mubr.bf16.gmra.mrb[60].mxu0 %v5820_v47 }
 0x162   : > { %v5143_v56 = vpop.f32.mrb[0].mxu0 }
 0x163   : > { %v5144_v58 = vpop.f32.mrb[1].mxu0 }
 0x164   : > { %v5145_v59 = vadd.f32 %v5144_v58, %v5143_v56  ;;  %v5146_v60 = vpop.f32.mrb[2].mxu0  ;;  %v5207_v61 = vpop.f32.mrb[0].mxu1 }
 0x165   : > { %v5147_v62 = vpop.f32.mrb[3].mxu0  ;;  %v5208_v1 = vpop.f32.mrb[1].mxu1 }
 0x166   : > { %v1462_v63 = vadd.f32 %v5145_v59, %v7079_v57  ;;  %v5148_v0 = vadd.f32 %v5147_v62, %v5146_v60  ;;  %v5209_v2 = vadd.f32 %v5208_v1, %v5207_v61  ;;  %v5210_v3 = vpop.f32.mrb[2].mxu1 }
 0x167   : > { %v5211_v5 = vpop.f32.mrb[3].mxu1 }
 0x168   : > { %v1465_v4 = vadd.f32 %v5148_v0, %v7079_v57  ;;  %v7093_v8 = vadd.f32 %v5209_v2, %v1462_v63  ;;  %v5212_v9 = vadd.f32 %v5211_v5, %v5210_v3 }
 0x16a   : > { %v5149_v10 = vpop.f32.mrb[4].mxu0  ;;  %v7097_v11 = vadd.f32 %v5212_v9, %v1465_v4 }
 0x16b   : > { %v5150_v12 = vpop.f32.mrb[5].mxu0 }
 0x16c   : > { %v5151_v13 = vadd.f32 %v5150_v12, %v5149_v10  ;;  %v5152_v14 = vpop.f32.mrb[6].mxu0  ;;  %v5213_v15 = vpop.f32.mrb[4].mxu1 }
 0x16d   : > { %v5153_v16 = vpop.f32.mrb[7].mxu0  ;;  %v5214_v19 = vpop.f32.mrb[5].mxu1 }
 0x16e   : > { %v1470_v17 = vadd.f32 %v5151_v13, %v7079_v57  ;;  %v5154_v18 = vadd.f32 %v5153_v16, %v5152_v14  ;;  %v5215_v20 = vadd.f32 %v5214_v19, %v5213_v15  ;;  %v5216_v21 = vpop.f32.mrb[6].mxu1 }
 0x16f   : > { %v5217_v23 = vpop.f32.mrb[7].mxu1 }
 0x170   : > { %v1473_v22 = vadd.f32 %v5154_v18, %v7079_v57  ;;  %v7104_v24 = vadd.f32 %v5215_v20, %v1470_v17  ;;  %v5218_v25 = vadd.f32 %v5217_v23, %v5216_v21 }
 0x172   : > { %v5155_v26 = vpop.f32.mrb[8].mxu0  ;;  %v7106_v27 = vadd.f32 %v5218_v25, %v1473_v22 }
 0x173   : > { %v5156_v28 = vpop.f32.mrb[9].mxu0 }
 0x174   : > { %v5157_v29 = vadd.f32 %v5156_v28, %v5155_v26  ;;  %v5158_v30 = vpop.f32.mrb[10].mxu0  ;;  %v5219_v31 = vpop.f32.mrb[8].mxu1 }
 0x175   : > { %v5159_v32 = vpop.f32.mrb[11].mxu0  ;;  %v5220_v35 = vpop.f32.mrb[9].mxu1 }
 0x176   : > { %v1478_v33 = vadd.f32 %v5157_v29, %v7079_v57  ;;  %v5160_v34 = vadd.f32 %v5159_v32, %v5158_v30  ;;  %v5221_v36 = vadd.f32 %v5220_v35, %v5219_v31  ;;  %v5222_v37 = vpop.f32.mrb[10].mxu1 }
 0x177   : > { %v5223_v39 = vpop.f32.mrb[11].mxu1 }
 0x178   : > { %v1481_v38 = vadd.f32 %v5160_v34, %v7079_v57  ;;  %v7110_v40 = vadd.f32 %v5221_v36, %v1478_v33  ;;  %v5224_v41 = vadd.f32 %v5223_v39, %v5222_v37 }
 0x17a   : > { %v5161_v42 = vpop.f32.mrb[12].mxu0  ;;  %v7112_v43 = vadd.f32 %v5224_v41, %v1481_v38 }
 0x17b   : > { %v5162_v44 = vpop.f32.mrb[13].mxu0 }
 0x17c   : > { %v5163_v45 = vadd.f32 %v5162_v44, %v5161_v42  ;;  %v5164_v46 = vpop.f32.mrb[14].mxu0  ;;  %v5225_v47 = vpop.f32.mrb[12].mxu1 }
 0x17d   : > { %v5165_v48 = vpop.f32.mrb[15].mxu0  ;;  %v5226_v51 = vpop.f32.mrb[13].mxu1 }
 0x17e   : > { %v1486_v49 = vadd.f32 %v5163_v45, %v7079_v57  ;;  %v5166_v50 = vadd.f32 %v5165_v48, %v5164_v46  ;;  %v5227_v52 = vadd.f32 %v5226_v51, %v5225_v47  ;;  %v5228_v53 = vpop.f32.mrb[14].mxu1 }
 0x17f   : > { %v5229_v55 = vpop.f32.mrb[15].mxu1 }
 0x180   : > { %v1489_v54 = vadd.f32 %v5166_v50, %v7079_v57  ;;  %v7116_v56 = vadd.f32 %v5227_v52, %v1486_v49  ;;  %v5230_v58 = vadd.f32 %v5229_v55, %v5228_v53 }
 0x182   : > { %v5167_v59 = vpop.f32.mrb[16].mxu0  ;;  %v7118_v60 = vadd.f32 %v5230_v58, %v1489_v54 }
 0x183   : > { %v5168_v61 = vpop.f32.mrb[17].mxu0 }
 0x184   : > { %v5169_v62 = vadd.f32 %v5168_v61, %v5167_v59  ;;  %v5170_v63 = vpop.f32.mrb[18].mxu0  ;;  %v5231_v0 = vpop.f32.mrb[16].mxu1 }
 0x185   : > { %v5171_v1 = vpop.f32.mrb[19].mxu0  ;;  %v5232_v4 = vpop.f32.mrb[17].mxu1 }
 0x186   : > { %v1494_v2 = vadd.f32 %v5169_v62, %v7079_v57  ;;  %v5172_v3 = vadd.f32 %v5171_v1, %v5170_v63  ;;  %v5233_v5 = vadd.f32 %v5232_v4, %v5231_v0  ;;  %v5234_v9 = vpop.f32.mrb[18].mxu1 }
 0x187   : > { %v5235_v12 = vpop.f32.mrb[19].mxu1 }
 0x188   : > { %v1497_v10 = vadd.f32 %v5172_v3, %v7079_v57  ;;  %v7122_v13 = vadd.f32 %v5233_v5, %v1494_v2  ;;  %v5236_v14 = vadd.f32 %v5235_v12, %v5234_v9 }
 0x18a   : > { %v5173_v15 = vpop.f32.mrb[20].mxu0  ;;  %v7124_v16 = vadd.f32 %v5236_v14, %v1497_v10 }
 0x18b   : > { %v5174_v17 = vpop.f32.mrb[21].mxu0 }
 0x18c   : > { %v5175_v18 = vadd.f32 %v5174_v17, %v5173_v15  ;;  %v5176_v19 = vpop.f32.mrb[22].mxu0  ;;  %v5237_v20 = vpop.f32.mrb[20].mxu1 }
 0x18d   : > { %v5177_v21 = vpop.f32.mrb[23].mxu0  ;;  %v5238_v25 = vpop.f32.mrb[21].mxu1 }
 0x18e   : > { %v1502_v22 = vadd.f32 %v5175_v18, %v7079_v57  ;;  %v5178_v23 = vadd.f32 %v5177_v21, %v5176_v19  ;;  %v5239_v26 = vadd.f32 %v5238_v25, %v5237_v20  ;;  %v5240_v28 = vpop.f32.mrb[22].mxu1 }
 0x18f   : > { %v5241_v30 = vpop.f32.mrb[23].mxu1 }
 0x190   : > { %v1505_v29 = vadd.f32 %v5178_v23, %v7079_v57  ;;  %v7128_v31 = vadd.f32 %v5239_v26, %v1502_v22  ;;  %v5242_v32 = vadd.f32 %v5241_v30, %v5240_v28 }
 0x192   : > { %v5179_v33 = vpop.f32.mrb[24].mxu0  ;;  %v7130_v34 = vadd.f32 %v5242_v32, %v1505_v29 }
 0x193   : > { %v5180_v35 = vpop.f32.mrb[25].mxu0 }
 0x194   : > { %v5181_v36 = vadd.f32 %v5180_v35, %v5179_v33  ;;  %v5182_v37 = vpop.f32.mrb[26].mxu0  ;;  %v5243_v38 = vpop.f32.mrb[24].mxu1 }
 0x195   : > { %v5183_v39 = vpop.f32.mrb[27].mxu0  ;;  %v5244_v44 = vpop.f32.mrb[25].mxu1 }
 0x196   : > { %v1510_v41 = vadd.f32 %v5181_v36, %v7079_v57  ;;  %v5184_v42 = vadd.f32 %v5183_v39, %v5182_v37  ;;  %v5245_v45 = vadd.f32 %v5244_v44, %v5243_v38  ;;  %v5246_v46 = vpop.f32.mrb[26].mxu1 }
 0x197   : > { %v5247_v48 = vpop.f32.mrb[27].mxu1 }
 0x198   : > { %v1513_v47 = vadd.f32 %v5184_v42, %v7079_v57  ;;  %v7134_v49 = vadd.f32 %v5245_v45, %v1510_v41  ;;  %v5248_v50 = vadd.f32 %v5247_v48, %v5246_v46 }
 0x19a   : > { %v5185_v51 = vpop.f32.mrb[28].mxu0  ;;  %v7136_v52 = vadd.f32 %v5248_v50, %v1513_v47 }
 0x19b   : > { %v5186_v53 = vpop.f32.mrb[29].mxu0 }
 0x19c   : > { %v5187_v54 = vadd.f32 %v5186_v53, %v5185_v51  ;;  %v5188_v55 = vpop.f32.mrb[30].mxu0  ;;  %v5249_v58 = vpop.f32.mrb[28].mxu1 }
 0x19d   : > { %v5189_v59 = vpop.f32.mrb[31].mxu0  ;;  %v5250_v63 = vpop.f32.mrb[29].mxu1 }
 0x19e   : > { %v1518_v61 = vadd.f32 %v5187_v54, %v7079_v57  ;;  %v5190_v62 = vadd.f32 %v5189_v59, %v5188_v55  ;;  %v5251_v0 = vadd.f32 %v5250_v63, %v5249_v58  ;;  %v5252_v1 = vpop.f32.mrb[30].mxu1 }
 0x19f   : > { %v5253_v3 = vpop.f32.mrb[31].mxu1 }
 0x1a0   : > { %v1521_v2 = vadd.f32 %v5190_v62, %v7079_v57  ;;  %v7140_v4 = vadd.f32 %v5251_v0, %v1518_v61  ;;  %v5254_v5 = vadd.f32 %v5253_v3, %v5252_v1 }
 0x1a2   : > { %v5271_v9 = vpop.f32.mrb[32].mxu0  ;;  %v7142_v10 = vadd.f32 %v5254_v5, %v1521_v2 }
 0x1a3   : > { %v5272_v12 = vpop.f32.mrb[33].mxu0 }
 0x1a4   : > { %v5273_v14 = vadd.f32 %v5272_v12, %v5271_v9  ;;  %v5274_v15 = vpop.f32.mrb[34].mxu0  ;;  %v5431_v18 = vpop.f32.mrb[32].mxu1 }
 0x1a5   : > { %v5275_v17 = vpop.f32.mrb[35].mxu0  ;;  %v1752_v21 = vpop.f32.mrb[33].mxu1 }
 0x1a6   : > { %v5276_v19 = vadd.f32 %v5275_v17, %v5274_v15  ;;  %v1656_v20 = vadd.f32 %v5273_v14, %v7093_v8  ;;  %v5432_v22 = vpop.f32.mrb[34].mxu1 }
 0x1a7   : > { %v1755_v25 = vpop.f32.mrb[35].mxu1 }
 0x1a8   : > { %v1753_v23 = vadd.f32 %v1752_v21, %v1656_v20  ;;  %v1659_v57 = vadd.f32 %v5276_v19, %v7097_v11 }
 0x1aa   : > { %v1756_v26 = vadd.f32 %v1755_v25, %v1659_v57  ;;  %v5277_v28 = vpop.f32.mrb[36].mxu0  ;;  %v1815_v30 = vmax.f32 %v1753_v23, 0.0 }
 0x1ab   : > { %v5278_v29 = vpop.f32.mrb[37].mxu0 }
 0x1ac   : > { %v1816_v32 = vmax.f32 %v1756_v26, 0.0  ;;  %v5279_v33 = vadd.f32 %v5278_v29, %v5277_v28  ;;  %v5280_v35 = vpop.f32.mrb[38].mxu0  ;;  %v5435_v37 = vpop.f32.mrb[36].mxu1 }
 0x1ad   : > { %v5281_v36 = vpop.f32.mrb[39].mxu0  ;;  %v1768_v8 = vpop.f32.mrb[37].mxu1 }
 0x1ae   : > { %v1831_v38 = vpack.c.bf16 %v1816_v32, %v1815_v30  ;;  %v1664_v39 = vadd.f32 %v5279_v33, %v7104_v24  ;;  %v5282_v41 = vadd.f32 %v5281_v36, %v5280_v35  ;;  %v5436_v42 = vpop.f32.mrb[38].mxu1 }
 0x1af   : > { %v1771_v11 = vpop.f32.mrb[39].mxu1 }
 0x1b0   : > { %v1761_v44 = vadd.f32 %v5431_v18, %v1664_v39  ;;  %v1667_v45 = vadd.f32 %v5282_v41, %v7106_v27  ;;  %5461 = vmatprep.mubr.bf16.mxu1 %v1831_v38 }
 0x1b2   : > { %v1764_v46 = vadd.f32 %v5432_v22, %v1667_v45  ;;  %v5283_v47 = vpop.f32.mrb[40].mxu0  ;;  %v1817_v50 = vmax.f32 %v1761_v44, 0.0 }
 0x1b3   : > { %v5284_v48 = vpop.f32.mrb[41].mxu0 }
 0x1b4   : > { %v1818_v51 = vmax.f32 %v1764_v46, 0.0  ;;  %v5285_v53 = vadd.f32 %v5284_v48, %v5283_v47  ;;  %v5286_v54 = vpop.f32.mrb[42].mxu0  ;;  %v5439_v58 = vpop.f32.mrb[40].mxu1 }
 0x1b5   : > { %v5287_v55 = vpop.f32.mrb[43].mxu0  ;;  %v1784_v62 = vpop.f32.mrb[41].mxu1 }
 0x1b6   : > { %v1832_v59 = vpack.c.bf16 %v1818_v51, %v1817_v50  ;;  %v5288_v61 = vadd.f32 %v5287_v55, %v5286_v54  ;;  %v1672_v24 = vadd.f32 %v5285_v53, %v7110_v40  ;;  %v5440_v63 = vpop.f32.mrb[42].mxu1 }
 0x1b7   : > { %v1787_v1 = vpop.f32.mrb[43].mxu1 }
 0x1b8   : > { %v1769_v0 = vadd.f32 %v1768_v8, %v1672_v24  ;;  %5462 = vmatmul.mubr.bf16.vlgmr.msra.gmra.mrb[48].mxu1 %v1832_v59  ;;  %v1675_v27 = vadd.f32 %v5288_v61, %v7112_v43 }
 0x1b9   : > { %5605 = vmatpush3.bf16.msra.mxu1 %v7086_v6 }
 0x1ba   : > { %v1772_v2 = vadd.f32 %v1771_v11, %v1675_v27  ;;  %v5289_v3 = vpop.f32.mrb[44].mxu0  ;;  %5602 = vmatprep.subr.bf16.mxu1 %v7091_v7  ;;  %v1819_v9 = vmax.f32 %v1769_v0, 0.0 }
 0x1bb   : > { %v5290_v5 = vpop.f32.mrb[45].mxu0 }
 0x1bc   : > { %v1820_v12 = vmax.f32 %v1772_v2, 0.0  ;;  %v5291_v14 = vadd.f32 %v5290_v5, %v5289_v3  ;;  %v5292_v15 = vpop.f32.mrb[46].mxu0  ;;  %v7152_v40 = vpop.f32.mrb[44].mxu1 }
 0x1bd   : > { %v5293_v17 = vpop.f32.mrb[47].mxu0  ;;  %5606 = vmatpush3.bf16.msra.mxu1 %v7091_v7  ;;  %v1800_v20 = vpop.f32.mrb[45].mxu1 }
 0x1be   : > { %v1833_v18 = vpack.c.bf16 %v1820_v12, %v1819_v9  ;;  %v1680_v43 = vadd.f32 %v5291_v14, %v7116_v56  ;;  %v5294_v19 = vadd.f32 %v5293_v17, %v5292_v15  ;;  %v5444_v6 = vpop.f32.mrb[46].mxu1 }
 0x1bf   : > { %v1803_v23 = vpop.f32.mrb[47].mxu1 }
 0x1c0   : > { %v1777_v21 = vadd.f32 %v5435_v37, %v1680_v43  ;;  %v1683_v22 = vadd.f32 %v5294_v19, %v7118_v60  ;;  %5465 = vmatprep.mubr.bf16.mxu1 %v1833_v18 }
 0x1c2   : > { %v1780_v57 = vadd.f32 %v5436_v42, %v1683_v22  ;;  %v5295_v25 = vpop.f32.mrb[48].mxu0  ;;  %v1821_v28 = vmax.f32 %v1777_v21, 0.0 }
 0x1c3   : > { %v5296_v26 = vpop.f32.mrb[49].mxu0 }
 0x1c4   : > { %v1822_v29 = vmax.f32 %v1780_v57, 0.0  ;;  %v5297_v30 = vadd.f32 %v5296_v26, %v5295_v25  ;;  %v5298_v32 = vpop.f32.mrb[50].mxu0 }
 0x1c5   : > { %v5299_v33 = vpop.f32.mrb[51].mxu0 }
 0x1c6   : > { %v5300_v7 = vadd.f32 %v5299_v33, %v5298_v32  ;;  %v1688_v35 = vadd.f32 %v5297_v30, %v7122_v13  ;;  %v1834_v56 = vpack.c.bf16 %v1822_v29, %v1821_v28 }
 0x1c8   : > { %v1785_v36 = vadd.f32 %v1784_v62, %v1688_v35  ;;  %5466 = vmatmul.mubr.bf16.gmra.mrb[52].mxu1 %v1834_v56  ;;  %v1691_v37 = vadd.f32 %v5300_v7, %v7124_v16 }
 0x1ca   : > { %v1788_v38 = vadd.f32 %v1787_v1, %v1691_v37  ;;  %v5301_v60 = vpop.f32.mrb[52].mxu0  ;;  %v1823_v41 = vmax.f32 %v1785_v36, 0.0 }
 0x1cb   : > { %v5302_v39 = vpop.f32.mrb[53].mxu0 }
 0x1cc   : > { %v1824_v8 = vmax.f32 %v1788_v38, 0.0  ;;  %v5303_v42 = vadd.f32 %v5302_v39, %v5301_v60  ;;  %v5304_v44 = vpop.f32.mrb[54].mxu0 }
 0x1cd   : > { %v5305_v45 = vpop.f32.mrb[55].mxu0 }
 0x1ce   : > { %v1835_v11 = vpack.c.bf16 %v1824_v8, %v1823_v41  ;;  %v1696_v46 = vadd.f32 %v5303_v42, %v7128_v31  ;;  %v5306_v47 = vadd.f32 %v5305_v45, %v5304_v44 }
 0x1d0   : > { %v1793_v48 = vadd.f32 %v5439_v58, %v1696_v46  ;;  %v1699_v13 = vadd.f32 %v5306_v47, %v7130_v34  ;;  %5469 = vmatprep.mubr.bf16.mxu1 %v1835_v11 }
 0x1d2   : > { %v1796_v50 = vadd.f32 %v5440_v63, %v1699_v13  ;;  %v5307_v51 = vpop.f32.mrb[56].mxu0  ;;  %v1825_v16 = vmax.f32 %v1793_v48, 0.0 }
 0x1d3   : > { %v5308_v53 = vpop.f32.mrb[57].mxu0 }
 0x1d4   : > { %v1826_v54 = vmax.f32 %v1796_v50, 0.0  ;;  %v5309_v55 = vadd.f32 %v5308_v53, %v5307_v51  ;;  %v5310_v59 = vpop.f32.mrb[58].mxu0 }
 0x1d5   : > { %v5311_v61 = vpop.f32.mrb[59].mxu0 }
 0x1d6   : > { %v5312_v24 = vadd.f32 %v5311_v61, %v5310_v59  ;;  %v1704_v62 = vadd.f32 %v5309_v55, %v7134_v49  ;;  %v1836_v0 = vpack.c.bf16 %v1826_v54, %v1825_v16 }
 0x1d8   : > { %v1801_v27 = vadd.f32 %v1800_v20, %v1704_v62  ;;  %5470 = vmatmul.mubr.bf16.gmra.mrb[56].mxu1 %v1836_v0  ;;  %v1707_v31 = vadd.f32 %v5312_v24, %v7136_v52  ;;  %v5831_v20 = vld [vmem:[%s8285_s6 + $0x10] sm:$0xff]  }
 0x1d9   : > { %5481 = vmatprep.subr.bf16.mxu0 %v5831_v20  ;;  %5603 = vmatprep.subr.bf16.mxu1 %v5831_v20 }
 0x1da   : > { %v1804_v58 = vadd.f32 %v1803_v23, %v1707_v31  ;;  %v5313_v1 = vpop.f32.mrb[60].mxu0  ;;  %v1827_v2 = vmax.f32 %v1801_v27, 0.0  ;;  %5482 = vmatpush3.bf16.msra.mxu0 %v5831_v20  ;;  %5607 = vmatpush3.bf16.msra.mxu1 %v5831_v20  ;;  %v5834_v31 = vld [vmem:[%s8287_s8 + $0x8] sm:$0xff]  }
 0x1db   : > { %v5314_v34 = vpop.f32.mrb[61].mxu0  ;;  %v5838_v20 = vld [vmem:[%s8289_s10 + $0x8] sm:$0xff]  }
 0x1dc   : > { %v1828_v63 = vmax.f32 %v1804_v58, 0.0  ;;  %v5315_v3 = vadd.f32 %v5314_v34, %v5313_v1  ;;  %v5316_v5 = vpop.f32.mrb[62].mxu0  ;;  %v5835_v58 = vld [vmem:[%s8287_s8 + $0x10] sm:$0xff]  }
 0x1dd   : > { %v5317_v9 = vpop.f32.mrb[63].mxu0 }
 0x1de   : > { %v1837_v12 = vpack.c.bf16 %v1828_v63, %v1827_v2  ;;  %v1712_v14 = vadd.f32 %v5315_v3, %v7140_v4  ;;  %v5318_v15 = vadd.f32 %v5317_v9, %v5316_v5  ;;  %v5832_v4 = vld [vmem:[%s8285_s6 + $0x18] sm:$0xff]  }
 0x1df   : > { %5483 = vmatprep.subr.bf16.mxu0 %v5832_v4  ;;  %5604 = vmatprep.subr.bf16.mxu1 %v5832_v4  ;;  %v5836_v63 = vld [vmem:[%s8287_s8 + $0x18] sm:$0xff]  }
 0x1e0   : > { %v1809_v17 = vadd.f32 %v7152_v40, %v1712_v14  ;;  %v1715_v49 = vadd.f32 %v5318_v15, %v7142_v10  ;;  %5473 = vmatprep.mubr.bf16.mxu1 %v1837_v12  ;;  %5484 = vmatpush3.bf16.msra.mxu0 %v5832_v4  ;;  %v5833_v10 = vld [vmem:[%s8287_s8] sm:$0xff]  }
 0x1e1   : > { %5608 = vmatpush3.bf16.msra.mxu1 %v5832_v4  ;;  %v7178_v40 = vld [vmem:[%s8284_s5] ss:$0 sm:$0xff] }
 0x1e2   : > { %v1812_v18 = vadd.f32 %v5444_v6, %v1715_v49  ;;  %v1829_v43 = vmax.f32 %v1809_v17, 0.0  ;;  %5501 = vmatprep.subr.bf16.mxu1 %v5833_v10 }
 0x1e4   : > { %v1830_v52 = vmax.f32 %v1812_v18, 0.0 }
 0x1e6   : > { %v1838_v19 = vpack.c.bf16 %v1830_v52, %v1829_v43 }
 0x1e8   : > { %5474 = vmatmul.mubr.bf16.gmra.mrb[60].mxu1 %v1838_v19  ;;  %v5837_v19 = vld [vmem:[%s8289_s10] sm:$0xff]  }
 0x1e9   : > { %5525 = vmatprep.subr.bf16.mxu0 %v5837_v19 }
 0x28b   : > { %v5463_v6 = vpop.f32.mrb[48].mxu1 }
 0x28c   : > { %v1953_v21 = vadd.f32 %v5463_v6, %v7178_v40  ;;  %v1944_v22 = vpop.f32.mrb[49].mxu1 }
 0x28d   : > { %v1945_v23 = vadd.f32 %v7178_v40, %v1944_v22  ;;  %v5464_v57 = vpop.f32.mrb[50].mxu1 }
 0x28e   : > { %v1956_v25 = vadd.f32 %v5464_v57, %v7178_v40  ;;  %v1947_v26 = vpop.f32.mrb[51].mxu1  ;;  %v2009_v29 = vmax.f32 %v1953_v21, 0.0 }
 0x28f   : > { %v1948_v28 = vadd.f32 %v7178_v40, %v1947_v26  ;;  %v2007_v32 = vmax.f32 %v1945_v23, 0.0 }
 0x290   : > { %v2010_v30 = vmax.f32 %v1956_v25, 0.0 }
 0x291   : > { %v2008_v33 = vmax.f32 %v1948_v28, 0.0 }
 0x292   : > { %v7184_v7 = vpack.c.bf16 %v2010_v30, %v2009_v29 }
 0x293   : > { %v2023_v35 = vpack.c.bf16 %v2008_v33, %v2007_v32 }
 0x295   : > { %5485 = vmatprep.mubr.msk.bf16.mxu0 %vm2070_vm0, %v2023_v35 }
 0x296   : > { %5486 = vmatmul.mubr.msk.bf16.vlgmr.msra.gmra.mrb[64].mxu0 %vm2070_vm0, %v7184_v7 }
 0x297   : > { %5526 = vmatpush3.bf16.msra.mxu0 %v5837_v19  ;;  %v2392_v19 = vld [vmem:[%s7285_s18] sm:$0xff] }
 0x298   : > { %5527 = vmatprep.subr.bf16.mxu0 %v5838_v20 }
 0x29b   : > { %v5467_v56 = vpop.f32.mrb[52].mxu1  ;;  %5528 = vmatpush3.bf16.msra.mxu0 %v5838_v20 }
 0x29c   : > { %v1969_v36 = vadd.f32 %v5467_v56, %v7178_v40  ;;  %v1960_v37 = vpop.f32.mrb[53].mxu1 }
 0x29d   : > { %v1961_v38 = vadd.f32 %v7178_v40, %v1960_v37  ;;  %v5468_v60 = vpop.f32.mrb[54].mxu1 }
 0x29e   : > { %v1972_v39 = vadd.f32 %v5468_v60, %v7178_v40  ;;  %v1963_v41 = vpop.f32.mrb[55].mxu1  ;;  %v2013_v42 = vmax.f32 %v1969_v36, 0.0 }
 0x29f   : > { %v1964_v8 = vadd.f32 %v7178_v40, %v1963_v41  ;;  %v2011_v45 = vmax.f32 %v1961_v38, 0.0 }
 0x2a0   : > { %v2014_v44 = vmax.f32 %v1972_v39, 0.0 }
 0x2a1   : > { %v2012_v11 = vmax.f32 %v1964_v8, 0.0 }
 0x2a2   : > { %v2026_v46 = vpack.c.bf16 %v2014_v44, %v2013_v42 }
 0x2a3   : > { %v2025_v47 = vpack.c.bf16 %v2012_v11, %v2011_v45 }
 0x2a5   : > { %5489 = vmatprep.mubr.msk.bf16.mxu0 %vm2070_vm0, %v2025_v47 }
 0x2a6   : > { %5490 = vmatmul.mubr.msk.bf16.gmra.mrb[68].mxu0 %vm2070_vm0, %v2026_v46 }
 0x2ab   : > { %v5471_v48 = vpop.f32.mrb[56].mxu1 }
 0x2ac   : > { %v1985_v13 = vadd.f32 %v5471_v48, %v7178_v40  ;;  %v1976_v50 = vpop.f32.mrb[57].mxu1 }
 0x2ad   : > { %v1977_v51 = vadd.f32 %v7178_v40, %v1976_v50  ;;  %v5472_v53 = vpop.f32.mrb[58].mxu1 }
 0x2ae   : > { %v1988_v16 = vadd.f32 %v5472_v53, %v7178_v40  ;;  %v1979_v54 = vpop.f32.mrb[59].mxu1  ;;  %v2017_v59 = vmax.f32 %v1985_v13, 0.0 }
 0x2af   : > { %v1980_v55 = vadd.f32 %v7178_v40, %v1979_v54  ;;  %v2015_v24 = vmax.f32 %v1977_v51, 0.0 }
 0x2b0   : > { %v2018_v61 = vmax.f32 %v1988_v16, 0.0 }
 0x2b1   : > { %v2016_v62 = vmax.f32 %v1980_v55, 0.0 }
 0x2b2   : > { %v2028_v0 = vpack.c.bf16 %v2018_v61, %v2017_v59 }
 0x2b3   : > { %v2027_v27 = vpack.c.bf16 %v2016_v62, %v2015_v24 }
 0x2b5   : > { %5493 = vmatprep.mubr.msk.bf16.mxu1 %vm2070_vm0, %v2027_v27 }
 0x2b6   : > { %5494 = vmatmul.mubr.msk.bf16.vlgmr.msra.gmra.mrb[64].mxu1 %vm2070_vm0, %v2028_v0 }
 0x2b7   : > { %5502 = vmatpush3.bf16.msra.mxu1 %v5833_v10 }
 0x2b8   : > { %5503 = vmatprep.subr.bf16.mxu1 %v5834_v31 }
 0x2bb   : > { %v5475_v1 = vpop.f32.mrb[60].mxu1  ;;  %5504 = vmatpush3.bf16.msra.mxu1 %v5834_v31  ;;  %v7280_v31 = vld [vmem:[%s8286_s7] ss:$0 sm:$0xff] }
 0x2bc   : > { %v2001_v34 = vadd.f32 %v5475_v1, %v7178_v40  ;;  %v1992_v2 = vpop.f32.mrb[61].mxu1  ;;  %5505 = vmatprep.subr.bf16.mxu1 %v5835_v58 }
 0x2bd   : > { %v1993_v3 = vadd.f32 %v7178_v40, %v1992_v2  ;;  %v5476_v5 = vpop.f32.mrb[62].mxu1 }
 0x2be   : > { %v2004_v9 = vadd.f32 %v5476_v5, %v7178_v40  ;;  %v1995_v12 = vpop.f32.mrb[63].mxu1  ;;  %v2021_v15 = vmax.f32 %v2001_v34, 0.0 }
 0x2bf   : > { %v1996_v14 = vadd.f32 %v7178_v40, %v1995_v12  ;;  %5506 = vmatpush3.bf16.msra.mxu1 %v5835_v58  ;;  %v2019_v49 = vmax.f32 %v1993_v3, 0.0 }
 0x2c0   : > { %v2022_v17 = vmax.f32 %v2004_v9, 0.0  ;;  %5507 = vmatprep.subr.bf16.mxu1 %v5836_v63 }
 0x2c1   : > { %v2020_v18 = vmax.f32 %v1996_v14, 0.0 }
 0x2c2   : > { %v2030_v43 = vpack.c.bf16 %v2022_v17, %v2021_v15  ;;  %v2394_v15 = vld [vmem:[%s7285_s18 + $0x10] sm:$0xff] }
 0x2c3   : > { %v2029_v52 = vpack.c.bf16 %v2020_v18, %v2019_v49  ;;  %5508 = vmatpush3.bf16.msra.mxu1 %v5836_v63 }
 0x2c5   : > { %5497 = vmatprep.mubr.msk.bf16.mxu1 %vm2070_vm0, %v2029_v52 }
 0x2c6   : > { %5498 = vmatmul.mubr.msk.bf16.gmra.mrb[68].mxu1 %vm2070_vm0, %v2030_v43 }
 0x2c7   : > { %5509 = vmatprep.mubr.msk.bf16.mxu1 %vm2070_vm0, %v2023_v35  ;;  %v7266_v35 = vld [vmem:[%s8288_s9] ss:$0 sm:$0xff] }
 0x2ce   : > { %5510 = vmatmul.mubr.msk.bf16.vlgmr.msra.gmra.mrb[72].mxu1 %vm2070_vm0, %v7184_v7 }
 0x2cf   : > { %5513 = vmatprep.mubr.msk.bf16.mxu1 %vm2070_vm0, %v2025_v47 }
 0x2d6   : > { %5514 = vmatmul.mubr.msk.bf16.gmra.mrb[76].mxu1 %vm2070_vm0, %v2026_v46 }
 0x2d7   : > { %5517 = vmatprep.mubr.msk.bf16.mxu1 %vm2070_vm0, %v2027_v27 }
 0x2de   : > { %5518 = vmatmul.mubr.msk.bf16.gmra.mrb[80].mxu1 %vm2070_vm0, %v2028_v0 }
 0x2df   : > { %5521 = vmatprep.mubr.msk.bf16.mxu1 %vm2070_vm0, %v2029_v52 }
 0x2e6   : > { %5522 = vmatmul.mubr.msk.bf16.gmra.mrb[84].mxu1 %vm2070_vm0, %v2030_v43 }
 0x369   : > { %v7231_v4 = vpop.f32.mrb[64].mxu0 }
 0x36a   : > { %v7233_v10 = vpop.f32.mrb[65].mxu0  ;;  %v7289_v5 = vadd.f32 %v7231_v4, %v7280_v31 }
 0x36b   : > { %v7235_v40 = vpop.f32.mrb[66].mxu0  ;;  %v7293_v9 = vadd.f32 %v7280_v31, %v7233_v10 }
 0x36c   : > { %v7237_v6 = vpop.f32.mrb[67].mxu0  ;;  %v7299_v49 = vadd.f32 %v7235_v40, %v7280_v31  ;;  %v2395_v40 = vld [vmem:[%s7285_s18 + $0x18] sm:$0xff] }
 0x36d   : > { %v7305_v4 = vadd.f32 %v7280_v31, %v7237_v6 }
 0x379   : > { %v7239_v21 = vpop.f32.mrb[68].mxu0 }
 0x37a   : > { %v7241_v22 = vpop.f32.mrb[69].mxu0 }
 0x37b   : > { %v7243_v23 = vpop.f32.mrb[70].mxu0 }
 0x37c   : > { %v7245_v57 = vpop.f32.mrb[71].mxu0 }
 0x389   : > { %v7247_v25 = vpop.f32.mrb[64].mxu1 }
 0x38a   : > { %v7249_v26 = vpop.f32.mrb[65].mxu1 }
 0x38b   : > { %v7251_v28 = vpop.f32.mrb[66].mxu1 }
 0x38c   : > { %v7253_v29 = vpop.f32.mrb[67].mxu1 }
 0x399   : > { %v7255_v30 = vpop.f32.mrb[68].mxu1 }
 0x39a   : > { %v7257_v32 = vpop.f32.mrb[69].mxu1 }
 0x39b   : > { %v7259_v33 = vpop.f32.mrb[70].mxu1 }
 0x39c   : > { %v7261_v7 = vpop.f32.mrb[71].mxu1 }
 0x3a1   : > { %v5511_v56 = vpop.f32.mrb[72].mxu1 }
 0x3a2   : > { %v2274_v36 = vadd.f32 %v5511_v56, %v7266_v35  ;;  %v2265_v37 = vpop.f32.mrb[73].mxu1 }
 0x3a3   : > { %v2266_v38 = vadd.f32 %v7266_v35, %v2265_v37  ;;  %v5512_v60 = vpop.f32.mrb[74].mxu1 }
 0x3a4   : > { %v2330_v39 = vmul.f32 0.5, %v2274_v36  ;;  %v2277_v41 = vadd.f32 %v5512_v60, %v7266_v35  ;;  %v2268_v8 = vpop.f32.mrb[75].mxu1 }
 0x3a5   : > { %v2328_v42 = vmul.f32 0.5, %v2266_v38  ;;  %v2269_v44 = vadd.f32 %v7266_v35, %v2268_v8 }
 0x3a6   : > { %v2348_v45 = vmul.f32 1.442695, %v2330_v39  ;;  %v2331_v11 = vmul.f32 0.5, %v2277_v41 }
 0x3a7   : > { %v2344_v46 = vmul.f32 1.442695, %v2328_v42  ;;  %v2329_v47 = vmul.f32 0.5, %v2269_v44  ;;  %v2393_v42 = vld [vmem:[%s7285_s18 + $0x8] sm:$0xff] }
 0x3a8   : > { %5923 = vpow2.f32 %v2348_v45  ;;  %v2350_v48 = vmul.f32 1.442695, %v2331_v11 }
 0x3a9   : > { %5925 = vpow2.f32 %v2344_v46  ;;  %v2346_v13 = vmul.f32 1.442695, %v2329_v47  ;;  %v5515_v50 = vpop.f32.mrb[76].mxu1  ;;  %v7315_v46 = vadd.f32 %v7239_v21, %v7280_v31 }
 0x3aa   : > { %5927 = vpow2.f32 %v2350_v48  ;;  %v2290_v51 = vadd.f32 %v5515_v50, %v7266_v35  ;;  %v2281_v53 = vpop.f32.mrb[77].mxu1  ;;  %v7319_v50 = vadd.f32 %v7280_v31, %v7241_v22 }
 0x3ab   : > { %5929 = vpow2.f32 %v2346_v13  ;;  %v2282_v16 = vadd.f32 %v7266_v35, %v2281_v53  ;;  %v5516_v54 = vpop.f32.mrb[78].mxu1 }
 0x3ac   : > { %v2334_v55 = vmul.f32 0.5, %v2290_v51  ;;  %v2293_v59 = vadd.f32 %v5516_v54, %v7266_v35  ;;  %v2284_v61 = vpop.f32.mrb[79].mxu1 }
 0x3ad   : > { %v2332_v24 = vmul.f32 0.5, %v2282_v16  ;;  %v2285_v62 = vadd.f32 %v7266_v35, %v2284_v61 }
 0x3ae   : > { %v2356_v0 = vmul.f32 1.442695, %v2334_v55  ;;  %v2335_v27 = vmul.f32 0.5, %v2293_v59 }
 0x3af   : > { %v2352_v58 = vmul.f32 1.442695, %v2332_v24  ;;  %v2333_v1 = vmul.f32 0.5, %v2285_v62 }
 0x3b0   : > { %5931 = vpow2.f32 %v2356_v0  ;;  %v2358_v34 = vmul.f32 1.442695, %v2335_v27  ;;  %v2398_v0 = vld [vmem:[%s7285_s18 + $0x30] sm:$0xff] }
 0x3b1   : > { %5933 = vpow2.f32 %v2352_v58  ;;  %v2354_v2 = vmul.f32 1.442695, %v2333_v1  ;;  %v5519_v63 = vpop.f32.mrb[80].mxu1  ;;  %v2396_v58 = vld [vmem:[%s7285_s18 + $0x20] sm:$0xff] }
 0x3b2   : > { %v5924_v3 = vpop.eup %5923  ;;  %5935 = vpow2.f32 %v2358_v34  ;;  %v2306_v12 = vadd.f32 %v5519_v63, %v7266_v35  ;;  %v2297_v14 = vpop.f32.mrb[81].mxu1 }
 0x3b3   : > { %v5926_v17 = vpop.eup %5925  ;;  %5937 = vpow2.f32 %v2354_v2  ;;  %v2298_v18 = vadd.f32 %v7266_v35, %v2297_v14  ;;  %v5520_v43 = vpop.f32.mrb[82].mxu1  ;;  %v2378_v52 = vadd.f32 1e-06, %v5924_v3 }
 0x3b4   : > { %v5928_v20 = vpop.eup %5927  ;;  %v2338_v10 = vmul.f32 0.5, %v2306_v12  ;;  %v2309_v56 = vadd.f32 %v5520_v43, %v7266_v35  ;;  %v2300_v36 = vpop.f32.mrb[83].mxu1  ;;  %v2376_v37 = vadd.f32 1e-06, %v5926_v17  ;;  %v2399_v43 = vld [vmem:[%s7285_s18 + $0x38] sm:$0xff] }
 0x3b5   : > { %v5930_v38 = vpop.eup %5929  ;;  %v2336_v60 = vmul.f32 0.5, %v2298_v18  ;;  %v2301_v39 = vadd.f32 %v7266_v35, %v2300_v36  ;;  %4430 = vrot.lane.b32.xlu1 %v2378_v52, %s6570_s16  ;;  %v2410_v41 = vmul.f32 %v2394_v15, %v2378_v52  ;;  %v2379_v8 = vadd.f32 1e-06, %v5928_v20 }
 0x3b6   : > { %v2364_v44 = vmul.f32 1.442695, %v2338_v10  ;;  %v2339_v45 = vmul.f32 0.5, %v2309_v56  ;;  %4426 = vrot.lane.b32.xlu0 %v2376_v37, %s6570_s16  ;;  %v2408_v6 = vmul.f32 %v2392_v19, %v2376_v37  ;;  %v2377_v11 = vadd.f32 1e-06, %v5930_v38  ;;  %v2397_v19 = vld [vmem:[%s7285_s18 + $0x28] sm:$0xff] }
 0x3b7   : > { %v2360_v47 = vmul.f32 1.442695, %v2336_v60  ;;  %v2337_v48 = vmul.f32 0.5, %v2301_v39  ;;  %v2411_v13 = vmul.f32 %v2395_v40, %v2379_v8  ;;  %v2426_v55 = vadd.f32 %v2410_v41, %v7289_v5 }
 0x3b8   : > { %5939 = vpow2.f32 %v2364_v44  ;;  %v2366_v51 = vmul.f32 1.442695, %v2339_v45  ;;  %v2409_v53 = vmul.f32 %v2393_v42, %v2377_v11  ;;  %v2424_v61 = vadd.f32 %v2408_v6, %v7293_v9 }
 0x3b9   : > { %5941 = vpow2.f32 %v2360_v47  ;;  %v2362_v16 = vmul.f32 1.442695, %v2337_v48  ;;  %4432 = vrot.lane.b32.xlu1 %v2379_v8, %s6570_s16  ;;  %v5523_v54 = vpop.f32.mrb[84].mxu1  ;;  %v2427_v21 = vadd.f32 %v2411_v13, %v7299_v49  ;;  %v7343_v39 = vadd.f32 %v7243_v23, %v7280_v31  ;;  %v2402_v13 = vld [vmem:[%s7285_s18 + $0x50] sm:$0xff] }
 0x3ba   : > { %v5932_v59 = vpop.eup %5931  ;;  %5943 = vpow2.f32 %v2366_v51  ;;  %v2322_v22 = vadd.f32 %v5523_v54, %v7266_v35  ;;  %v2313_v24 = vpop.f32.mrb[85].mxu1  ;;  %4428 = vrot.lane.b32.xlu0 %v2377_v11, %s6570_s16  ;;  %v2425_v62 = vadd.f32 %v2409_v53, %v7305_v4  ;;  %v7348_v42 = vadd.f32 %v7280_v31, %v7245_v57 }
 0x3bb   : > { %v5934_v27 = vpop.eup %5933  ;;  %5945 = vpow2.f32 %v2362_v16  ;;  %v2314_v1 = vadd.f32 %v7266_v35, %v2313_v24  ;;  %v5524_v34 = vpop.f32.mrb[86].mxu1  ;;  %v2441_v2 = vpack.c.bf16 %v2427_v21, %v2426_v55  ;;  %v2382_v63 = vadd.f32 1e-06, %v5932_v59  ;;  %v2400_v16 = vld [vmem:[%s7285_s18 + $0x40] sm:$0xff]  ;;  %v2403_v59 = vld [vmem:[%s7285_s18 + $0x58] sm:$0xff] }
 0x3bc   : > { %v5936_v3 = vpop.eup %5935  ;;  %v7331_v12 = vadd.f32 1e-06, %v5934_v27  ;;  %v2342_v14 = vmul.f32 0.5, %v2322_v22  ;;  %v2325_v15 = vadd.f32 %v5524_v34, %v7266_v35  ;;  %v2316_v17 = vpop.f32.mrb[87].mxu1  ;;  %v2440_v18 = vpack.c.bf16 %v2425_v62, %v2424_v61  ;;  %v2401_v27 = vld [vmem:[%s7285_s18 + $0x48] sm:$0xff] }
 0x3bd   : > { %v5938_v52 = vpop.eup %5937  ;;  %v2340_v20 = vmul.f32 0.5, %v2314_v1  ;;  %v2317_v10 = vadd.f32 %v7266_v35, %v2316_v17  ;;  %4496 = vrot.lane.b32.xlu1 %v2427_v21, %s6571_s15  ;;  %v2383_v56 = vadd.f32 1e-06, %v5936_v3  ;;  %v2414_v36 = vmul.f32 %v2398_v0, %v2382_v63 }
 0x3be   : > { %v2412_v37 = vmul.f32 %v2396_v58, %v7331_v12  ;;  %v2381_v40 = vadd.f32 1e-06, %v5938_v52  ;;  %v2372_v38 = vmul.f32 1.442695, %v2342_v14  ;;  %v2343_v60 = vmul.f32 0.5, %v2325_v15  ;;  %4494 = vrot.lane.b32.xlu0 %v2426_v55, %s6571_s15  ;;  %5529 = vmatprep.mubr.msk.bf16.mxu0 %vm2471_vm1, %v2440_v18  ;;  %v2404_v52 = vld [vmem:[%s7285_s18 + $0x60] sm:$0xff] }
 0x3bf   : > { %v2368_v41 = vmul.f32 1.442695, %v2340_v20  ;;  %v2341_v35 = vmul.f32 0.5, %v2317_v10  ;;  %5530 = vmatmul.mubr.msk.bf16.vlgmr.msra.gmra.mrb[72].mxu0 %vm2471_vm1, %v2441_v2  ;;  %v2415_v8 = vmul.f32 %v2399_v43, %v2383_v56  ;;  %v2430_v11 = vadd.f32 %v2414_v36, %v7315_v46 }
 0x3c0   : > { %v2413_v44 = vmul.f32 %v2397_v19, %v2381_v40  ;;  %5947 = vpow2.f32 %v2372_v38  ;;  %v2374_v45 = vmul.f32 1.442695, %v2343_v60  ;;  %v7354_v48 = vadd.f32 %v2412_v37, %v7319_v50  ;;  %v2405_v60 = vld [vmem:[%s7285_s18 + $0x68] sm:$0xff] }
 0x3c1   : > { %5949 = vpow2.f32 %v2368_v41  ;;  %v2370_v6 = vmul.f32 1.442695, %v2341_v35  ;;  %4492 = vrot.lane.b32.xlu1 %v2425_v62, %s6571_s15  ;;  %v2431_v23 = vadd.f32 %v2415_v8, %v7343_v39  ;;  %v7377_v1 = vadd.f32 %v7247_v25, %v7280_v31 }
 0x3c2   : > { %v5940_v47 = vpop.eup %5939  ;;  %v7357_v57 = vadd.f32 %v2413_v44, %v7348_v42  ;;  %5951 = vpow2.f32 %v2374_v45  ;;  %4490 = vrot.lane.b32.xlu0 %v2424_v61, %s6571_s15  ;;  %v7381_v34 = vadd.f32 %v7251_v28, %v7280_v31  ;;  %v7386_v3 = vadd.f32 %v7280_v31, %v7249_v26  ;;  %v2406_v26 = vld [vmem:[%s7285_s18 + $0x70] sm:$0xff] }
 0x3c3   : > { %v5942_v51 = vpop.eup %5941  ;;  %v7361_v53 = vadd.f32 1e-06, %v5940_v47  ;;  %5953 = vpow2.f32 %v2370_v6  ;;  %v2443_v54 = vpack.c.bf16 %v2431_v23, %v2430_v11  ;;  %v7412_v8 = vadd.f32 %v7259_v33, %v7280_v31 }
 0x3c4   : > { %v5944_v21 = vpop.eup %5943  ;;  %v7364_v55 = vadd.f32 1e-06, %v5942_v51  ;;  %v2442_v22 = vpack.c.bf16 %v7357_v57, %v7354_v48  ;;  %v7417_v45 = vadd.f32 %v7280_v31, %v7257_v32  ;;  %v7421_v6 = vadd.f32 %v7280_v31, %v7261_v7  ;;  %v5839_v7 = vld [vmem:[%s8291_s12] sm:$0xff]  }
 0x3c5   : > { %v5946_v24 = vpop.eup %5945  ;;  %v2418_v62 = vmul.f32 %v2402_v13, %v7361_v53  ;;  %v2387_v0 = vadd.f32 1e-06, %v5944_v21  ;;  %4440 = vrot.lane.b32.xlu1 %v2383_v56, %s6570_s16  ;;  %v2407_v56 = vld [vmem:[%s7285_s18 + $0x78] sm:$0xff]  ;;  %5545 = vmatprep.subr.bf16.mxu1 %v5839_v7  ;;  %s4639_s18 = sshll.u32 %s7471_s13, 4  ;;  %s8050_s18 = int_to_ptr.vmem [resolvable:$true] %s4639_s18 }
 0x3c6   : > { %v2416_v61 = vmul.f32 %v2400_v16, %v7364_v55  ;;  %v2385_v58 = vadd.f32 1e-06, %v5946_v24  ;;  %4438 = vrot.lane.b32.xlu0 %v2382_v63, %s6570_s16  ;;  %5533 = vmatprep.mubr.msk.bf16.mxu0 %vm2471_vm1, %v2442_v22  ;;  %v7390_v63 = vadd.f32 %v7280_v31, %v7253_v29  ;;  %s6462_s0 = scalar_lea.vmem %s8050_s18, 2048 }
 0x3c7   : > { %v2419_v2 = vmul.f32 %v2403_v59, %v2387_v0  ;;  %5534 = vmatmul.mubr.msk.bf16.gmra.mrb[76].mxu0 %vm2471_vm1, %v2443_v54  ;;  %v2434_v25 = vadd.f32 %v2418_v62, %v7377_v1  ;;  %5546 = vmatpush3.bf16.msra.mxu1 %v5839_v7  ;;  %v5875_v7 = vld [vmem:[#allocation5 + $0x11c] ss:$28 sps:$4 sm:$0xff]   ;;  %p6463_p6 = scmp.ne.s32.totalorder %s8050_s18, %s6462_s0 }
 0x3c8   : > { %v2417_v14 = vmul.f32 %v2401_v27, %v2385_v58  ;;  %v2432_v17 = vadd.f32 %v2416_v61, %v7386_v3 }
 0x3c9   : > { %v2435_v15 = vadd.f32 %v2419_v2, %v7381_v34  ;;  %4436 = vrot.lane.b32.xlu1 %v2381_v40, %s6570_s16  ;;  %p6464_p8 = pnand %p6463_p6, %p6763_p12 }
 0x3ca   : > { %v5948_v28 = vpop.eup %5947  ;;  %v2433_v18 = vadd.f32 %v2417_v14, %v7390_v63  ;;  %4434 = vrot.lane.b32.xlu0 %v7331_v12, %s6570_s16  ;;  %v7408_v12 = vadd.f32 %v7255_v30, %v7280_v31  ;;  %v5840_v31 = vld [vmem:[%s8291_s12 + $0x8] sm:$0xff]  }
 0x3cb   : > { %v5950_v29 = vpop.eup %5949  ;;  %v2390_v43 = vadd.f32 1e-06, %v5948_v28  ;;  %v2445_v19 = vpack.c.bf16 %v2435_v15, %v2434_v25  ;;  %5547 = vmatprep.subr.bf16.mxu1 %v5840_v31  ;;  %v5845_v28 = vld [vmem:[#allocation5 + $0x4] ss:$28 sps:$4 sm:$0xff]   ;;  %p6465_p10 = pneg %p6464_p8 }
 0x3cc   : > { %v5952_v20 = vpop.eup %5951  ;;  %v2388_v10 = vadd.f32 1e-06, %v5950_v29  ;;  %v2444_v36 = vpack.c.bf16 %v2433_v18, %v2432_v17  ;;  %5548 = vmatpush3.bf16.msra.mxu1 %v5840_v31  ;;  %3190 = vmatprep.subr.bf16.mxu0 %v5845_v28 }
 0x3cd   : > { %v5954_v37 = vpop.eup %5953  ;;  %v2422_v40 = vmul.f32 %v2406_v26, %v2390_v43  ;;  %v2391_v38 = vadd.f32 1e-06, %v5952_v20  ;;  %4504 = vrot.lane.b32.xlu1 %v2431_v23, %s6571_s15  ;;  %v5851_v26 = vld [vmem:[#allocation5 + $0x3c] ss:$28 sps:$4 sm:$0xff]   ;;  %v5855_v20 = vld [vmem:[#allocation5 + $0x70] ss:$28 sps:$4 sm:$0xff]  }
 0x3ce   : > { %v2420_v41 = vmul.f32 %v2404_v52, %v2388_v10  ;;  %v2389_v35 = vadd.f32 1e-06, %v5954_v37  ;;  %4502 = vrot.lane.b32.xlu0 %v2430_v11, %s6571_s15  ;;  %5537 = vmatprep.mubr.msk.bf16.mxu0 %vm2471_vm1, %v2444_v36 }
 0x3cf   : > { %v2423_v44 = vmul.f32 %v2407_v56, %v2391_v38  ;;  %5538 = vmatmul.mubr.msk.bf16.gmra.mrb[80].mxu0 %vm2471_vm1, %v2445_v19  ;;  %v2438_v11 = vadd.f32 %v2422_v40, %v7408_v12 }
 0x3d0   : > { %v2421_v23 = vmul.f32 %v2405_v60, %v2389_v35  ;;  %v2436_v33 = vadd.f32 %v2420_v41, %v7417_v45  ;;  %v5861_v60 = vld [vmem:[#allocation5 + $0xa8] ss:$28 sps:$4 sm:$0xff]  }
 0x3d1   : > { %v2439_v30 = vadd.f32 %v2423_v44, %v7412_v8  ;;  %4500 = vrot.lane.b32.xlu1 %v7357_v57, %s6571_s15  ;;  %v5842_v57 = vld [vmem:[%s8291_s12 + $0x18] sm:$0xff]   ;;  %v5869_v44 = vld [vmem:[#allocation5 + $0xe4] ss:$28 sps:$4 sm:$0xff]  }
 0x3d2   : > { %v2437_v47 = vadd.f32 %v2421_v23, %v7421_v6  ;;  %4498 = vrot.lane.b32.xlu0 %v7354_v48, %s6571_s15  ;;  %v5841_v48 = vld [vmem:[%s8291_s12 + $0x10] sm:$0xff]  }
 0x3d3   : > { %v2447_v32 = vpack.c.bf16 %v2439_v30, %v2438_v11  ;;  %5549 = vmatprep.subr.bf16.mxu1 %v5841_v48 }
 0x3d4   : > { %v2446_v13 = vpack.c.bf16 %v2437_v47, %v2436_v33  ;;  %5550 = vmatpush3.bf16.msra.mxu1 %v5841_v48 }
 0x3d5   : > { %4448 = vrot.lane.b32.xlu1 %v2387_v0, %s6570_s16  ;;  %5551 = vmatprep.subr.bf16.mxu1 %v5842_v57 }
 0x3d6   : > { %4446 = vrot.lane.b32.xlu0 %v7361_v53, %s6570_s16  ;;  %5541 = vmatprep.mubr.msk.bf16.mxu0 %vm2471_vm1, %v2446_v13 }
 0x3d7   : > { %5542 = vmatmul.mubr.msk.bf16.gmra.mrb[84].mxu0 %vm2471_vm1, %v2447_v32 }
 0x3d8   : > { %5552 = vmatpush3.bf16.msra.mxu1 %v5842_v57 }
 0x3d9   : > { %4444 = vrot.lane.b32.xlu1 %v2385_v58, %s6570_s16 }
 0x3da   : > { %4442 = vrot.lane.b32.xlu0 %v7364_v55, %s6570_s16 }
 0x3dd   : > { %4512 = vrot.lane.b32.xlu1 %v2435_v15, %s6571_s15  ;;  %v5843_v15 = vld [vmem:[#allocation5] ss:$28 sps:$4 sm:$0xff]  }
 0x3de   : > { %4510 = vrot.lane.b32.xlu0 %v2434_v25, %s6571_s15  ;;  %3191 = vmatpush1.bf16.msra.mxu0 %v5843_v15 }
 0x3df   : > { %3192 = vmatprep.subr.bf16.mxu0 %v5851_v26 }
 0x3e1   : > { %4508 = vrot.lane.b32.xlu1 %v2433_v18, %s6571_s15  ;;  %v5848_v18 = vld [vmem:[#allocation5 + $0xc] ss:$28 sps:$4 sm:$0xff]  }
 0x3e2   : > { %4506 = vrot.lane.b32.xlu0 %v2432_v17, %s6571_s15  ;;  %3303 = vmatprep.subr.bf16.mxu1 %v5848_v18 }
 0x3e5   : > { %4456 = vrot.lane.b32.xlu1 %v2391_v38, %s6570_s16 }
 0x3e6   : > { %4454 = vrot.lane.b32.xlu0 %v2390_v43, %s6570_s16  ;;  %v5857_v43 = vld [vmem:[#allocation5 + $0x74] ss:$28 sps:$4 sm:$0xff]  }
 0x3e9   : > { %4452 = vrot.lane.b32.xlu1 %v2389_v35, %s6570_s16 }
 0x3ea   : > { %4450 = vrot.lane.b32.xlu0 %v2388_v10, %s6570_s16  ;;  %v5863_v10 = vld [vmem:[#allocation5 + $0xac] ss:$28 sps:$4 sm:$0xff]  }
 0x3ed   : > { %4516 = vrot.lane.b32.xlu1 %v2437_v47, %s6571_s15  ;;  %v5867_v47 = vld [vmem:[#allocation5 + $0xe0] ss:$28 sps:$4 sm:$0xff]  }
 0x3ee   : > { %4514 = vrot.lane.b32.xlu0 %v2436_v33, %s6571_s15 }
 0x3f1   : > { %4520 = vrot.lane.b32.xlu1 %v2439_v30, %s6571_s15 }
 0x3f2   : > { %4518 = vrot.lane.b32.xlu0 %v2438_v11, %s6571_s15 }
 0x427   : > { %v4431_v51 = vpop.permute.xlu1 %4430 }
 0x428   : > { %v4427_v53 = vpop.permute.xlu0 %4426  ;;  %v4540_v59 = vsel %vm2471_vm1, %v7289_v5, %v4431_v51 }
 0x429   : > { %v4538_v61 = vsel %vm2471_vm1, %v7293_v9, %v4427_v53  ;;  %v5849_v9 = vld [vmem:[#allocation5 + $0x38] ss:$28 sps:$4 sm:$0xff]  }
 0x42a   : > { %3193 = vmatpush1.bf16.msra.mxu0 %v5849_v9 }
 0x42b   : > { %v4433_v16 = vpop.permute.xlu1 %4432  ;;  %3194 = vmatprep.subr.bf16.mxu0 %v5857_v43 }
 0x42c   : > { %v4429_v54 = vpop.permute.xlu0 %4428  ;;  %v4541_v21 = vsel %vm2471_vm1, %v7299_v49, %v4433_v16 }
 0x42d   : > { %v4539_v27 = vsel %vm2471_vm1, %v7305_v4, %v4429_v54 }
 0x42e   : > { %3195 = vmatpush1.bf16.msra.mxu0 %v5855_v20 }
 0x42f   : > { %v4497_v55 = vpop.permute.xlu1 %4496  ;;  %3196 = vmatprep.subr.bf16.mxu0 %v5863_v10 }
 0x430   : > { %v4557_v22 = vsel %vm2070_vm0, %v4541_v21, %v4497_v55  ;;  %v4495_v24 = vpop.permute.xlu0 %4494 }
 0x431   : > { %v4574_v62 = vsel %vm4570_vm2, %v4557_v22, 0.0  ;;  %v4556_v0 = vsel %vm2070_vm0, %v4540_v59, %v4495_v24 }
 0x432   : > { %4590 = vst [vmem:[%s7471_s13 + $0x18] sm:$0xff] %v4574_v62  ;;  %v4573_v49 = vsel %vm4570_vm2, %v4556_v0, 0.0  ;;  %3197 = vmatpush1.bf16.msra.mxu0 %v5861_v60 }
 0x433   : > { %4589 = vst [vmem:[%s7471_s13 + $0x10] sm:$0xff] %v4573_v49  ;;  %v4493_v5 = vpop.permute.xlu1 %4492  ;;  %3198 = vmatprep.subr.bf16.mxu0 %v5869_v44 }
 0x434   : > { %v4555_v58 = vsel %vm2070_vm0, %v4539_v27, %v4493_v5  ;;  %v4491_v2 = vpop.permute.xlu0 %4490 }
 0x435   : > { %v4572_v14 = vsel %vm4570_vm2, %v4555_v58, 0.0  ;;  %v4554_v25 = vsel %vm2070_vm0, %v4538_v61, %v4491_v2 }
 0x436   : > { %4588 = vst [vmem:[%s7471_s13 + $0x8] sm:$0xff] %v4572_v14  ;;  %v4571_v17 = vsel %vm4570_vm2, %v4554_v25, 0.0  ;;  %3199 = vmatpush1.bf16.msra.mxu0 %v5867_v47 }
 0x437   : > { %4587 = vst [vmem:[%s7471_s13] sm:$0xff] %v4571_v17  ;;  %v4441_v4 = vpop.permute.xlu1 %4440  ;;  %3200 = vmatprep.subr.bf16.mxu0 %v5875_v7 }
 0x438   : > { %v4439_v29 = vpop.permute.xlu0 %4438  ;;  %v4545_v56 = vsel %vm2471_vm1, %v7343_v39, %v4441_v4 }
 0x439   : > { %v4544_v37 = vsel %vm2471_vm1, %v7315_v46, %v4439_v29 }
 0x43b   : > { %v4437_v52 = vpop.permute.xlu1 %4436 }
 0x43c   : > { %v4435_v19 = vpop.permute.xlu0 %4434  ;;  %v4543_v23 = vsel %vm2471_vm1, %v7348_v42, %v4437_v52 }
 0x43d   : > { %v4542_v11 = vsel %vm2471_vm1, %v7319_v50, %v4435_v19  ;;  %v5873_v50 = vld [vmem:[#allocation5 + $0x118] ss:$28 sps:$4 sm:$0xff]  }
 0x43e   : > { %3201 = vmatpush1.bf16.msra.mxu0 %v5873_v50  ;;  %v5852_v50 = vld [vmem:[#allocation5 + $0x40] ss:$28 sps:$4 sm:$0xff]  }
 0x43f   : > { %v4505_v36 = vpop.permute.xlu1 %4504 }
 0x440   : > { %v4561_v40 = vsel %vm2070_vm0, %v4545_v56, %v4505_v36  ;;  %v4503_v38 = vpop.permute.xlu0 %4502 }
 0x441   : > { %v4578_v41 = vsel %vm4570_vm2, %v4561_v40, 0.0  ;;  %v4560_v35 = vsel %vm2070_vm0, %v4544_v37, %v4503_v38 }
 0x442   : > { %4594 = vst [vmem:[%s7471_s13 + $0x38] sm:$0xff] %v4578_v41  ;;  %v4577_v39 = vsel %vm4570_vm2, %v4560_v35, 0.0 }
 0x443   : > { %4593 = vst [vmem:[%s7471_s13 + $0x30] sm:$0xff] %v4577_v39  ;;  %v4501_v46 = vpop.permute.xlu1 %4500 }
 0x444   : > { %v4559_v30 = vsel %vm2070_vm0, %v4543_v23, %v4501_v46  ;;  %v4499_v33 = vpop.permute.xlu0 %4498 }
 0x445   : > { %v4576_v32 = vsel %vm4570_vm2, %v4559_v30, 0.0  ;;  %v4558_v13 = vsel %vm2070_vm0, %v4542_v11, %v4499_v33  ;;  %v5846_v30 = vld [vmem:[#allocation5 + $0x8] ss:$28 sps:$4 sm:$0xff]  }
 0x446   : > { %4592 = vst [vmem:[%s7471_s13 + $0x28] sm:$0xff] %v4576_v32  ;;  %v4575_v31 = vsel %vm4570_vm2, %v4558_v13, 0.0  ;;  %v5854_v32 = vld [vmem:[#allocation5 + $0x44] ss:$28 sps:$4 sm:$0xff]  }
 0x447   : > { %4591 = vst [vmem:[%s7471_s13 + $0x20] sm:$0xff] %v4575_v31  ;;  %v4449_v42 = vpop.permute.xlu1 %4448 }
 0x448   : > { %v4447_v48 = vpop.permute.xlu0 %4446  ;;  %v4549_v53 = vsel %vm2471_vm1, %v7381_v34, %v4449_v42 }
 0x449   : > { %v4548_v54 = vsel %vm2471_vm1, %v7377_v1, %v4447_v48 }
 0x44b   : > { %v4445_v57 = vpop.permute.xlu1 %4444 }
 0x44c   : > { %v4443_v51 = vpop.permute.xlu0 %4442  ;;  %v4547_v62 = vsel %vm2471_vm1, %v7390_v63, %v4445_v57 }
 0x44d   : > { %v4546_v0 = vsel %vm2471_vm1, %v7386_v3, %v4443_v51 }
 0x44f   : > { %v4513_v16 = vpop.permute.xlu1 %4512 }
 0x450   : > { %v4565_v21 = vsel %vm2070_vm0, %v4549_v53, %v4513_v16  ;;  %v4511_v55 = vpop.permute.xlu0 %4510  ;;  %v5860_v53 = vld [vmem:[#allocation5 + $0x7c] ss:$28 sps:$4 sm:$0xff]  }
 0x451   : > { %v4582_v59 = vsel %vm4570_vm2, %v4565_v21, 0.0  ;;  %v4564_v22 = vsel %vm2070_vm0, %v4548_v54, %v4511_v55 }
 0x452   : > { %4598 = vst [vmem:[%s7471_s13 + $0x58] sm:$0xff] %v4582_v59  ;;  %v4581_v24 = vsel %vm4570_vm2, %v4564_v22, 0.0  ;;  %v5858_v22 = vld [vmem:[#allocation5 + $0x78] ss:$28 sps:$4 sm:$0xff]  }
 0x453   : > { %4597 = vst [vmem:[%s7471_s13 + $0x50] sm:$0xff] %v4581_v24  ;;  %v4509_v34 = vpop.permute.xlu1 %4508 }
 0x454   : > { %v4563_v1 = vsel %vm2070_vm0, %v4547_v62, %v4509_v34  ;;  %v4507_v49 = vpop.permute.xlu0 %4506  ;;  %v5866_v34 = vld [vmem:[#allocation5 + $0xb4] ss:$28 sps:$4 sm:$0xff]  }
 0x455   : > { %v4580_v27 = vsel %vm4570_vm2, %v4563_v1, 0.0  ;;  %v4562_v5 = vsel %vm2070_vm0, %v4546_v0, %v4507_v49 }
 0x456   : > { %4596 = vst [vmem:[%s7471_s13 + $0x48] sm:$0xff] %v4580_v27  ;;  %v4579_v61 = vsel %vm4570_vm2, %v4562_v5, 0.0 }
 0x457   : > { %4595 = vst [vmem:[%s7471_s13 + $0x40] sm:$0xff] %v4579_v61  ;;  %v4457_v58 = vpop.permute.xlu1 %4456  ;;  %v5864_v61 = vld [vmem:[#allocation5 + $0xb0] ss:$28 sps:$4 sm:$0xff]  }
 0x458   : > { %v4455_v63 = vpop.permute.xlu0 %4454  ;;  %v4553_v29 = vsel %vm2471_vm1, %v7412_v8, %v4457_v58  ;;  %v7549_v8 = vld [vmem:[%s8290_s11] ss:$0 sm:$0xff] }
 0x459   : > { %v4552_v9 = vsel %vm2471_vm1, %v7408_v12, %v4455_v63 }
 0x45b   : > { %v4453_v2 = vpop.permute.xlu1 %4452 }
 0x45c   : > { %v4451_v14 = vpop.permute.xlu0 %4450  ;;  %v4551_v3 = vsel %vm2471_vm1, %v7421_v6, %v4453_v2  ;;  %v5872_v2 = vld [vmem:[#allocation5 + $0xec] ss:$28 sps:$4 sm:$0xff]  }
 0x45d   : > { %v4550_v15 = vsel %vm2471_vm1, %v7417_v45, %v4451_v14 }
 0x45f   : > { %v4517_v25 = vpop.permute.xlu1 %4516 }
 0x460   : > { %v4567_v28 = vsel %vm2070_vm0, %v4551_v3, %v4517_v25  ;;  %v4515_v17 = vpop.permute.xlu0 %4514 }
 0x461   : > { %v4584_v18 = vsel %vm4570_vm2, %v4567_v28, 0.0  ;;  %v4566_v4 = vsel %vm2070_vm0, %v4550_v15, %v4515_v17  ;;  %v5870_v17 = vld [vmem:[#allocation5 + $0xe8] ss:$28 sps:$4 sm:$0xff]  }
 0x462   : > { %4600 = vst [vmem:[%s7471_s13 + $0x68] sm:$0xff] %v4584_v18  ;;  %v4583_v26 = vsel %vm4570_vm2, %v4566_v4, 0.0 }
 0x463   : > { %4599 = vst [vmem:[%s7471_s13 + $0x60] sm:$0xff] %v4583_v26  ;;  %v4521_v6 = vpop.permute.xlu1 %4520  ;;  %v5878_v26 = vld [vmem:[#allocation5 + $0x124] ss:$28 sps:$4 sm:$0xff]  }
 0x464   : > { %v4569_v45 = vsel %vm2070_vm0, %v4553_v29, %v4521_v6  ;;  %v4519_v43 = vpop.permute.xlu0 %4518 }
 0x465   : > { %v4586_v52 = vsel %vm4570_vm2, %v4569_v45, 0.0  ;;  %v4568_v19 = vsel %vm2070_vm0, %v4552_v9, %v4519_v43 }
 0x466   : > { %4602 = vst [vmem:[%s7471_s13 + $0x78] sm:$0xff] %v4586_v52  ;;  %v4585_v20 = vsel %vm4570_vm2, %v4568_v19, 0.0  ;;  %v5876_v52 = vld [vmem:[#allocation5 + $0x120] ss:$28 sps:$4 sm:$0xff]  }
 0x467   : > { %4601 = vst [vmem:[%s7471_s13 + $0x70] sm:$0xff] %v4585_v20  ;;  %s4609_s13 = scalar_lea.sflag [#allocation9], %s6814_s29 }
 0x492   : > { %v5531_v10 = vpop.f32.mrb[72].mxu0 }
 0x493   : > { %v2539_v56 = vadd.f32 %v5531_v10, %v7549_v8  ;;  %v2530_v12 = vpop.f32.mrb[73].mxu0 }
 0x494   : > { %v2531_v36 = vadd.f32 %v7549_v8, %v2530_v12  ;;  %v5532_v37 = vpop.f32.mrb[74].mxu0 }
 0x495   : > { %v2542_v40 = vadd.f32 %v5532_v37, %v7549_v8  ;;  %v2533_v38 = vpop.f32.mrb[75].mxu0  ;;  %v2595_v41 = vmax.f32 %v2539_v56, 0.0  ;;  %v5881_v37 = vld [vmem:[#allocation5 + $0x154] ss:$28 sps:$4 sm:$0xff]  }
 0x496   : > { %v2534_v60 = vadd.f32 %v7549_v8, %v2533_v38  ;;  %v2593_v44 = vmax.f32 %v2531_v36, 0.0  ;;  %v5879_v38 = vld [vmem:[#allocation5 + $0x150] ss:$28 sps:$4 sm:$0xff]   ;;  %3202 = vmatprep.subr.bf16.mxu0 %v5881_v37 }
 0x497   : > { %v2596_v35 = vmax.f32 %v2542_v40, 0.0  ;;  %v5884_v40 = vld [vmem:[#allocation5 + $0x15c] ss:$28 sps:$4 sm:$0xff]   ;;  %3203 = vmatpush1.bf16.msra.mxu0 %v5879_v38  ;;  %v5903_v38 = vld [vmem:[#allocation5 + $0xf0] ss:$28 sps:$4 sm:$0xff]  }
 0x498   : > { %v2594_v39 = vmax.f32 %v2534_v60, 0.0  ;;  %v5882_v60 = vld [vmem:[#allocation5 + $0x158] ss:$28 sps:$4 sm:$0xff]  }
 0x499   : > { %v2610_v23 = vpack.c.bf16 %v2596_v35, %v2595_v41  ;;  %v5890_v41 = vld [vmem:[#allocation5 + $0x194] ss:$28 sps:$4 sm:$0xff]   ;;  %v5885_v35 = vld [vmem:[#allocation5 + $0x188] ss:$28 sps:$4 sm:$0xff]  }
 0x49a   : > { %v2609_v46 = vpack.c.bf16 %v2594_v39, %v2593_v44  ;;  %v5535_v11 = vpop.f32.mrb[76].mxu0  ;;  %v5888_v44 = vld [vmem:[#allocation5 + $0x190] ss:$28 sps:$4 sm:$0xff]   ;;  %v6572_v39 = vmov 0  }
 0x49b   : > { %v2555_v33 = vadd.f32 %v5535_v11, %v7549_v8  ;;  %v2546_v47 = vpop.f32.mrb[77].mxu0  ;;  %3222 = vmatprep.mubr.bf16.mxu0 %v6572_v39  ;;  %v7580_v11 = vld [vmem:[%s8339_s22] ss:$0 sm:$0xff]  ;;  %s8344_s22 = sld [smem:[#allocation27_spill]] }
 0x49c   : > { %v2547_v13 = vadd.f32 %v7549_v8, %v2546_v47  ;;  %v5536_v7 = vpop.f32.mrb[78].mxu0  ;;  %5553 = vmatprep.mubr.msk.bf16.mxu1 %vm2070_vm0, %v2609_v46  ;;  %v5906_v46 = vld [vmem:[#allocation5 + $0x18] ss:$28 sps:$4 sm:$0xff]  }
 0x49d   : > { %v2558_v31 = vadd.f32 %v5536_v7, %v7549_v8  ;;  %v2549_v42 = vpop.f32.mrb[79].mxu0  ;;  %5554 = vmatmul.mubr.msk.bf16.vlgmr.msra.gmra.mrb[88].mxu1 %vm2070_vm0, %v2610_v23  ;;  %v2599_v57 = vmax.f32 %v2555_v33, 0.0  ;;  %v5893_v23 = vld [vmem:[#allocation5 + $0x14] ss:$28 sps:$4 sm:$0xff]  }
 0x49e   : > { %v2550_v48 = vadd.f32 %v7549_v8, %v2549_v42  ;;  %3304 = vmatpush1.bf16.msra.mxu1 %v5846_v30  ;;  %v2597_v16 = vmax.f32 %v2547_v13, 0.0 }
 0x49f   : > { %v2600_v51 = vmax.f32 %v2558_v31, 0.0  ;;  %3305 = vmatprep.subr.bf16.mxu1 %v5854_v32 }
 0x4a0   : > { %v2598_v54 = vmax.f32 %v2550_v48, 0.0 }
 0x4a1   : > { %v2612_v21 = vpack.c.bf16 %v2600_v51, %v2599_v57  ;;  %s8048_s19 = scalar_lea.hbm %s8344_s22, %s5126_s20 }
 0x4a2   : > { %v2611_v55 = vpack.c.bf16 %v2598_v54, %v2597_v16  ;;  %v5539_v59 = vpop.f32.mrb[80].mxu0  ;;  %3306 = vmatpush1.bf16.msra.mxu1 %v5852_v50  ;;  %v5891_v16 = vld [vmem:[#allocation5 + $0x10] ss:$28 sps:$4 sm:$0xff]  }
 0x4a3   : > { %v2571_v24 = vadd.f32 %v5539_v59, %v7549_v8  ;;  %v2562_v62 = vpop.f32.mrb[81].mxu0  ;;  %3307 = vmatprep.subr.bf16.mxu1 %v5860_v53 }
 0x4a4   : > { %v2563_v0 = vadd.f32 %v7549_v8, %v2562_v62  ;;  %v5540_v1 = vpop.f32.mrb[82].mxu0  ;;  %5557 = vmatprep.mubr.msk.bf16.mxu1 %vm2070_vm0, %v2611_v55  ;;  %v5896_v55 = vld [vmem:[#allocation5 + $0x4c] ss:$28 sps:$4 sm:$0xff]  }
 0x4a5   : > { %v2574_v49 = vadd.f32 %v5540_v1, %v7549_v8  ;;  %v2565_v27 = vpop.f32.mrb[83].mxu0  ;;  %5558 = vmatmul.mubr.msk.bf16.gmra.mrb[92].mxu1 %vm2070_vm0, %v2612_v21  ;;  %v2603_v58 = vmax.f32 %v2571_v24, 0.0 }
 0x4a6   : > { %v2566_v5 = vadd.f32 %v7549_v8, %v2565_v27  ;;  %3308 = vmatpush1.bf16.msra.mxu1 %v5858_v22  ;;  %v2601_v14 = vmax.f32 %v2563_v0, 0.0 }
 0x4a7   : > { %v2604_v63 = vmax.f32 %v2574_v49, 0.0  ;;  %3309 = vmatprep.subr.bf16.mxu1 %v5866_v34  ;;  %v5907_v34 = vld [vmem:[#allocation5 + $0x50] ss:$28 sps:$4 sm:$0xff]   ;;  %v5894_v49 = vld [vmem:[#allocation5 + $0x48] ss:$28 sps:$4 sm:$0xff]  }
 0x4a8   : > { %v2602_v3 = vmax.f32 %v2566_v5, 0.0  ;;  %v5899_v5 = vld [vmem:[#allocation5 + $0x84] ss:$28 sps:$4 sm:$0xff]  }
 0x4a9   : > { %v2614_v25 = vpack.c.bf16 %v2604_v63, %v2603_v58 }
 0x4aa   : > { %v2613_v15 = vpack.c.bf16 %v2602_v3, %v2601_v14  ;;  %v5543_v28 = vpop.f32.mrb[84].mxu0  ;;  %3310 = vmatpush1.bf16.msra.mxu1 %v5864_v61 }
 0x4ab   : > { %v2587_v18 = vadd.f32 %v5543_v28, %v7549_v8  ;;  %v2578_v4 = vpop.f32.mrb[85].mxu0  ;;  %3311 = vmatprep.subr.bf16.mxu1 %v5872_v2  ;;  %v5911_v28 = vld [vmem:[#allocation5 + $0x88] ss:$28 sps:$4 sm:$0xff]  }
 0x4ac   : > { %v2579_v29 = vadd.f32 %v7549_v8, %v2578_v4  ;;  %v5544_v6 = vpop.f32.mrb[86].mxu0  ;;  %5561 = vmatprep.mubr.msk.bf16.mxu1 %vm2070_vm0, %v2613_v15  ;;  %v5897_v15 = vld [vmem:[#allocation5 + $0x80] ss:$28 sps:$4 sm:$0xff]  }
 0x4ad   : > { %v2590_v9 = vadd.f32 %v5544_v6, %v7549_v8  ;;  %v2581_v45 = vpop.f32.mrb[87].mxu0  ;;  %5562 = vmatmul.mubr.msk.bf16.gmra.mrb[96].mxu1 %vm2070_vm0, %v2614_v25  ;;  %v2607_v19 = vmax.f32 %v2587_v18, 0.0  ;;  %v5902_v4 = vld [vmem:[#allocation5 + $0xbc] ss:$28 sps:$4 sm:$0xff]  }
 0x4ae   : > { %v2582_v43 = vadd.f32 %v7549_v8, %v2581_v45  ;;  %3312 = vmatpush1.bf16.msra.mxu1 %v5870_v17  ;;  %v2605_v10 = vmax.f32 %v2579_v29, 0.0  ;;  %v5887_v8 = vld [vmem:[#allocation5 + $0x18c] ss:$28 sps:$4 sm:$0xff]   ;;  %v5912_v6 = vld [vmem:[#allocation5 + $0xc0] ss:$28 sps:$4 sm:$0xff]  }
 0x4af   : > { %v2608_v20 = vmax.f32 %v2590_v9, 0.0  ;;  %3313 = vmatprep.subr.bf16.mxu1 %v5878_v26  ;;  %3204 = vmatprep.subr.bf16.mxu0 %v5887_v8 }
 0x4b0   : > { %v2606_v56 = vmax.f32 %v2582_v43, 0.0  ;;  %3205 = vmatpush1.bf16.msra.mxu0 %v5885_v35  ;;  %v5910_v35 = vld [vmem:[#allocation5 + $0x12c] ss:$28 sps:$4 sm:$0xff]  }
 0x4b1   : > { %v2616_v12 = vpack.c.bf16 %v2608_v20, %v2607_v19  ;;  %3416 = vmatprep.subr.bf16.mxu0 %v5893_v23 }
 0x4b2   : > { %v2615_v36 = vpack.c.bf16 %v2606_v56, %v2605_v10  ;;  %3314 = vmatpush1.bf16.msra.mxu1 %v5876_v52  ;;  %v5900_v52 = vld [vmem:[#allocation5 + $0xb8] ss:$28 sps:$4 sm:$0xff]  }
 0x4b3   : > { %3315 = vmatprep.subr.bf16.mxu1 %v5884_v40  ;;  %v5905_v10 = vld [vmem:[#allocation5 + $0xf4] ss:$28 sps:$4 sm:$0xff]  }
 0x4b4   : > { %5565 = vmatprep.mubr.msk.bf16.mxu1 %vm2070_vm0, %v2615_v36 }
 0x4b5   : > { %5566 = vmatmul.mubr.msk.bf16.gmra.mrb[100].mxu1 %vm2070_vm0, %v2616_v12 }
 0x4b6   : > { %3316 = vmatpush1.bf16.msra.mxu1 %v5882_v60  ;;  %3335 = vmatprep.mubr.bf16.mxu1 %v6572_v39  ;;  %v5916_v60 = vld [vmem:[#allocation5 + $0xf8] ss:$28 sps:$4 sm:$0xff]  }
 0x4b7   : > { %3317 = vmatprep.subr.bf16.mxu1 %v5890_v41 }
 0x4ba   : > { %3318 = vmatpush1.bf16.msra.mxu1 %v5888_v44 }
 0x4bb   : > { %5569 = vmatprep.subr.bf16.mxu1 %v5906_v46 }
 0x570   : > { %v5555_v30 = vpop.f32.mrb[88].mxu1 }
 0x571   : > { %v2723_v33 = vadd.f32 %v5555_v30, %v7580_v11  ;;  %v2714_v47 = vpop.f32.mrb[89].mxu1 }
 0x572   : > { %v2715_v32 = vadd.f32 %v7580_v11, %v2714_v47  ;;  %v5556_v13 = vpop.f32.mrb[90].mxu1 }
 0x573   : > { %v2726_v7 = vadd.f32 %v5556_v13, %v7580_v11  ;;  %v2717_v31 = vpop.f32.mrb[91].mxu1  ;;  %v2779_v48 = vmax.f32 %v2723_v33, 0.0 }
 0x574   : > { %v2718_v42 = vadd.f32 %v7580_v11, %v2717_v31  ;;  %v2777_v57 = vmax.f32 %v2715_v32, 0.0  ;;  %v5908_v32 = vld [vmem:[#allocation5 + $0x128] ss:$28 sps:$4 sm:$0xff]  }
 0x575   : > { %v2780_v50 = vmax.f32 %v2726_v7, 0.0  ;;  %v5915_v31 = vld [vmem:[#allocation5 + $0x164] ss:$28 sps:$4 sm:$0xff]  }
 0x576   : > { %v2778_v51 = vmax.f32 %v2718_v42, 0.0 }
 0x577   : > { %v7586_v53 = vpack.c.bf16 %v2780_v50, %v2779_v48 }
 0x578   : > { %v7588_v54 = vpack.c.bf16 %v2778_v51, %v2777_v57  ;;  %v5559_v21 = vpop.f32.mrb[92].mxu1  ;;  %v5913_v51 = vld [vmem:[#allocation5 + $0x160] ss:$28 sps:$4 sm:$0xff]  }
 0x579   : > { %v2739_v59 = vadd.f32 %v5559_v21, %v7580_v11  ;;  %v2730_v22 = vpop.f32.mrb[93].mxu1  ;;  %v5920_v21 = vld [vmem:[#allocation5 + $0x19c] ss:$28 sps:$4 sm:$0xff]  }
 0x57a   : > { %v2731_v24 = vadd.f32 %v7580_v11, %v2730_v22  ;;  %v5560_v62 = vpop.f32.mrb[94].mxu1  ;;  %3223 = vmatmul.mubr.bf16.vlgmr.msra.gmra.mrb[88].mxu0 %v7588_v54  ;;  %3336 = vmatmul.mubr.bf16.vlgmr.msra.gmra.mrb[104].mxu1 %v7588_v54 }
 0x57b   : > { %v2742_v0 = vadd.f32 %v5560_v62, %v7580_v11  ;;  %v2733_v1 = vpop.f32.mrb[95].mxu1  ;;  %3417 = vmatpush1.bf16.msra.mxu0 %v5891_v16  ;;  %3232 = vmatprep.mubr.bf16.mxu0 %v6572_v39  ;;  %v2783_v61 = vmax.f32 %v2739_v59, 0.0  ;;  %v5921_v16 = vld [vmem:[#allocation5 + $0x168] ss:$28 sps:$4 sm:$0xff]  }
 0x57c   : > { %v2734_v27 = vadd.f32 %v7580_v11, %v2733_v1  ;;  %3345 = vmatprep.mubr.bf16.mxu1 %v6572_v39  ;;  %3418 = vmatprep.subr.bf16.mxu0 %v5896_v55  ;;  %v2781_v63 = vmax.f32 %v2731_v24, 0.0  ;;  %v5918_v55 = vld [vmem:[#allocation5 + $0x198] ss:$28 sps:$4 sm:$0xff]   ;;  %v7663_v24 = vld [vmem:[%s8340_s24] sm:$0xff]  ;;  %s6573_s24 = smov [#allocation8]  }
 0x57d   : > { %v2784_v58 = vmax.f32 %v2742_v0, 0.0  ;;  %5570 = vmatpush3.bf16.msra.mxu1 %v5906_v46  ;;  %v5917_v46 = vld [vmem:[#allocation5 + $0x130] ss:$28 sps:$4 sm:$0xff]   ;;  %s6466_s26 = sshll.u32 %s6573_s24, 4  ;;  %s6467_s26 = int_to_ptr.vmem [resolvable:$false] %s6466_s26 }
 0x57e   : > { %v2782_v2 = vmax.f32 %v2734_v27, 0.0  ;;  %5571 = vmatprep.subr.bf16.mxu1 %v5907_v34  ;;  %s6468_s1 = scalar_lea.vmem %s6467_s26, 4096  ;;  %p6469_p11 = scmp.lt.s32.totalorder %s8050_s18, %s6467_s26 }
 0x57f   : > { %v7598_v14 = vpack.c.bf16 %v2784_v58, %v2783_v61  ;;  %3419 = vmatpush1.bf16.msra.mxu0 %v5894_v49  ;;  %p6470_p3 = scmp.lt.s32.totalorder %s6468_s1, %s6462_s0 }
 0x580   : > { %v7600_v3 = vpack.c.bf16 %v2782_v2, %v2781_v63  ;;  %v5563_v25 = vpop.f32.mrb[96].mxu1  ;;  %3420 = vmatprep.subr.bf16.mxu0 %v5899_v5 }
 0x581   : > { %v2755_v17 = vadd.f32 %v5563_v25, %v7580_v11  ;;  %v2746_v18 = vpop.f32.mrb[97].mxu1  ;;  %5572 = vmatpush3.bf16.msra.mxu1 %v5907_v34  ;;  %p6471_p7 = por %p6470_p3, %p6469_p11 }
 0x582   : > { %v2747_v26 = vadd.f32 %v7580_v11, %v2746_v18  ;;  %v5564_v29 = vpop.f32.mrb[98].mxu1  ;;  %3233 = vmatmul.mubr.bf16.gmra.mrb[92].mxu0 %v7586_v53  ;;  %3346 = vmatmul.mubr.bf16.gmra.mrb[108].mxu1 %v7586_v53 }
 0x583   : > { %v2758_v9 = vadd.f32 %v5564_v29, %v7580_v11  ;;  %v2749_v45 = vpop.f32.mrb[99].mxu1  ;;  %3242 = vmatprep.mubr.bf16.mxu0 %v6572_v39  ;;  %3355 = vmatprep.mubr.bf16.mxu1 %v6572_v39  ;;  %v2787_v19 = vmax.f32 %v2755_v17, 0.0  ;;  %p6472_p9 = pnand %p6471_p7, %p6465_p10 }
 0x584   : > { %v2750_v43 = vadd.f32 %v7580_v11, %v2749_v45  ;;  %3421 = vmatpush1.bf16.msra.mxu0 %v5897_v15  ;;  %5573 = vmatprep.subr.bf16.mxu1 %v5911_v28  ;;  %v2785_v56 = vmax.f32 %v2747_v26, 0.0 }
 0x585   : > { %v2788_v20 = vmax.f32 %v2758_v9, 0.0  ;;  %3422 = vmatprep.subr.bf16.mxu0 %v5902_v4  ;;  %5574 = vmatpush3.bf16.msra.mxu1 %v5911_v28 }
 0x586   : > { %v2786_v12 = vmax.f32 %v2750_v43, 0.0  ;;  %5575 = vmatprep.subr.bf16.mxu1 %v5912_v6 }
 0x587   : > { %v7610_v36 = vpack.c.bf16 %v2788_v20, %v2787_v19 }
 0x588   : > { %v7612_v37 = vpack.c.bf16 %v2786_v12, %v2785_v56  ;;  %v5567_v40 = vpop.f32.mrb[100].mxu1  ;;  %3423 = vmatpush1.bf16.msra.mxu0 %v5900_v52 }
 0x589   : > { %v2771_v8 = vadd.f32 %v5567_v40, %v7580_v11  ;;  %v2762_v41 = vpop.f32.mrb[101].mxu1  ;;  %3424 = vmatprep.subr.bf16.mxu0 %v5905_v10  ;;  %5576 = vmatpush3.bf16.msra.mxu1 %v5912_v6 }
 0x58a   : > { %v2763_v44 = vadd.f32 %v7580_v11, %v2762_v41  ;;  %v5568_v23 = vpop.f32.mrb[102].mxu1  ;;  %3243 = vmatmul.mubr.bf16.gmra.mrb[96].mxu0 %v7600_v3  ;;  %3356 = vmatmul.mubr.bf16.gmra.mrb[112].mxu1 %v7600_v3 }
 0x58b   : > { %v2774_v30 = vadd.f32 %v5568_v23, %v7580_v11  ;;  %v2765_v33 = vpop.f32.mrb[103].mxu1  ;;  %3252 = vmatprep.mubr.bf16.mxu0 %v6572_v39  ;;  %3365 = vmatprep.mubr.bf16.mxu1 %v6572_v39  ;;  %v2791_v13 = vmax.f32 %v2771_v8, 0.0 }
 0x58c   : > { %v2766_v47 = vadd.f32 %v7580_v11, %v2765_v33  ;;  %3425 = vmatpush1.bf16.msra.mxu0 %v5903_v38  ;;  %5577 = vmatprep.subr.bf16.mxu1 %v5916_v60  ;;  %v2789_v42 = vmax.f32 %v2763_v44, 0.0  ;;  %v5922_v11 = vld [vmem:[#allocation5 + $0x1a0] ss:$28 sps:$4 sm:$0xff]  }
 0x58d   : > { %v2792_v7 = vmax.f32 %v2774_v30, 0.0  ;;  %3426 = vmatprep.subr.bf16.mxu0 %v5910_v35  ;;  %5578 = vmatpush3.bf16.msra.mxu1 %v5916_v60 }
 0x58e   : > { %v2790_v48 = vmax.f32 %v2766_v47, 0.0  ;;  %5579 = vmatprep.subr.bf16.mxu1 %v5917_v46 }
 0x58f   : > { %v2800_v50 = vpack.c.bf16 %v2792_v7, %v2791_v13 }
 0x590   : > { %v2799_v57 = vpack.c.bf16 %v2790_v48, %v2789_v42  ;;  %3427 = vmatpush1.bf16.msra.mxu0 %v5908_v32 }
 0x591   : > { %3428 = vmatprep.subr.bf16.mxu0 %v5915_v31  ;;  %5580 = vmatpush3.bf16.msra.mxu1 %v5917_v46 }
 0x592   : > { %3253 = vmatmul.mubr.bf16.gmra.mrb[100].mxu0 %v7598_v14  ;;  %3366 = vmatmul.mubr.bf16.gmra.mrb[116].mxu1 %v7598_v14 }
 0x593   : > { %3262 = vmatprep.mubr.bf16.mxu0 %v6572_v39  ;;  %3375 = vmatprep.mubr.bf16.mxu1 %v6572_v39 }
 0x594   : > { %3429 = vmatpush1.bf16.msra.mxu0 %v5913_v51  ;;  %5581 = vmatprep.subr.bf16.mxu1 %v5921_v16 }
 0x595   : > { %3430 = vmatprep.subr.bf16.mxu0 %v5920_v21  ;;  %5582 = vmatpush3.bf16.msra.mxu1 %v5921_v16 }
 0x596   : > { %5583 = vmatprep.subr.bf16.mxu1 %v5922_v11 }
 0x598   : > { %3431 = vmatpush1.bf16.msra.mxu0 %v5918_v55 }
 0x599   : > { %5584 = vmatpush3.bf16.msra.mxu1 %v5922_v11 }
 0x59a   : > { %3263 = vmatmul.mubr.bf16.gmra.mrb[104].mxu0 %v7612_v37  ;;  %3376 = vmatmul.mubr.bf16.gmra.mrb[120].mxu1 %v7612_v37 }
 0x59b   : > { %3272 = vmatprep.mubr.bf16.mxu0 %v6572_v39  ;;  %3385 = vmatprep.mubr.bf16.mxu1 %v6572_v39 }
 0x5a2   : > { %3273 = vmatmul.mubr.bf16.gmra.mrb[108].mxu0 %v7610_v36  ;;  %3386 = vmatmul.mubr.bf16.gmra.mrb[124].mxu1 %v7610_v36 }
 0x5a3   : > { %3282 = vmatprep.mubr.bf16.mxu0 %v6572_v39  ;;  %3395 = vmatprep.mubr.bf16.mxu1 %v6572_v39 }
 0x5aa   : > { %3283 = vmatmul.mubr.bf16.gmra.mrb[112].mxu0 %v2799_v57  ;;  %3396 = vmatmul.mubr.bf16.gmra.mrb[128].mxu1 %v2799_v57 }
 0x5ab   : > { %3292 = vmatprep.mubr.bf16.mxu0 %v6572_v39  ;;  %3405 = vmatprep.mubr.bf16.mxu1 %v6572_v39 }
 0x5b2   : > { %3293 = vmatmul.mubr.bf16.gmra.mrb[116].mxu0 %v2800_v50  ;;  %3406 = vmatmul.mubr.bf16.gmra.mrb[132].mxu1 %v2800_v50 }
 0x5b3   : > { %5585 = vmatprep.mubr.bf16.mxu1 %v7588_v54  ;;  %3448 = vmatprep.mubr.bf16.mxu0 %v6572_v39 }
 0x5ba   : > { %3449 = vmatmul.mubr.bf16.vlgmr.msra.gmra.mrb[120].mxu0 %v7588_v54  ;;  %5586 = vmatmul.mubr.bf16.vlgmr.msra.gmra.mrb[136].mxu1 %v7586_v53 }
 0x5bb   : > { %5589 = vmatprep.mubr.bf16.mxu1 %v7600_v3  ;;  %3458 = vmatprep.mubr.bf16.mxu0 %v6572_v39 }
 0x5c2   : > { %3459 = vmatmul.mubr.bf16.gmra.mrb[124].mxu0 %v7586_v53  ;;  %5590 = vmatmul.mubr.bf16.gmra.mrb[140].mxu1 %v7598_v14  ;;  %v2867_v53 = vlaneseq }
 0x5c3   : > { %5593 = vmatprep.mubr.bf16.mxu1 %v7612_v37  ;;  %3468 = vmatprep.mubr.bf16.mxu0 %v6572_v39 }
 0x5c4   : > { %v7656_v54 = vshrl.u32 %v2867_v53, 7 }
 0x5c6   : > { %v2869_v59 = vsub.s32 0, %v7656_v54  ;;  %v2877_v22 = vsub.s32 2, %v7656_v54  ;;  %v2873_v62 = vsub.s32 1, %v7656_v54  ;;  %v2881_v34 = vsub.s32 3, %v7656_v54 }
 0x5c8   : > { %v7668_v0 = vrot.slane %v7663_v24, %v2869_v59  ;;  %v7674_v1 = vrot.slane %v7663_v24, %v2873_v62  ;;  %v7677_v49 = vrot.slane %v7663_v24, %v2881_v34 }
 0x5ca   : > { %3469 = vmatmul.mubr.bf16.gmra.mrb[128].mxu0 %v7600_v3  ;;  %5594 = vmatmul.mubr.bf16.gmra.mrb[144].mxu1 %v7610_v36 }
 0x5cb   : > { %5597 = vmatprep.mubr.bf16.mxu1 %v2799_v57  ;;  %3478 = vmatprep.mubr.bf16.mxu0 %v6572_v39 }
 0x5d2   : > { %3479 = vmatmul.mubr.bf16.gmra.mrb[132].mxu0 %v7598_v14  ;;  %5598 = vmatmul.mubr.bf16.gmra.mrb[148].mxu1 %v2800_v50 }
 0x5d3   : > { %3488 = vmatprep.mubr.bf16.mxu0 %v6572_v39 }
 0x5da   : > { %3489 = vmatmul.mubr.bf16.gmra.mrb[136].mxu0 %v7612_v37 }
 0x5db   : > { %3498 = vmatprep.mubr.bf16.mxu0 %v6572_v39 }
 0x5e2   : > { %3499 = vmatmul.mubr.bf16.gmra.mrb[140].mxu0 %v7610_v36 }
 0x5e3   : > { %3508 = vmatprep.mubr.bf16.mxu0 %v6572_v39 }
 0x5ea   : > { %3509 = vmatmul.mubr.bf16.gmra.mrb[144].mxu0 %v2799_v57 }
 0x5eb   : > { %3518 = vmatprep.mubr.bf16.mxu0 %v6572_v39  ;;  %v7671_v39 = vrot.slane %v7663_v24, %v2877_v22 }
 0x5f2   : > { %3519 = vmatmul.mubr.bf16.gmra.mrb[148].mxu0 %v2800_v50 }
 0x64d   : > { %v3224_v27 = vpop.f32.mrb[88].mxu0  ;;  %v3337_v5 = vpop.f32.mrb[104].mxu1 }
 0x64e   : > { %v3225_v61 = vadd.f32 %v3224_v27, %v7668_v0  ;;  %v3338_v58 = vadd.f32 %v3337_v5, %v7671_v39  ;;  %v3226_v63 = vpop.f32.mrb[89].mxu0  ;;  %v3339_v2 = vpop.f32.mrb[105].mxu1 }
 0x64f   : > { %v3227_v14 = vadd.f32 %v3226_v63, %v7674_v1  ;;  %v3340_v3 = vadd.f32 %v3339_v2, %v7677_v49  ;;  %v3228_v25 = vpop.f32.mrb[90].mxu0  ;;  %v3341_v15 = vpop.f32.mrb[106].mxu1 }
 0x650   : > { %v5006_v28 = vmul.f32 -1.442695, %v3225_v61  ;;  %v5008_v17 = vmul.f32 -1.442695, %v3338_v58  ;;  %v3229_v18 = vadd.f32 %v3228_v25, %v7668_v0  ;;  %v3342_v4 = vadd.f32 %v3341_v15, %v7671_v39  ;;  %v3230_v26 = vpop.f32.mrb[91].mxu0  ;;  %v3343_v29 = vpop.f32.mrb[107].mxu1 }
 0x651   : > { %v5007_v6 = vmul.f32 -1.442695, %v3227_v14  ;;  %v5009_v9 = vmul.f32 -1.442695, %v3340_v3  ;;  %v3231_v45 = vadd.f32 %v3230_v26, %v7674_v1  ;;  %v3344_v43 = vadd.f32 %v3343_v29, %v7677_v49 }
 0x652   : > { %5955 = vpow2.f32 %v5006_v28  ;;  %v5013_v52 = vmul.f32 -1.442695, %v3229_v18  ;;  %v5015_v19 = vmul.f32 -1.442695, %v3342_v4 }
 0x653   : > { %5957 = vpow2.f32 %v5008_v17  ;;  %v5014_v20 = vmul.f32 -1.442695, %v3231_v45  ;;  %v5016_v10 = vmul.f32 -1.442695, %v3344_v43 }
 0x654   : > { %5959 = vpow2.f32 %v5007_v6 }
 0x655   : > { %5961 = vpow2.f32 %v5009_v9  ;;  %v3234_v56 = vpop.f32.mrb[92].mxu0  ;;  %v3347_v12 = vpop.f32.mrb[108].mxu1 }
 0x656   : > { %5963 = vpow2.f32 %v5013_v52  ;;  %v3235_v36 = vadd.f32 %v3234_v56, %v7668_v0  ;;  %v3348_v37 = vadd.f32 %v3347_v12, %v7671_v39  ;;  %v3236_v40 = vpop.f32.mrb[93].mxu0  ;;  %v3349_v38 = vpop.f32.mrb[109].mxu1 }
 0x657   : > { %5965 = vpow2.f32 %v5015_v19  ;;  %v3237_v60 = vadd.f32 %v3236_v40, %v7674_v1  ;;  %v3350_v8 = vadd.f32 %v3349_v38, %v7677_v49  ;;  %v3238_v41 = vpop.f32.mrb[94].mxu0  ;;  %v3351_v35 = vpop.f32.mrb[110].mxu1 }
 0x658   : > { %5967 = vpow2.f32 %v5014_v20  ;;  %v5020_v44 = vmul.f32 -1.442695, %v3235_v36  ;;  %v5022_v23 = vmul.f32 -1.442695, %v3348_v37  ;;  %v3239_v46 = vadd.f32 %v3238_v41, %v7668_v0  ;;  %v3240_v30 = vpop.f32.mrb[95].mxu0  ;;  %v3353_v33 = vpop.f32.mrb[111].mxu1 }
 0x659   : > { %5969 = vpow2.f32 %v5016_v10  ;;  %v5021_v47 = vmul.f32 -1.442695, %v3237_v60  ;;  %v5023_v32 = vmul.f32 -1.442695, %v3350_v8  ;;  %v3352_v15 = vadd.f32 %v3351_v35, %v7671_v39 }
 0x65a   : > { %5971 = vpow2.f32 %v5020_v44  ;;  %v5027_v13 = vmul.f32 -1.442695, %v3239_v46  ;;  %v3241_v18 = vadd.f32 %v3240_v30, %v7674_v1  ;;  %v3354_v6 = vadd.f32 %v3353_v33, %v7677_v49 }
 0x65b   : > { %5973 = vpow2.f32 %v5022_v23  ;;  %v5029_v36 = vmul.f32 -1.442695, %v3352_v15 }
 0x65c   : > { %v5956_v7 = vpop.eup %5955  ;;  %5975 = vpow2.f32 %v5021_v47  ;;  %v5028_v41 = vmul.f32 -1.442695, %v3241_v18  ;;  %v5030_v46 = vmul.f32 -1.442695, %v3354_v6 }
 0x65d   : > { %v5958_v31 = vpop.eup %5957  ;;  %v3962_v42 = vadd.f32 1.0, %v5956_v7  ;;  %5977 = vpow2.f32 %v5023_v32  ;;  %v3244_v48 = vpop.f32.mrb[96].mxu0 }
 0x65e   : > { %v3357_v50 = vpop.f32.mrb[112].mxu1  ;;  %v5960_v57 = vpop.eup %5959  ;;  %v3964_v51 = vadd.f32 1.0, %v5958_v31  ;;  %5979 = vpow2.f32 %v5027_v13  ;;  %v3245_v19 = vadd.f32 %v3244_v48, %v7668_v0 }
 0x65f   : > { %v3246_v16 = vpop.f32.mrb[97].mxu0  ;;  %v3359_v21 = vpop.f32.mrb[113].mxu1  ;;  %5981 = vrcp.f32 %v3962_v42  ;;  %v3963_v55 = vadd.f32 1.0, %v5960_v57  ;;  %v3358_v37 = vadd.f32 %v3357_v50, %v7671_v39 }
 0x660   : > { %v5962_v11 = vpop.eup %5961  ;;  %v3248_v53 = vpop.f32.mrb[98].mxu0  ;;  %5983 = vrcp.f32 %v3964_v51  ;;  %v3247_v35 = vadd.f32 %v3246_v16, %v7674_v1  ;;  %v3360_v30 = vadd.f32 %v3359_v21, %v7677_v49  ;;  %v5034_v47 = vmul.f32 -1.442695, %v3245_v19 }
 0x661   : > { %v7692_v59 = vpop.f32.mrb[114].mxu1  ;;  %v5964_v22 = vpop.eup %5963  ;;  %v3965_v62 = vadd.f32 1.0, %v5962_v11  ;;  %5985 = vrcp.f32 %v3963_v55  ;;  %v3249_v32 = vadd.f32 %v3248_v53, %v7668_v0  ;;  %v5036_v7 = vmul.f32 -1.442695, %v3358_v37 }
 0x662   : > { %v7694_v34 = vpop.f32.mrb[99].mxu0  ;;  %v5966_v27 = vpop.eup %5965  ;;  %v3969_v5 = vadd.f32 1.0, %v5964_v22  ;;  %v3362_v31 = vadd.f32 %v7692_v59, %v7671_v39  ;;  %v5035_v48 = vmul.f32 -1.442695, %v3247_v35  ;;  %v5037_v21 = vmul.f32 -1.442695, %v3360_v30 }
 0x663   : > { %v7696_v61 = vpop.f32.mrb[115].mxu1  ;;  %v5968_v58 = vpop.eup %5967  ;;  %5987 = vrcp.f32 %v3965_v62  ;;  %v3971_v63 = vadd.f32 1.0, %v5966_v27  ;;  %v3251_v50 = vadd.f32 %v7694_v34, %v7674_v1  ;;  %v5041_v22 = vmul.f32 -1.442695, %v3249_v32 }
 0x664   : > { %v5970_v2 = vpop.eup %5969  ;;  %5989 = vrcp.f32 %v3969_v5  ;;  %v3970_v14 = vadd.f32 1.0, %v5968_v58  ;;  %v3364_v11 = vadd.f32 %v7696_v61, %v7677_v49  ;;  %v5043_v61 = vmul.f32 -1.442695, %v3362_v31 }
 0x665   : > { %v5972_v3 = vpop.eup %5971  ;;  %5991 = vrcp.f32 %v3971_v63  ;;  %v3972_v25 = vadd.f32 1.0, %v5970_v2  ;;  %v3254_v4 = vpop.f32.mrb[100].mxu0 }
 0x666   : > { %v5974_v28 = vpop.eup %5973  ;;  %5993 = vrcp.f32 %v3970_v14  ;;  %v3976_v17 = vadd.f32 1.0, %v5972_v3  ;;  %v3367_v9 = vpop.f32.mrb[116].mxu1  ;;  %v3255_v62 = vadd.f32 %v3254_v4, %v7668_v0  ;;  %v5042_v3 = vmul.f32 -1.442695, %v3251_v50 }
 0x667   : > { %v5976_v26 = vpop.eup %5975  ;;  %5995 = vrcp.f32 %v3972_v25  ;;  %v3978_v29 = vadd.f32 1.0, %v5974_v28  ;;  %v7702_v45 = vpop.f32.mrb[101].mxu0  ;;  %v3368_v58 = vadd.f32 %v3367_v9, %v7671_v39  ;;  %v5044_v15 = vmul.f32 -1.442695, %v3364_v11 }
 0x668   : > { %v5978_v43 = vpop.eup %5977  ;;  %5997 = vrcp.f32 %v3976_v17  ;;  %v3977_v52 = vadd.f32 1.0, %v5976_v26  ;;  %v7705_v20 = vpop.f32.mrb[117].mxu1  ;;  %v5048_v18 = vmul.f32 -1.442695, %v3255_v62  ;;  %v3257_v30 = vadd.f32 %v7702_v45, %v7674_v1 }
 0x669   : > { %v7707_v10 = vpop.f32.mrb[102].mxu0  ;;  %v5980_v56 = vpop.eup %5979  ;;  %5999 = vrcp.f32 %v3978_v29  ;;  %v3979_v12 = vadd.f32 1.0, %v5978_v43  ;;  %v5050_v26 = vmul.f32 -1.442695, %v3368_v58 }
 0x66a   : > { %v7710_v40 = vpop.f32.mrb[118].mxu1  ;;  %v7712_v38 = vpop.f32.mrb[103].mxu0  ;;  %6001 = vrcp.f32 %v3977_v52  ;;  %v3983_v8 = vadd.f32 1.0, %v5980_v56  ;;  %v3259_v58 = vadd.f32 %v7707_v10, %v7668_v0 }
 0x66b   : > { %v5982_v60 = vpop.eup %5981  ;;  %v7715_v44 = vpop.f32.mrb[119].mxu1  ;;  %6003 = vrcp.f32 %v3979_v12 }
 0x66c   : > { %v5984_v23 = vpop.eup %5983  ;;  %4298 = vst [vmem:[%s7719_s30] sm:$0xff] %v5982_v60  ;;  %6005 = vrcp.f32 %v3983_v8 }
 0x66d   : > { %v5986_v33 = vpop.eup %5985  ;;  %4300 = vst [vmem:[%s7719_s30 + $0x10] sm:$0xff] %v5984_v23  ;;  %6007 = vpow2.f32 %v5029_v36  ;;  %v7731_v57 = vpop.f32.mrb[104].mxu0 }
 0x66e   : > { %v5988_v13 = vpop.eup %5987  ;;  %4299 = vst [vmem:[%s7719_s30 + $0x8] sm:$0xff] %v5986_v33  ;;  %6009 = vpow2.f32 %v5028_v41  ;;  %v7733_v51 = vpop.f32.mrb[120].mxu1 }
 0x66f   : > { %v5990_v42 = vpop.eup %5989  ;;  %4301 = vst [vmem:[%s7719_s30 + $0x18] sm:$0xff] %v5988_v13  ;;  %6011 = vpow2.f32 %v5030_v46  ;;  %v7738_v55 = vpop.f32.mrb[105].mxu0  ;;  %v3370_v13 = vadd.f32 %v7705_v20, %v7677_v49 }
 0x670   : > { %v5992_v16 = vpop.eup %5991  ;;  %4305 = vst [vmem:[%s7719_s30 + $0x38] sm:$0xff] %v5990_v42  ;;  %v7740_v53 = vpop.f32.mrb[121].mxu1  ;;  %6013 = vpow2.f32 %v5034_v47 }
 0x671   : > { %v5994_v59 = vpop.eup %5993  ;;  %4307 = vst [vmem:[%s7719_s30 + $0x48] sm:$0xff] %v5992_v16  ;;  %v7744_v34 = vpop.f32.mrb[106].mxu0  ;;  %6015 = vpow2.f32 %v5036_v7 }
 0x672   : > { %v7746_v27 = vpop.f32.mrb[122].mxu1  ;;  %v5996_v5 = vpop.eup %5995  ;;  %4306 = vst [vmem:[%s7719_s30 + $0x40] sm:$0xff] %v5994_v59  ;;  %6017 = vpow2.f32 %v5035_v48 }
 0x673   : > { %v7750_v63 = vpop.f32.mrb[107].mxu0  ;;  %v3383_v2 = vpop.f32.mrb[123].mxu1  ;;  %4308 = vst [vmem:[%s7719_s30 + $0x50] sm:$0xff] %v5996_v5  ;;  %6019 = vpow2.f32 %v5037_v21 }
 0x674   : > { %v5998_v14 = vpop.eup %5997  ;;  %v7755_v28 = vadd.f32 %v3383_v2, %v7677_v49  ;;  %6021 = vpow2.f32 %v5041_v22  ;;  %v5049_v22 = vmul.f32 -1.442695, %v3257_v30 }
 0x675   : > { %v6000_v25 = vpop.eup %5999  ;;  %4312 = vst [vmem:[%s7719_s30 + $0x70] sm:$0xff] %v5998_v14  ;;  %6023 = vpow2.f32 %v5043_v61  ;;  %v3274_v6 = vpop.f32.mrb[108].mxu0  ;;  %v7789_v61 = vmul.f32 -1.442695, %v3370_v13 }
 0x676   : > { %v6002_v17 = vpop.eup %6001  ;;  %4314 = vst [vmem:[%s7719_s30 + $0x80] sm:$0xff] %v6000_v25  ;;  %6025 = vpow2.f32 %v5042_v3  ;;  %v3387_v9 = vpop.f32.mrb[124].mxu1  ;;  %v7762_v52 = vadd.f32 %v3274_v6, %v7668_v0  ;;  %v3372_v25 = vadd.f32 %v7710_v40, %v7671_v39  ;;  %v3261_v40 = vadd.f32 %v7712_v38, %v7674_v1 }
 0x677   : > { %v6004_v4 = vpop.eup %6003  ;;  %4313 = vst [vmem:[%s7719_s30 + $0x78] sm:$0xff] %v6002_v17  ;;  %6027 = vpow2.f32 %v5044_v15  ;;  %v7765_v19 = vadd.f32 %v3387_v9, %v7671_v39  ;;  %v3276_v56 = vpop.f32.mrb[109].mxu0  ;;  %v3265_v38 = vadd.f32 %v7731_v57, %v7668_v0  ;;  %v3378_v57 = vadd.f32 %v7733_v51, %v7671_v39 }
 0x678   : > { %v6006_v29 = vpop.eup %6005  ;;  %4315 = vst [vmem:[%s7719_s30 + $0x88] sm:$0xff] %v6004_v4  ;;  %v3389_v12 = vpop.f32.mrb[125].mxu1  ;;  %6029 = vpow2.f32 %v5048_v18  ;;  %v7768_v60 = vadd.f32 %v3276_v56, %v7674_v1  ;;  %v3380_v51 = vadd.f32 %v7740_v53, %v7677_v49 }
 0x679   : > { %v6008_v43 = vpop.eup %6007  ;;  %4319 = vst [vmem:[%s7719_s30 + $0xa8] sm:$0xff] %v6006_v29  ;;  %v7771_v8 = vadd.f32 %v3389_v12, %v7677_v49  ;;  %v3278_v41 = vpop.f32.mrb[110].mxu0  ;;  %6031 = vpow2.f32 %v5050_v26 }
 0x67a   : > { %v6010_v36 = vpop.eup %6009  ;;  %v3985_v37 = vadd.f32 1.0, %v6008_v43  ;;  %v3391_v35 = vpop.f32.mrb[126].mxu1  ;;  %v7778_v48 = vadd.f32 %v3278_v41, %v7668_v0 }
 0x67b   : > { %v6012_v23 = vpop.eup %6011  ;;  %v3984_v46 = vadd.f32 1.0, %v6010_v36  ;;  %v3280_v33 = vpop.f32.mrb[111].mxu0  ;;  %v7781_v50 = vadd.f32 %v3391_v35, %v7671_v39 }
 0x67c   : > { %v6014_v47 = vpop.eup %6013  ;;  %6033 = vrcp.f32 %v3985_v37  ;;  %v3986_v32 = vadd.f32 1.0, %v6012_v23  ;;  %v3393_v7 = vpop.f32.mrb[127].mxu1  ;;  %v7784_v21 = vadd.f32 %v3280_v33, %v7674_v1  ;;  %v5055_v23 = vmul.f32 -1.442695, %v3259_v58 }
 0x67d   : > { %v6016_v31 = vpop.eup %6015  ;;  %6035 = vrcp.f32 %v3984_v46  ;;  %v3990_v42 = vadd.f32 1.0, %v6014_v47  ;;  %v7787_v11 = vadd.f32 %v3393_v7, %v7677_v49  ;;  %v3284_v2 = vpop.f32.mrb[112].mxu0  ;;  %v3374_v46 = vadd.f32 %v7715_v44, %v7677_v49 }
 0x67e   : > { %v6018_v16 = vpop.eup %6017  ;;  %6037 = vrcp.f32 %v3986_v32  ;;  %v3992_v45 = vadd.f32 1.0, %v6016_v31  ;;  %v7796_v15 = vadd.f32 %v3284_v2, %v7668_v0  ;;  %v3397_v17 = vpop.f32.mrb[128].mxu1 }
 0x67f   : > { %v6020_v20 = vpop.eup %6019  ;;  %6039 = vrcp.f32 %v3990_v42  ;;  %v3991_v59 = vadd.f32 1.0, %v6018_v16  ;;  %v3286_v18 = vpop.f32.mrb[113].mxu0  ;;  %v7799_v29 = vadd.f32 %v3397_v17, %v7671_v39  ;;  %v5057_v16 = vmul.f32 -1.442695, %v3372_v25 }
 0x680   : > { %v6022_v62 = vpop.eup %6021  ;;  %6041 = vrcp.f32 %v3992_v45  ;;  %v3993_v5 = vadd.f32 1.0, %v6020_v20  ;;  %v7802_v10 = vadd.f32 %v3286_v18, %v7674_v1  ;;  %v3399_v6 = vpop.f32.mrb[129].mxu1 }
 0x681   : > { %v6024_v14 = vpop.eup %6023  ;;  %6043 = vrcp.f32 %v3991_v59  ;;  %v3997_v3 = vadd.f32 1.0, %v6022_v62  ;;  %v3288_v9 = vpop.f32.mrb[114].mxu0  ;;  %v7807_v12 = vadd.f32 %v3399_v6, %v7677_v49  ;;  %v5056_v59 = vmul.f32 -1.442695, %v3261_v40 }
 0x682   : > { %v6026_v4 = vpop.eup %6025  ;;  %6045 = vrcp.f32 %v3993_v5  ;;  %v3999_v26 = vadd.f32 1.0, %v6024_v14  ;;  %v3401_v36 = vpop.f32.mrb[130].mxu1  ;;  %v7814_v32 = vadd.f32 %v3288_v9, %v7668_v0  ;;  %v5058_v62 = vmul.f32 -1.442695, %v3374_v46 }
 0x683   : > { %v6028_v43 = vpop.eup %6027  ;;  %6047 = vrcp.f32 %v3997_v3  ;;  %v3998_v56 = vadd.f32 1.0, %v6026_v4  ;;  %v3290_v37 = vpop.f32.mrb[115].mxu0  ;;  %v7817_v31 = vadd.f32 %v3401_v36, %v7671_v39  ;;  %v3267_v5 = vadd.f32 %v7738_v55, %v7674_v1 }
 0x684   : > { %v6030_v41 = vpop.eup %6029  ;;  %6049 = vrcp.f32 %v3999_v26  ;;  %v4000_v35 = vadd.f32 1.0, %v6028_v43  ;;  %v3403_v30 = vpop.f32.mrb[131].mxu1  ;;  %v7820_v42 = vadd.f32 %v3290_v37, %v7674_v1  ;;  %v5062_v55 = vmul.f32 -1.442695, %v3265_v38 }
 0x685   : > { %v6032_v33 = vpop.eup %6031  ;;  %6051 = vrcp.f32 %v3998_v56  ;;  %v4004_v47 = vadd.f32 1.0, %v6030_v41  ;;  %v7826_v45 = vadd.f32 %v3403_v30, %v7677_v49  ;;  %v3294_v58 = vpop.f32.mrb[116].mxu0  ;;  %v5064_v43 = vmul.f32 -1.442695, %v3378_v57 }
 0x686   : > { %v6034_v13 = vpop.eup %6033  ;;  %6053 = vrcp.f32 %v4000_v35  ;;  %v4006_v7 = vadd.f32 1.0, %v6032_v33  ;;  %v3407_v2 = vpop.f32.mrb[132].mxu1  ;;  %v7835_v3 = vadd.f32 %v3294_v58, %v7668_v0  ;;  %v3269_v56 = vadd.f32 %v7744_v34, %v7668_v0 }
 0x687   : > { %v6036_v44 = vpop.eup %6035  ;;  %4321 = vst [vmem:[%s7719_s30 + $0xb8] sm:$0xff] %v6034_v13  ;;  %6055 = vrcp.f32 %v4004_v47  ;;  %v7838_v25 = vadd.f32 %v3407_v2, %v7671_v39  ;;  %v3296_v17 = vpop.f32.mrb[117].mxu0  ;;  %v5063_v41 = vmul.f32 -1.442695, %v3267_v5  ;;  %v3382_v35 = vadd.f32 %v7746_v27, %v7671_v39 }
 0x688   : > { %v6038_v20 = vpop.eup %6037  ;;  %4320 = vst [vmem:[%s7719_s30 + $0xb0] sm:$0xff] %v6036_v44  ;;  %6057 = vrcp.f32 %v4006_v7  ;;  %v3409_v18 = vpop.f32.mrb[133].mxu1  ;;  %v7843_v26 = vadd.f32 %v3296_v17, %v7674_v1  ;;  %v5065_v27 = vmul.f32 -1.442695, %v3380_v51  ;;  %v5069_v47 = vmul.f32 -1.442695, %v3269_v56 }
 0x689   : > { %v6040_v14 = vpop.eup %6039  ;;  %4322 = vst [vmem:[%s7719_s30 + $0xc0] sm:$0xff] %v6038_v20  ;;  %6059 = vpow2.f32 %v5049_v22  ;;  %v7846_v22 = vadd.f32 %v3409_v18, %v7677_v49  ;;  %v3298_v53 = vpop.f32.mrb[118].mxu0 }
 0x68a   : > { %v6042_v4 = vpop.eup %6041  ;;  %4326 = vst [vmem:[%s7719_s30 + $0xe0] sm:$0xff] %v6040_v14  ;;  %6061 = vpow2.f32 %v7789_v61  ;;  %v3411_v6 = vpop.f32.mrb[134].mxu1  ;;  %v7852_v40 = vadd.f32 %v3298_v53, %v7668_v0  ;;  %v3271_v0 = vadd.f32 %v7750_v63, %v7674_v1  ;;  %v5071_v63 = vmul.f32 -1.442695, %v3382_v35 }
 0x68b   : > { %v6044_v9 = vpop.eup %6043  ;;  %4328 = vst [vmem:[%s7719_s30 + $0xf0] sm:$0xff] %v6042_v4  ;;  %6063 = vpow2.f32 %v5055_v23  ;;  %v3300_v61 = vpop.f32.mrb[119].mxu0  ;;  %v7858_v23 = vadd.f32 %v3411_v6, %v7671_v39 }
 0x68c   : > { %v3413_v36 = vpop.f32.mrb[135].mxu1  ;;  %v6046_v37 = vpop.eup %6045  ;;  %4327 = vst [vmem:[%s7719_s30 + $0xe8] sm:$0xff] %v6044_v9  ;;  %6065 = vpow2.f32 %v5057_v16  ;;  %v7864_v34 = vadd.f32 %v3300_v61, %v7674_v1  ;;  %v5070_v7 = vmul.f32 -1.442695, %v3271_v0 }
 0x68d   : > { %v6048_v46 = vpop.eup %6047  ;;  %4329 = vst [vmem:[%s7719_s30 + $0xf8] sm:$0xff] %v6046_v37  ;;  %6067 = vpow2.f32 %v5056_v59  ;;  %v7867_v30 = vadd.f32 %v3413_v36, %v7677_v49  ;;  %v7872_v1 = vpop.f32.mrb[120].mxu0 }
 0x68e   : > { %v6050_v33 = vpop.eup %6049  ;;  %4333 = vst [vmem:[%s7719_s30 + $0x118] sm:$0xff] %v6048_v46  ;;  %6069 = vpow2.f32 %v5058_v62  ;;  %v7874_v13 = vpop.f32.mrb[136].mxu1 }
 0x68f   : > { %v6052_v39 = vpop.eup %6051  ;;  %4335 = vst [vmem:[%s7719_s30 + $0x128] sm:$0xff] %v6050_v33  ;;  %6071 = vpow2.f32 %v5062_v55  ;;  %v7877_v44 = vpop.f32.mrb[121].mxu0 }
 0x690   : > { %v6054_v38 = vpop.eup %6053  ;;  %4334 = vst [vmem:[%s7719_s30 + $0x120] sm:$0xff] %v6052_v39  ;;  %6073 = vpow2.f32 %v5064_v43  ;;  %v7879_v16 = vpop.f32.mrb[137].mxu1 }
 0x691   : > { %v6056_v49 = vpop.eup %6055  ;;  %4336 = vst [vmem:[%s7719_s30 + $0x130] sm:$0xff] %v6054_v38  ;;  %6075 = vpow2.f32 %v5063_v41  ;;  %v7882_v20 = vpop.f32.mrb[122].mxu0 }
 0x692   : > { %v6058_v57 = vpop.eup %6057  ;;  %4340 = vst [vmem:[%s7719_s30 + $0x150] sm:$0xff] %v6056_v49  ;;  %6077 = vpow2.f32 %v5065_v27  ;;  %v7884_v59 = vpop.f32.mrb[138].mxu1 }
 0x693   : > { %v6060_v62 = vpop.eup %6059  ;;  %4342 = vst [vmem:[%s7719_s30 + $0x160] sm:$0xff] %v6058_v57  ;;  %6079 = vpow2.f32 %v5069_v47  ;;  %v7887_v5 = vpop.f32.mrb[123].mxu0 }
 0x694   : > { %v7889_v58 = vpop.f32.mrb[139].mxu1  ;;  %v6062_v2 = vpop.eup %6061  ;;  %v4005_v14 = vadd.f32 1.0, %v6060_v62  ;;  %6081 = vpow2.f32 %v5071_v63 }
 0x695   : > { %v6064_v51 = vpop.eup %6063  ;;  %v4007_v17 = vadd.f32 1.0, %v6062_v2  ;;  %6083 = vpow2.f32 %v5070_v7  ;;  %v7891_v43 = vpop.f32.mrb[124].mxu0 }
 0x696   : > { %v6066_v18 = vpop.eup %6065  ;;  %6085 = vrcp.f32 %v4005_v14  ;;  %v4011_v4 = vadd.f32 1.0, %v6064_v51  ;;  %v7893_v36 = vpop.f32.mrb[140].mxu1 }
 0x697   : > { %v6068_v55 = vpop.eup %6067  ;;  %6087 = vrcp.f32 %v4007_v17  ;;  %v4013_v53 = vadd.f32 1.0, %v6066_v18  ;;  %v7895_v37 = vpop.f32.mrb[125].mxu0  ;;  %v5072_v17 = vmul.f32 -1.442695, %v7755_v28  ;;  %v5077_v28 = vmul.f32 -1.442695, %v7768_v60 }
 0x698   : > { %v6070_v6 = vpop.eup %6069  ;;  %6089 = vrcp.f32 %v4011_v4  ;;  %v4012_v9 = vadd.f32 1.0, %v6068_v55  ;;  %v7897_v46 = vpop.f32.mrb[141].mxu1  ;;  %v5076_v55 = vmul.f32 -1.442695, %v7762_v52  ;;  %v5083_v60 = vmul.f32 -1.442695, %v7778_v48 }
 0x699   : > { %v6072_v56 = vpop.eup %6071  ;;  %6091 = vrcp.f32 %v4013_v53  ;;  %v4014_v61 = vadd.f32 1.0, %v6070_v6  ;;  %v7899_v0 = vpop.f32.mrb[126].mxu0  ;;  %v5086_v48 = vmul.f32 -1.442695, %v7787_v11 }
 0x69a   : > { %v6074_v41 = vpop.eup %6073  ;;  %6093 = vrcp.f32 %v4012_v9  ;;  %v4018_v35 = vadd.f32 1.0, %v6072_v56  ;;  %v7901_v39 = vpop.f32.mrb[142].mxu1  ;;  %v5078_v9 = vmul.f32 -1.442695, %v7765_v19  ;;  %v5079_v19 = vmul.f32 -1.442695, %v7771_v8 }
 0x69b   : > { %v6076_v33 = vpop.eup %6075  ;;  %6095 = vrcp.f32 %v4014_v61  ;;  %v4020_v27 = vadd.f32 1.0, %v6074_v41  ;;  %v7903_v47 = vpop.f32.mrb[127].mxu0  ;;  %v2885_v8 = vsub.s32 4, %v7656_v54 }
 0x69c   : > { %v6078_v38 = vpop.eup %6077  ;;  %6097 = vrcp.f32 %v4018_v35  ;;  %v4019_v63 = vadd.f32 1.0, %v6076_v33  ;;  %v7905_v49 = vpop.f32.mrb[143].mxu1 }
 0x69d   : > { %v6080_v7 = vpop.eup %6079  ;;  %6099 = vrcp.f32 %v4020_v27  ;;  %v4021_v57 = vadd.f32 1.0, %v6078_v38  ;;  %v7909_v53 = vpop.f32.mrb[128].mxu0 }
 0x69e   : > { %v6082_v62 = vpop.eup %6081  ;;  %6101 = vrcp.f32 %v4019_v63  ;;  %v4025_v2 = vadd.f32 1.0, %v6080_v7  ;;  %v7913_v56 = vpop.f32.mrb[144].mxu1 }
 0x69f   : > { %v6084_v14 = vpop.eup %6083  ;;  %6103 = vrcp.f32 %v4021_v57  ;;  %v4027_v51 = vadd.f32 1.0, %v6082_v62  ;;  %v7915_v61 = vpop.f32.mrb[129].mxu0  ;;  %v5085_v62 = vmul.f32 -1.442695, %v7781_v50 }
 0x6a0   : > { %v6086_v18 = vpop.eup %6085  ;;  %6105 = vrcp.f32 %v4025_v2  ;;  %v4026_v4 = vadd.f32 1.0, %v6084_v14  ;;  %v7919_v35 = vpop.f32.mrb[145].mxu1  ;;  %v5084_v14 = vmul.f32 -1.442695, %v7784_v21  ;;  %v5092_v21 = vmul.f32 -1.442695, %v7799_v29 }
 0x6a1   : > { %v6088_v6 = vpop.eup %6087  ;;  %4341 = vst [vmem:[%s7719_s30 + $0x158] sm:$0xff] %v6086_v18  ;;  %6107 = vrcp.f32 %v4027_v51  ;;  %v7921_v52 = vpop.f32.mrb[130].mxu0  ;;  %v5090_v18 = vmul.f32 -1.442695, %v7796_v15  ;;  %v5091_v15 = vmul.f32 -1.442695, %v7802_v10 }
 0x6a2   : > { %v6090_v41 = vpop.eup %6089  ;;  %4343 = vst [vmem:[%s7719_s30 + $0x168] sm:$0xff] %v6088_v6  ;;  %6109 = vrcp.f32 %v4026_v4  ;;  %v7925_v27 = vpop.f32.mrb[146].mxu1  ;;  %v7949_v6 = vrot.slane %v7663_v24, %v2885_v8  ;;  %v5093_v24 = vmul.f32 -1.442695, %v7807_v12 }
 0x6a3   : > { %v6092_v33 = vpop.eup %6091  ;;  %4347 = vst [vmem:[%s7719_s30 + $0x188] sm:$0xff] %v6090_v41  ;;  %6111 = vpow2.f32 %v5072_v17  ;;  %v7927_v38 = vpop.f32.mrb[131].mxu0 }
 0x6a4   : > { %v6094_v63 = vpop.eup %6093  ;;  %4349 = vst [vmem:[%s7719_s30 + $0x198] sm:$0xff] %v6092_v33  ;;  %6113 = vpow2.f32 %v5076_v55  ;;  %v7931_v7 = vpop.f32.mrb[147].mxu1 }
 0x6a5   : > { %v6096_v57 = vpop.eup %6095  ;;  %4348 = vst [vmem:[%s7719_s30 + $0x190] sm:$0xff] %v6094_v63  ;;  %6115 = vpow2.f32 %v5078_v9  ;;  %v7942_v50 = vpop.f32.mrb[132].mxu0 }
 0x6a6   : > { %v6098_v2 = vpop.eup %6097  ;;  %4350 = vst [vmem:[%s7719_s30 + $0x1a0] sm:$0xff] %v6096_v57  ;;  %6117 = vpow2.f32 %v5077_v28  ;;  %v7944_v4 = vpop.f32.mrb[148].mxu1 }
 0x6a7   : > { %v6100_v51 = vpop.eup %6099  ;;  %4354 = vst [vmem:[%s7719_s30 + $0x1c0] sm:$0xff] %v6098_v2  ;;  %6119 = vpow2.f32 %v5079_v19  ;;  %v7951_v9 = vpop.f32.mrb[133].mxu0 }
 0x6a8   : > { %v6102_v17 = vpop.eup %6101  ;;  %4356 = vst [vmem:[%s7719_s30 + $0x1d0] sm:$0xff] %v6100_v51  ;;  %6121 = vpow2.f32 %v5083_v60  ;;  %v7953_v11 = vpop.f32.mrb[149].mxu1 }
 0x6a9   : > { %v6104_v55 = vpop.eup %6103  ;;  %4355 = vst [vmem:[%s7719_s30 + $0x1c8] sm:$0xff] %v6102_v17  ;;  %6123 = vpow2.f32 %v5085_v62  ;;  %v3484_v28 = vpop.f32.mrb[134].mxu0 }
 0x6aa   : > { %v6106_v41 = vpop.eup %6105  ;;  %4357 = vst [vmem:[%s7719_s30 + $0x1d8] sm:$0xff] %v6104_v55  ;;  %6125 = vpow2.f32 %v5084_v14  ;;  %v7957_v33 = vpop.f32.mrb[150].mxu1  ;;  %v7962_v29 = vadd.f32 %v3484_v28, %v7949_v6 }
 0x6ab   : > { %v6108_v19 = vpop.eup %6107  ;;  %4361 = vst [vmem:[%s7719_s30 + $0x1f8] sm:$0xff] %v6106_v41  ;;  %6127 = vpow2.f32 %v5086_v48  ;;  %v7964_v63 = vpop.f32.mrb[135].mxu0 }
 0x6ac   : > { %v7966_v60 = vpop.f32.mrb[151].mxu1  ;;  %v6110_v57 = vpop.eup %6109  ;;  %4363 = vst [vmem:[%s7719_s30 + $0x208] sm:$0xff] %v6108_v19  ;;  %6129 = vpow2.f32 %v5090_v18 }
 0x6ad   : > { %v6112_v62 = vpop.eup %6111  ;;  %4362 = vst [vmem:[%s7719_s30 + $0x200] sm:$0xff] %v6110_v57  ;;  %6131 = vpow2.f32 %v5092_v21  ;;  %v3490_v48 = vpop.f32.mrb[136].mxu0 }
 0x6ae   : > { %v6114_v10 = vpop.eup %6113  ;;  %v4028_v8 = vadd.f32 1.0, %v6112_v62  ;;  %6133 = vpow2.f32 %v5091_v15  ;;  %v7971_v41 = vadd.f32 %v3490_v48, %v7949_v6  ;;  %v7973_v18 = vpop.f32.mrb[137].mxu0 }
 0x6af   : > { %v6116_v2 = vpop.eup %6115  ;;  %v4032_v14 = vadd.f32 1.0, %v6114_v10  ;;  %6135 = vpow2.f32 %v5093_v24  ;;  %v3494_v19 = vpop.f32.mrb[138].mxu0 }
 0x6b0   : > { %v6118_v12 = vpop.eup %6117  ;;  %6137 = vrcp.f32 %v4028_v8  ;;  %v4034_v51 = vadd.f32 1.0, %v6116_v2  ;;  %8342 = vst [vmem:[#allocation19_spill] sm:$0xff] %v7971_v41  ;;  %v7976_v24 = vadd.f32 %v3494_v19, %v7949_v6  ;;  %v7978_v62 = vpop.f32.mrb[139].mxu0 }
 0x6b1   : > { %v6120_v17 = vpop.eup %6119  ;;  %6139 = vrcp.f32 %v4032_v14  ;;  %v4033_v55 = vadd.f32 1.0, %v6118_v12 }
 0x6b2   : > { %v6122_v28 = vpop.eup %6121  ;;  %6141 = vrcp.f32 %v4034_v51  ;;  %v4035_v21 = vadd.f32 1.0, %v6120_v17  ;;  %8343 = vst [vmem:[#allocation20_spill] sm:$0xff] %v7976_v24  ;;  %v2889_v51 = vsub.s32 5, %v7656_v54 }
 0x6b3   : > { %v6124_v15 = vpop.eup %6123  ;;  %6143 = vrcp.f32 %v4033_v55  ;;  %v4039_v57 = vadd.f32 1.0, %v6122_v28 }
 0x6b4   : > { %v6126_v10 = vpop.eup %6125  ;;  %6145 = vrcp.f32 %v4035_v21  ;;  %v4041_v8 = vadd.f32 1.0, %v6124_v15  ;;  %v5097_v15 = vmul.f32 -1.442695, %v7814_v32 }
 0x6b5   : > { %v6128_v2 = vpop.eup %6127  ;;  %6147 = vrcp.f32 %v4039_v57  ;;  %v4040_v14 = vadd.f32 1.0, %v6126_v10  ;;  %v3500_v24 = vpop.f32.mrb[140].mxu0 }
 0x6b6   : > { %v6130_v12 = vpop.eup %6129  ;;  %6149 = vrcp.f32 %v4041_v8  ;;  %v4042_v48 = vadd.f32 1.0, %v6128_v2  ;;  %v7983_v57 = vadd.f32 %v3500_v24, %v7949_v6  ;;  %v7985_v10 = vpop.f32.mrb[141].mxu0 }
 0x6b7   : > { %v6132_v17 = vpop.eup %6131  ;;  %6151 = vrcp.f32 %v4040_v14  ;;  %v4046_v55 = vadd.f32 1.0, %v6130_v12  ;;  %v5099_v14 = vmul.f32 -1.442695, %v7817_v31  ;;  %v7991_v12 = vld [vmem:[%s8341_s14] sm:$0xff]  ;;  %v3504_v32 = vpop.f32.mrb[142].mxu0 }
 0x6b8   : > { %v6134_v28 = vpop.eup %6133  ;;  %6153 = vrcp.f32 %v4042_v48  ;;  %v4048_v19 = vadd.f32 1.0, %v6132_v17  ;;  %v7994_v48 = vrot.slane %v7991_v12, %v2889_v51  ;;  %v5098_v17 = vmul.f32 -1.442695, %v7820_v42  ;;  %v3506_v31 = vpop.f32.mrb[143].mxu0 }
 0x6b9   : > { %v6136_v41 = vpop.eup %6135  ;;  %6155 = vrcp.f32 %v4046_v55  ;;  %v4047_v21 = vadd.f32 1.0, %v6134_v28  ;;  %v5100_v28 = vmul.f32 -1.442695, %v7826_v45  ;;  %v5104_v42 = vmul.f32 -1.442695, %v7835_v3 }
 0x6ba   : > { %v6138_v8 = vpop.eup %6137  ;;  %6157 = vrcp.f32 %v4048_v19  ;;  %v4049_v2 = vadd.f32 1.0, %v6136_v41  ;;  %v7999_v41 = vadd.f32 %v3504_v32, %v7949_v6  ;;  %v8004_v51 = vadd.f32 %v3506_v31, %v7994_v48 }
 0x6bb   : > { %v6140_v24 = vpop.eup %6139  ;;  %4364 = vst [vmem:[%s7719_s30 + $0x210] sm:$0xff] %v6138_v8  ;;  %6159 = vrcp.f32 %v4047_v21  ;;  %v5106_v8 = vmul.f32 -1.442695, %v7838_v25  ;;  %v5105_v45 = vmul.f32 -1.442695, %v7843_v26  ;;  %v3451_v25 = vadd.f32 %v7872_v1, %v7949_v6 }
 0x6bc   : > { %v6142_v55 = vpop.eup %6141  ;;  %4368 = vst [vmem:[%s7719_s30 + $0x230] sm:$0xff] %v6140_v24  ;;  %6161 = vrcp.f32 %v4049_v2  ;;  %v5107_v24 = vmul.f32 -1.442695, %v7846_v22  ;;  %v5111_v3 = vmul.f32 -1.442695, %v7852_v40 }
 0x6bd   : > { %v6144_v19 = vpop.eup %6143  ;;  %4370 = vst [vmem:[%s7719_s30 + $0x240] sm:$0xff] %v6142_v55  ;;  %6163 = vpow2.f32 %v5097_v15  ;;  %v3510_v15 = vpop.f32.mrb[144].mxu0  ;;  %v5113_v22 = vmul.f32 -1.442695, %v7858_v23  ;;  %v5112_v40 = vmul.f32 -1.442695, %v7864_v34 }
 0x6be   : > { %v6146_v21 = vpop.eup %6145  ;;  %4369 = vst [vmem:[%s7719_s30 + $0x238] sm:$0xff] %v6144_v19  ;;  %6165 = vpow2.f32 %v5099_v14  ;;  %v8019_v14 = vadd.f32 %v3510_v15, %v7949_v6  ;;  %v3512_v26 = vpop.f32.mrb[145].mxu0  ;;  %v5114_v23 = vmul.f32 -1.442695, %v7867_v30  ;;  %v2893_v15 = vsub.s32 6, %v7656_v54 }
 0x6bf   : > { %v6148_v32 = vpop.eup %6147  ;;  %4371 = vst [vmem:[%s7719_s30 + $0x248] sm:$0xff] %v6146_v21  ;;  %6167 = vpow2.f32 %v5098_v17  ;;  %v8024_v55 = vadd.f32 %v3512_v26, %v7994_v48 }
 0x6c0   : > { %v6150_v2 = vpop.eup %6149  ;;  %4375 = vst [vmem:[%s7719_s30 + $0x268] sm:$0xff] %v6148_v32  ;;  %6169 = vpow2.f32 %v5100_v28  ;;  %v3514_v28 = vpop.f32.mrb[146].mxu0 }
 0x6c1   : > { %v6152_v31 = vpop.eup %6151  ;;  %4377 = vst [vmem:[%s7719_s30 + $0x278] sm:$0xff] %v6150_v2  ;;  %6171 = vpow2.f32 %v5104_v42  ;;  %v8029_v1 = vadd.f32 %v3514_v28, %v7949_v6  ;;  %v3516_v42 = vpop.f32.mrb[147].mxu0 }
 0x6c2   : > { %v6154_v17 = vpop.eup %6153  ;;  %4376 = vst [vmem:[%s7719_s30 + $0x270] sm:$0xff] %v6152_v31  ;;  %6173 = vpow2.f32 %v5106_v8  ;;  %v8034_v8 = vadd.f32 %v3516_v42, %v7994_v48 }
 0x6c3   : > { %v6156_v19 = vpop.eup %6155  ;;  %4378 = vst [vmem:[%s7719_s30 + $0x280] sm:$0xff] %v6154_v17  ;;  %6175 = vpow2.f32 %v5105_v45  ;;  %v5010_v45 = vmul.f32 -1.442695, %v3451_v25 }
 0x6c4   : > { %v6158_v21 = vpop.eup %6157  ;;  %4382 = vst [vmem:[%s7719_s30 + $0x2a0] sm:$0xff] %v6156_v19  ;;  %6177 = vpow2.f32 %v5107_v24 }
 0x6c5   : > { %v6160_v32 = vpop.eup %6159  ;;  %4384 = vst [vmem:[%s7719_s30 + $0x2b0] sm:$0xff] %v6158_v21  ;;  %6179 = vpow2.f32 %v5111_v3  ;;  %v3520_v30 = vpop.f32.mrb[148].mxu0  ;;  %v8056_v21 = vrot.slane %v7991_v12, %v2893_v15 }
 0x6c6   : > { %v6162_v34 = vpop.eup %6161  ;;  %4383 = vst [vmem:[%s7719_s30 + $0x2a8] sm:$0xff] %v6160_v32  ;;  %6181 = vpow2.f32 %v5113_v22  ;;  %v8043_v3 = vadd.f32 %v3520_v30, %v7949_v6  ;;  %v3522_v25 = vpop.f32.mrb[149].mxu0 }
 0x6c7   : > { %v6164_v2 = vpop.eup %6163  ;;  %4385 = vst [vmem:[%s7719_s30 + $0x2b8] sm:$0xff] %v6162_v34  ;;  %6183 = vpow2.f32 %v5112_v40  ;;  %v8053_v28 = vadd.f32 %v3522_v25, %v7994_v48  ;;  %v3524_v19 = vpop.f32.mrb[150].mxu0 }
 0x6c8   : > { %v6166_v24 = vpop.eup %6165  ;;  %v4053_v31 = vadd.f32 1.0, %v6164_v2  ;;  %6185 = vpow2.f32 %v5114_v23  ;;  %v8059_v23 = vadd.f32 %v3524_v19, %v7949_v6  ;;  %v3526_v32 = vpop.f32.mrb[151].mxu0 }
 0x6c9   : > { %v6168_v26 = vpop.eup %6167  ;;  %v4055_v17 = vadd.f32 1.0, %v6166_v24  ;;  %6187 = vpow2.f32 %v5010_v45 }
 0x6ca   : > { %v6170_v54 = vpop.eup %6169  ;;  %6189 = vrcp.f32 %v4053_v31  ;;  %v4054_v22 = vadd.f32 1.0, %v6168_v26 }
 0x6cb   : > { %v6172_v40 = vpop.eup %6171  ;;  %6191 = vrcp.f32 %v4055_v17  ;;  %v4056_v42 = vadd.f32 1.0, %v6170_v54 }
 0x6cc   : > { %6475 = shalt.err (!%p6472_p9)
}
 0x6cd   : > { %s6476_s23 = scalar_lea.hbm %s8048_s19, 2048  ;;  %s6480_s15 = scalar_lea.hbm %s8344_s22, 4096 }
 0x6ce   : > { %p6477_p1 = scmp.ne.s32.totalorder %s8048_s19, %s6476_s23  ;;  %p6481_p13 = scmp.lt.u32.totalorder %s8048_s19, %s8344_s22 }
 0x6cf   : > { %p6482_p2 = scmp.lt.u32.totalorder %s6480_s15, %s6476_s23  ;;  %p6484_p6 = scmp.lt.u32.totalorder %s6476_s23, %s8048_s19 }
 0x6d0   : > { %p6478_p0 = pnand %p6477_p1, %p6763_p12 }
 0x6d1   : > { %p6483_p4 = por %p6482_p2, %p6481_p13 }
 0x6d2   : > { %p6479_p5 = pneg %p6478_p0 }
 0x6d3   : > { %p6485_p8 = por %p6484_p6, %p6483_p4 }
 0x6d5   : > { %p6486_p10 = pnand %p6485_p8, %p6479_p5 }
 0x6d7   : > { %6489 = shalt.err (!%p6486_p10)
}
 0x6d8   : > { %s6574_s0 = smov 128   ;;  %s6575_s1 = smov 8   ;;  %v6174_v12 = vpop.eup %6173  ;;  %6193 = vrcp.f32 %v4054_v22  ;;  %v4060_v45 = vadd.f32 1.0, %v6172_v40  ;;  %v8086_v34 = vadd.f32 %v3526_v32, %v7994_v48  ;;  %v3572_v17 = vadd.f32 %v7874_v13, %v8056_v21 }
 0x6d9   : > { %5621 = dma.vmem_to_hbm [thread:$0]  (%p6763_p12), %s8050_s18, 2048, %s8048_s19, %s4609_s13, %s6574_s0, %s6574_s0, %s6575_s1   ;;  %v6176_v2 = vpop.eup %6175  ;;  %6195 = vrcp.f32 %v4056_v42  ;;  %v4062_v15 = vadd.f32 1.0, %v6174_v12  ;;  %v3453_v22 = vadd.f32 %v7877_v44, %v7994_v48  ;;  %v3564_v42 = vadd.f32 %v7879_v16, %v8056_v21 }
 0x6da   : > { %v6178_v24 = vpop.eup %6177  ;;  %6197 = vrcp.f32 %v4060_v45  ;;  %v4061_v31 = vadd.f32 1.0, %v6176_v2  ;;  %v3455_v45 = vadd.f32 %v7882_v20, %v7949_v6  ;;  %v3575_v44 = vadd.f32 %v7884_v59, %v8056_v21  ;;  %s5613_s18 = smul.u32 14336, %s6690_s28  ;;  %s4623_s19 = sshll.u32 %s7719_s30, 4  ;;  %s8233_s19 = int_to_ptr.vmem [resolvable:$true] %s4623_s19 }
 0x6db   : > { %v6180_v30 = vpop.eup %6179  ;;  %6199 = vrcp.f32 %v4062_v15  ;;  %v4063_v26 = vadd.f32 1.0, %v6178_v24  ;;  %v5026_v15 = vmul.f32 -1.442695, %v3572_v17  ;;  %v5011_v16 = vmul.f32 -1.442695, %v3453_v22  ;;  %s8347_s20 = sld [smem:[#allocation26_spill]] }
 0x6dc   : > { %v6182_v25 = vpop.eup %6181  ;;  %6201 = vrcp.f32 %v4061_v31  ;;  %v4067_v54 = vadd.f32 1.0, %v6180_v30  ;;  %v3457_v30 = vadd.f32 %v7887_v5, %v7994_v48  ;;  %v5012_v20 = vmul.f32 -1.442695, %v3564_v42  ;;  %s4604_s28 = scalar_lea.sflag [#allocation4], %s6814_s29  ;;  %s6490_s15 = scalar_lea.vmem %s8233_s19, 14336 }
 0x6dd   : > { %v6184_v19 = vpop.eup %6183  ;;  %6203 = vrcp.f32 %v4063_v26  ;;  %v4069_v40 = vadd.f32 1.0, %v6182_v25  ;;  %v3567_v25 = vadd.f32 %v7889_v58, %v8056_v21  ;;  %v5017_v59 = vmul.f32 -1.442695, %v3455_v45  ;;  %p6491_p11 = scmp.ne.s32.totalorder %s8233_s19, %s6490_s15  ;;  %s6576_s24 = smov [#allocation7]  }
 0x6de   : > { %v6186_v32 = vpop.eup %6185  ;;  %6205 = vrcp.f32 %v4067_v54  ;;  %v4068_v12 = vadd.f32 1.0, %v6184_v19  ;;  %v3461_v54 = vadd.f32 %v7891_v43, %v7949_v6  ;;  %v5033_v5 = vmul.f32 -1.442695, %v3575_v44  ;;  %s6494_s26 = sshll.u32 %s6576_s24, 4  ;;  %s6495_s26 = int_to_ptr.vmem [resolvable:$false] %s6494_s26 }
 0x6df   : > { %v6188_v13 = vpop.eup %6187  ;;  %6207 = vrcp.f32 %v4069_v40  ;;  %v4070_v2 = vadd.f32 1.0, %v6186_v32  ;;  %v3588_v19 = vadd.f32 %v7893_v36, %v8056_v21  ;;  %v5018_v58 = vmul.f32 -1.442695, %v3457_v30  ;;  %p6492_p3 = pnand %p6491_p11, %p6763_p12  ;;  %s6496_s0 = scalar_lea.vmem %s6495_s26, 28672 }
 0x6e0   : > { %v6190_v24 = vpop.eup %6189  ;;  %6209 = vrcp.f32 %v4068_v12  ;;  %v3966_v31 = vadd.f32 1.0, %v6188_v13  ;;  %v3463_v42 = vadd.f32 %v7895_v37, %v7994_v48  ;;  %v5019_v43 = vmul.f32 -1.442695, %v3567_v25  ;;  %p6497_p9 = scmp.lt.s32.totalorder %s8233_s19, %s6495_s26  ;;  %p6498_p1 = scmp.lt.s32.totalorder %s6496_s0, %s6490_s15 }
 0x6e1   : > { %v6192_v26 = vpop.eup %6191  ;;  %4389 = vst [vmem:[%s7719_s30 + $0x2d8] sm:$0xff] %v6190_v24  ;;  %6211 = vrcp.f32 %v4070_v2  ;;  %v3580_v12 = vadd.f32 %v7897_v46, %v8056_v21  ;;  %v5024_v36 = vmul.f32 -1.442695, %v3461_v54  ;;  %v3465_v13 = vadd.f32 %v7899_v0, %v7949_v6  ;;  %s8230_s16 = scalar_lea.hbm %s8347_s20, %s5613_s18  ;;  %p6493_p7 = pneg %p6492_p3 }
 0x6e2   : > { %v6194_v17 = vpop.eup %6193  ;;  %4391 = vst [vmem:[%s7719_s30 + $0x2e8] sm:$0xff] %v6192_v26  ;;  %6213 = vrcp.f32 %v3966_v31  ;;  %v5054_v37 = vmul.f32 -1.442695, %v3588_v19  ;;  %v5025_v46 = vmul.f32 -1.442695, %v3463_v42  ;;  %p6499_p0 = por %p6498_p1, %p6497_p9 }
 0x6e3   : > { %v6196_v22 = vpop.eup %6195  ;;  %4390 = vst [vmem:[%s7719_s30 + $0x2e0] sm:$0xff] %v6194_v17  ;;  %6215 = vpow2.f32 %v5026_v15  ;;  %v3591_v15 = vadd.f32 %v7901_v39, %v8056_v21  ;;  %v5040_v31 = vmul.f32 -1.442695, %v3580_v12  ;;  %v5031_v0 = vmul.f32 -1.442695, %v3465_v13 }
 0x6e4   : > { %v6198_v40 = vpop.eup %6197  ;;  %4392 = vst [vmem:[%s7719_s30 + $0x2f0] sm:$0xff] %v6196_v22  ;;  %6217 = vpow2.f32 %v5011_v16  ;;  %p6500_p5 = pnand %p6499_p0, %p6493_p7 }
 0x6e5   : > { %v6200_v32 = vpop.eup %6199  ;;  %4396 = vst [vmem:[%s7719_s30 + $0x310] sm:$0xff] %v6198_v40  ;;  %6219 = vpow2.f32 %v5012_v20  ;;  %v5061_v26 = vmul.f32 -1.442695, %v3591_v15 }
 0x6e6   : > { %v6202_v45 = vpop.eup %6201  ;;  %4398 = vst [vmem:[%s7719_s30 + $0x320] sm:$0xff] %v6200_v32  ;;  %6221 = vpow2.f32 %v5017_v59 }
 0x6e7   : > { %v6204_v2 = vpop.eup %6203  ;;  %4397 = vst [vmem:[%s7719_s30 + $0x318] sm:$0xff] %v6202_v45  ;;  %6223 = vpow2.f32 %v5033_v5 }
 0x6e8   : > { %v6206_v44 = vpop.eup %6205  ;;  %4399 = vst [vmem:[%s7719_s30 + $0x328] sm:$0xff] %v6204_v2  ;;  %6225 = vpow2.f32 %v5018_v58  ;;  %v3467_v2 = vadd.f32 %v7903_v47, %v7994_v48 }
 0x6e9   : > { %v6208_v24 = vpop.eup %6207  ;;  %4403 = vst [vmem:[%s7719_s30 + $0x348] sm:$0xff] %v6206_v44  ;;  %6227 = vpow2.f32 %v5019_v43  ;;  %v3583_v44 = vadd.f32 %v7905_v49, %v8056_v21  ;;  %v3473_v49 = vadd.f32 %v7915_v61, %v7994_v48 }
 0x6ea   : > { %v6210_v16 = vpop.eup %6209  ;;  %4405 = vst [vmem:[%s7719_s30 + $0x358] sm:$0xff] %v6208_v24  ;;  %6229 = vpow2.f32 %v5024_v36 }
 0x6eb   : > { %v6212_v30 = vpop.eup %6211  ;;  %4404 = vst [vmem:[%s7719_s30 + $0x350] sm:$0xff] %v6210_v16  ;;  %6231 = vpow2.f32 %v5054_v37 }
 0x6ec   : > { %v6214_v20 = vpop.eup %6213  ;;  %4406 = vst [vmem:[%s7719_s30 + $0x360] sm:$0xff] %v6212_v30  ;;  %6233 = vpow2.f32 %v5025_v46  ;;  %v3604_v30 = vadd.f32 %v7913_v56, %v8056_v21 }
 0x6ed   : > { %v6216_v39 = vpop.eup %6215  ;;  %4302 = vst [vmem:[%s7719_s30 + $0x20] sm:$0xff] %v6214_v20  ;;  %6235 = vpow2.f32 %v5040_v31  ;;  %v3471_v31 = vadd.f32 %v7909_v53, %v7949_v6  ;;  %v5032_v20 = vmul.f32 -1.442695, %v3467_v2  ;;  %v5047_v53 = vmul.f32 -1.442695, %v3583_v44 }
 0x6ee   : > { %v6218_v25 = vpop.eup %6217  ;;  %v3982_v17 = vadd.f32 1.0, %v6216_v39  ;;  %6237 = vpow2.f32 %v5031_v0  ;;  %v5082_v61 = vmul.f32 -1.442695, %v3604_v30 }
 0x6ef   : > { %v6220_v59 = vpop.eup %6219  ;;  %v3967_v54 = vadd.f32 1.0, %v6218_v25  ;;  %6239 = vpow2.f32 %v5061_v26  ;;  %v5038_v56 = vmul.f32 -1.442695, %v3471_v31 }
 0x6f0   : > { %v6222_v22 = vpop.eup %6221  ;;  %6241 = vrcp.f32 %v3982_v17  ;;  %v3968_v5 = vadd.f32 1.0, %v6220_v59  ;;  %v3596_v17 = vadd.f32 %v7919_v35, %v8056_v21  ;;  %v5039_v35 = vmul.f32 -1.442695, %v3473_v49 }
 0x6f1   : > { %v6224_v19 = vpop.eup %6223  ;;  %6243 = vrcp.f32 %v3967_v54  ;;  %v3973_v40 = vadd.f32 1.0, %v6222_v22  ;;  %v3475_v54 = vadd.f32 %v7921_v52, %v7949_v6 }
 0x6f2   : > { %v6226_v58 = vpop.eup %6225  ;;  %6245 = vrcp.f32 %v3968_v5  ;;  %v3989_v42 = vadd.f32 1.0, %v6224_v19  ;;  %v3607_v5 = vadd.f32 %v7925_v27, %v8056_v21  ;;  %v5068_v52 = vmul.f32 -1.442695, %v3596_v17 }
 0x6f3   : > { %v6228_v32 = vpop.eup %6227  ;;  %6247 = vrcp.f32 %v3973_v40  ;;  %v3974_v43 = vadd.f32 1.0, %v6226_v58  ;;  %v3477_v40 = vadd.f32 %v7927_v38, %v7994_v48  ;;  %v5045_v27 = vmul.f32 -1.442695, %v3475_v54 }
 0x6f4   : > { %v6230_v12 = vpop.eup %6229  ;;  %6249 = vrcp.f32 %v3989_v42  ;;  %v3975_v45 = vadd.f32 1.0, %v6228_v32  ;;  %v3599_v42 = vadd.f32 %v7931_v7, %v8056_v21  ;;  %v5089_v38 = vmul.f32 -1.442695, %v3607_v5 }
 0x6f5   : > { %v6232_v36 = vpop.eup %6231  ;;  %6251 = vrcp.f32 %v3974_v43  ;;  %v3980_v13 = vadd.f32 1.0, %v6230_v12  ;;  %v3481_v43 = vadd.f32 %v7942_v50, %v7949_v6  ;;  %v5046_v7 = vmul.f32 -1.442695, %v3477_v40 }
 0x6f6   : > { %v6234_v37 = vpop.eup %6233  ;;  %6253 = vrcp.f32 %v3975_v45  ;;  %v4010_v15 = vadd.f32 1.0, %v6232_v36  ;;  %v3620_v45 = vadd.f32 %v7944_v4, %v8056_v21  ;;  %v5075_v50 = vmul.f32 -1.442695, %v3599_v42 }
 0x6f7   : > { %v6236_v46 = vpop.eup %6235  ;;  %6255 = vrcp.f32 %v3980_v13  ;;  %v3981_v24 = vadd.f32 1.0, %v6234_v37  ;;  %v3483_v13 = vadd.f32 %v7951_v9, %v7994_v48  ;;  %v5052_v37 = vmul.f32 -1.442695, %v3481_v43 }
 0x6f8   : > { %v6238_v16 = vpop.eup %6237  ;;  %6257 = vrcp.f32 %v4010_v15  ;;  %v3996_v0 = vadd.f32 1.0, %v6236_v46  ;;  %v5110_v4 = vmul.f32 -1.442695, %v3620_v45 }
 0x6f9   : > { %v6240_v47 = vpop.eup %6239  ;;  %6259 = vrcp.f32 %v3981_v24  ;;  %v3987_v26 = vadd.f32 1.0, %v6238_v16  ;;  %v5053_v46 = vmul.f32 -1.442695, %v3483_v13 }
 0x6fa   : > { %v6242_v39 = vpop.eup %6241  ;;  %6261 = vrcp.f32 %v3996_v0  ;;  %v4017_v25 = vadd.f32 1.0, %v6240_v47 }
 0x6fb   : > { %v6244_v59 = vpop.eup %6243  ;;  %4318 = vst [vmem:[%s7719_s30 + $0xa0] sm:$0xff] %v6242_v39  ;;  %6263 = vrcp.f32 %v3987_v26 }
 0x6fc   : > { %v6246_v22 = vpop.eup %6245  ;;  %4303 = vst [vmem:[%s7719_s30 + $0x28] sm:$0xff] %v6244_v59  ;;  %6265 = vrcp.f32 %v4017_v25 }
 0x6fd   : > { %v6248_v19 = vpop.eup %6247  ;;  %4304 = vst [vmem:[%s7719_s30 + $0x30] sm:$0xff] %v6246_v22  ;;  %6267 = vpow2.f32 %v5032_v20 }
 0x6fe   : > { %v6250_v58 = vpop.eup %6249  ;;  %4309 = vst [vmem:[%s7719_s30 + $0x58] sm:$0xff] %v6248_v19  ;;  %6269 = vpow2.f32 %v5047_v53 }
 0x6ff   : > { %v6252_v32 = vpop.eup %6251  ;;  %4325 = vst [vmem:[%s7719_s30 + $0xd8] sm:$0xff] %v6250_v58  ;;  %6271 = vpow2.f32 %v5038_v56  ;;  %v3623_v58 = vadd.f32 %v7957_v33, %v8056_v21  ;;  %v5059_v33 = vmul.f32 -1.442695, %v7962_v29  ;;  %v3497_v29 = vadd.f32 %v7978_v62, %v7994_v48 }
 0x700   : > { %v6254_v12 = vpop.eup %6253  ;;  %4310 = vst [vmem:[%s7719_s30 + $0x60] sm:$0xff] %v6252_v32  ;;  %6273 = vpow2.f32 %v5082_v61  ;;  %v3612_v61 = vadd.f32 %v7953_v11, %v8056_v21  ;;  %v3487_v32 = vadd.f32 %v7964_v63, %v7994_v48  ;;  %v3493_v63 = vadd.f32 %v7973_v18, %v7994_v48 }
 0x701   : > { %v6256_v36 = vpop.eup %6255  ;;  %4311 = vst [vmem:[%s7719_s30 + $0x68] sm:$0xff] %v6254_v12  ;;  %6275 = vpow2.f32 %v5039_v35  ;;  %v3615_v12 = vadd.f32 %v7966_v60, %v8056_v21 }
 0x702   : > { %v6258_v2 = vpop.eup %6257  ;;  %4316 = vst [vmem:[%s7719_s30 + $0x90] sm:$0xff] %v6256_v36  ;;  %6277 = vpow2.f32 %v5068_v52  ;;  %v5096_v43 = vmul.f32 -1.442695, %v3612_v61 }
 0x703   : > { %v6260_v6 = vpop.eup %6259  ;;  %4346 = vst [vmem:[%s7719_s30 + $0x180] sm:$0xff] %v6258_v2  ;;  %6279 = vpow2.f32 %v5045_v27  ;;  %v5060_v2 = vmul.f32 -1.442695, %v3487_v32  ;;  %v5103_v21 = vmul.f32 -1.442695, %v3615_v12 }
 0x704   : > { %v6262_v15 = vpop.eup %6261  ;;  %4317 = vst [vmem:[%s7719_s30 + $0x98] sm:$0xff] %v6260_v6  ;;  %6281 = vpow2.f32 %v5089_v38  ;;  %v8345_v6 = vld [vmem:[#allocation19_spill] sm:$0xff] }
 0x705   : > { %v6264_v44 = vpop.eup %6263  ;;  %4332 = vst [vmem:[%s7719_s30 + $0x110] sm:$0xff] %v6262_v15  ;;  %6283 = vpow2.f32 %v5046_v7  ;;  %v5117_v7 = vmul.f32 -1.442695, %v3623_v58  ;;  %v5067_v15 = vmul.f32 -1.442695, %v3493_v63 }
 0x706   : > { %v6266_v24 = vpop.eup %6265  ;;  %4323 = vst [vmem:[%s7719_s30 + $0xc8] sm:$0xff] %v6264_v44  ;;  %6285 = vpow2.f32 %v5075_v50  ;;  %v5101_v63 = vmul.f32 -1.442695, %v8029_v1 }
 0x707   : > { %v6268_v9 = vpop.eup %6267  ;;  %4353 = vst [vmem:[%s7719_s30 + $0x1b8] sm:$0xff] %v6266_v24  ;;  %6287 = vpow2.f32 %v5052_v37  ;;  %v5066_v37 = vmul.f32 -1.442695, %v8345_v6 }
 0x708   : > { %v6270_v31 = vpop.eup %6269  ;;  %v3988_v16 = vadd.f32 1.0, %v6268_v9  ;;  %6289 = vpow2.f32 %v5110_v4  ;;  %v3503_v4 = vadd.f32 %v7985_v10, %v7994_v48  ;;  %v5074_v9 = vmul.f32 -1.442695, %v3497_v29 }
 0x709   : > { %v6272_v0 = vpop.eup %6271  ;;  %v4003_v30 = vadd.f32 1.0, %v6270_v31  ;;  %6291 = vpow2.f32 %v5053_v46  ;;  %v8346_v46 = vld [vmem:[#allocation20_spill] sm:$0xff]  ;;  %v5115_v29 = vmul.f32 -1.442695, %v8059_v23 }
 0x70a   : > { %v6274_v47 = vpop.eup %6273  ;;  %6293 = vrcp.f32 %v3988_v16  ;;  %v3994_v26 = vadd.f32 1.0, %v6272_v0  ;;  %v5073_v62 = vmul.f32 -1.442695, %v8346_v46  ;;  %v5080_v16 = vmul.f32 -1.442695, %v7983_v57 }
 0x70b   : > { %v6276_v20 = vpop.eup %6275  ;;  %6295 = vrcp.f32 %v4003_v30  ;;  %v4038_v49 = vadd.f32 1.0, %v6274_v47  ;;  %v5081_v10 = vmul.f32 -1.442695, %v3503_v4  ;;  %v5087_v30 = vmul.f32 -1.442695, %v7999_v41 }
 0x70c   : > { %v6278_v39 = vpop.eup %6277  ;;  %6297 = vrcp.f32 %v3994_v26  ;;  %v3995_v25 = vadd.f32 1.0, %v6276_v20  ;;  %v5088_v26 = vmul.f32 -1.442695, %v8004_v51 }
 0x70d   : > { %v6280_v53 = vpop.eup %6279  ;;  %6299 = vrcp.f32 %v4038_v49  ;;  %v4024_v17 = vadd.f32 1.0, %v6278_v39 }
 0x70e   : > { %v6282_v59 = vpop.eup %6281  ;;  %6301 = vrcp.f32 %v3995_v25  ;;  %v4001_v56 = vadd.f32 1.0, %v6280_v53 }
 0x70f   : > { %v6284_v54 = vpop.eup %6283  ;;  %6303 = vrcp.f32 %v4024_v17  ;;  %v4045_v22 = vadd.f32 1.0, %v6282_v59 }
 0x710   : > { %v6286_v5 = vpop.eup %6285  ;;  %6305 = vrcp.f32 %v4001_v56  ;;  %v4002_v19 = vadd.f32 1.0, %v6284_v54 }
 0x711   : > { %v6288_v35 = vpop.eup %6287  ;;  %6307 = vrcp.f32 %v4045_v22  ;;  %v4031_v40 = vadd.f32 1.0, %v6286_v5 }
 0x712   : > { %v6290_v52 = vpop.eup %6289  ;;  %6309 = vrcp.f32 %v4002_v19  ;;  %v4008_v42 = vadd.f32 1.0, %v6288_v35 }
 0x713   : > { %v6292_v27 = vpop.eup %6291  ;;  %6311 = vrcp.f32 %v4031_v40  ;;  %v4066_v11 = vadd.f32 1.0, %v6290_v52 }
 0x714   : > { %v6294_v38 = vpop.eup %6293  ;;  %6313 = vrcp.f32 %v4008_v42  ;;  %v4009_v45 = vadd.f32 1.0, %v6292_v27 }
 0x715   : > { %v6296_v36 = vpop.eup %6295  ;;  %4324 = vst [vmem:[%s7719_s30 + $0xd0] sm:$0xff] %v6294_v38  ;;  %6315 = vrcp.f32 %v4066_v11  ;;  %v5094_v38 = vmul.f32 -1.442695, %v8019_v14  ;;  %v5108_v14 = vmul.f32 -1.442695, %v8043_v3 }
 0x716   : > { %v6298_v13 = vpop.eup %6297  ;;  %4339 = vst [vmem:[%s7719_s30 + $0x148] sm:$0xff] %v6296_v36  ;;  %6317 = vrcp.f32 %v4009_v45  ;;  %v5095_v36 = vmul.f32 -1.442695, %v8024_v55  ;;  %v5109_v55 = vmul.f32 -1.442695, %v8053_v28 }
 0x717   : > { %v6300_v60 = vpop.eup %6299  ;;  %4330 = vst [vmem:[%s7719_s30 + $0x100] sm:$0xff] %v6298_v13  ;;  %6319 = vpow2.f32 %v5096_v43 }
 0x718   : > { %v6302_v50 = vpop.eup %6301  ;;  %4374 = vst [vmem:[%s7719_s30 + $0x260] sm:$0xff] %v6300_v60  ;;  %6321 = vpow2.f32 %v5059_v33 }
 0x719   : > { %v6304_v18 = vpop.eup %6303  ;;  %4331 = vst [vmem:[%s7719_s30 + $0x108] sm:$0xff] %v6302_v50  ;;  %6323 = vpow2.f32 %v5117_v7  ;;  %v5116_v50 = vmul.f32 -1.442695, %v8086_v34 }
 0x71a   : > { %v6306_v44 = vpop.eup %6305  ;;  %4360 = vst [vmem:[%s7719_s30 + $0x1f0] sm:$0xff] %v6304_v18  ;;  %6325 = vpow2.f32 %v5060_v2  ;;  %v5102_v2 = vmul.f32 -1.442695, %v8034_v8 }
 0x71b   : > { %v6308_v24 = vpop.eup %6307  ;;  %4337 = vst [vmem:[%s7719_s30 + $0x138] sm:$0xff] %v6306_v44  ;;  %6327 = vpow2.f32 %v5103_v21 }
 0x71c   : > { %v6310_v31 = vpop.eup %6309  ;;  %4381 = vst [vmem:[%s7719_s30 + $0x298] sm:$0xff] %v6308_v24  ;;  %6329 = vpow2.f32 %v5066_v37 }
 0x71d   : > { %v6312_v0 = vpop.eup %6311  ;;  %4338 = vst [vmem:[%s7719_s30 + $0x140] sm:$0xff] %v6310_v31  ;;  %6331 = vpow2.f32 %v5067_v15 }
 0x71e   : > { %v6314_v48 = vpop.eup %6313  ;;  %4367 = vst [vmem:[%s7719_s30 + $0x228] sm:$0xff] %v6312_v0  ;;  %6333 = vpow2.f32 %v5073_v62 }
 0x71f   : > { %v6316_v47 = vpop.eup %6315  ;;  %4344 = vst [vmem:[%s7719_s30 + $0x170] sm:$0xff] %v6314_v48  ;;  %6335 = vpow2.f32 %v5074_v9 }
 0x720   : > { %v6318_v20 = vpop.eup %6317  ;;  %4402 = vst [vmem:[%s7719_s30 + $0x340] sm:$0xff] %v6316_v47  ;;  %6337 = vpow2.f32 %v5080_v16 }
 0x721   : > { %v6320_v49 = vpop.eup %6319  ;;  %4345 = vst [vmem:[%s7719_s30 + $0x178] sm:$0xff] %v6318_v20  ;;  %6339 = vpow2.f32 %v5081_v10 }
 0x722   : > { %v6322_v57 = vpop.eup %6321  ;;  %v4052_v39 = vadd.f32 1.0, %v6320_v49  ;;  %6341 = vpow2.f32 %v5087_v30 }
 0x723   : > { %v6324_v25 = vpop.eup %6323  ;;  %v4015_v53 = vadd.f32 1.0, %v6322_v57  ;;  %6343 = vpow2.f32 %v5088_v26 }
 0x724   : > { %v6326_v17 = vpop.eup %6325  ;;  %6345 = vrcp.f32 %v4052_v39  ;;  %v4073_v41 = vadd.f32 1.0, %v6324_v25 }
 0x725   : > { %v6328_v59 = vpop.eup %6327  ;;  %6347 = vrcp.f32 %v4015_v53  ;;  %v4016_v56 = vadd.f32 1.0, %v6326_v17 }
 0x726   : > { %v6330_v54 = vpop.eup %6329  ;;  %6349 = vrcp.f32 %v4073_v41  ;;  %v4059_v51 = vadd.f32 1.0, %v6328_v59 }
 0x727   : > { %v6332_v22 = vpop.eup %6331  ;;  %6351 = vrcp.f32 %v4016_v56  ;;  %v4022_v61 = vadd.f32 1.0, %v6330_v54 }
 0x728   : > { %v6334_v5 = vpop.eup %6333  ;;  %6353 = vrcp.f32 %v4059_v51  ;;  %v4023_v19 = vadd.f32 1.0, %v6332_v22 }
 0x729   : > { %v6336_v35 = vpop.eup %6335  ;;  %6355 = vrcp.f32 %v4022_v61  ;;  %v4029_v40 = vadd.f32 1.0, %v6334_v5 }
 0x72a   : > { %v6338_v58 = vpop.eup %6337  ;;  %6357 = vrcp.f32 %v4023_v19  ;;  %v4030_v52 = vadd.f32 1.0, %v6336_v35 }
 0x72b   : > { %v6340_v42 = vpop.eup %6339  ;;  %6359 = vrcp.f32 %v4029_v40  ;;  %v4036_v32 = vadd.f32 1.0, %v6338_v58 }
 0x72c   : > { %v6342_v27 = vpop.eup %6341  ;;  %6361 = vrcp.f32 %v4030_v52  ;;  %v4037_v11 = vadd.f32 1.0, %v6340_v42 }
 0x72d   : > { %v6344_v43 = vpop.eup %6343  ;;  %6363 = vrcp.f32 %v4036_v32  ;;  %v4043_v12 = vadd.f32 1.0, %v6342_v27 }
 0x72e   : > { %v6346_v45 = vpop.eup %6345  ;;  %6365 = vrcp.f32 %v4037_v11  ;;  %v4044_v33 = vadd.f32 1.0, %v6344_v43 }
 0x72f   : > { %v6348_v7 = vpop.eup %6347  ;;  %4388 = vst [vmem:[%s7719_s30 + $0x2d0] sm:$0xff] %v6346_v45  ;;  %6367 = vrcp.f32 %v4043_v12 }
 0x730   : > { %v6350_v13 = vpop.eup %6349  ;;  %4351 = vst [vmem:[%s7719_s30 + $0x1a8] sm:$0xff] %v6348_v7  ;;  %6369 = vrcp.f32 %v4044_v33 }
 0x731   : > { %v6352_v60 = vpop.eup %6351  ;;  %4409 = vst [vmem:[%s7719_s30 + $0x378] sm:$0xff] %v6350_v13  ;;  %6371 = vpow2.f32 %v5094_v38 }
 0x732   : > { %v6354_v21 = vpop.eup %6353  ;;  %4352 = vst [vmem:[%s7719_s30 + $0x1b0] sm:$0xff] %v6352_v60  ;;  %6373 = vpow2.f32 %v5095_v36 }
 0x733   : > { %v6356_v1 = vpop.eup %6355  ;;  %4395 = vst [vmem:[%s7719_s30 + $0x308] sm:$0xff] %v6354_v21  ;;  %6375 = vpow2.f32 %v5101_v63 }
 0x734   : > { %v6358_v8 = vpop.eup %6357  ;;  %4358 = vst [vmem:[%s7719_s30 + $0x1e0] sm:$0xff] %v6356_v1  ;;  %6377 = vpow2.f32 %v5102_v2 }
 0x735   : > { %v6360_v3 = vpop.eup %6359  ;;  %4359 = vst [vmem:[%s7719_s30 + $0x1e8] sm:$0xff] %v6358_v8  ;;  %6379 = vpow2.f32 %v5108_v14 }
 0x736   : > { %v6362_v6 = vpop.eup %6361  ;;  %4365 = vst [vmem:[%s7719_s30 + $0x218] sm:$0xff] %v6360_v3  ;;  %6381 = vpow2.f32 %v5109_v55 }
 0x737   : > { %v6364_v28 = vpop.eup %6363  ;;  %4366 = vst [vmem:[%s7719_s30 + $0x220] sm:$0xff] %v6362_v6  ;;  %6383 = vpow2.f32 %v5115_v29 }
 0x738   : > { %v6366_v37 = vpop.eup %6365  ;;  %4372 = vst [vmem:[%s7719_s30 + $0x250] sm:$0xff] %v6364_v28  ;;  %6385 = vpow2.f32 %v5116_v50 }
 0x739   : > { %v6368_v23 = vpop.eup %6367  ;;  %4373 = vst [vmem:[%s7719_s30 + $0x258] sm:$0xff] %v6366_v37 }
 0x73a   : > { %v6370_v18 = vpop.eup %6369  ;;  %4379 = vst [vmem:[%s7719_s30 + $0x288] sm:$0xff] %v6368_v23 }
 0x73b   : > { %v6372_v15 = vpop.eup %6371  ;;  %4380 = vst [vmem:[%s7719_s30 + $0x290] sm:$0xff] %v6370_v18 }
 0x73c   : > { %v6374_v34 = vpop.eup %6373  ;;  %v4050_v4 = vadd.f32 1.0, %v6372_v15 }
 0x73d   : > { %v6376_v44 = vpop.eup %6375  ;;  %v4051_v46 = vadd.f32 1.0, %v6374_v34 }
 0x73e   : > { %v6378_v62 = vpop.eup %6377  ;;  %6387 = vrcp.f32 %v4050_v4  ;;  %v4057_v24 = vadd.f32 1.0, %v6376_v44 }
 0x73f   : > { %v6380_v9 = vpop.eup %6379  ;;  %6389 = vrcp.f32 %v4051_v46  ;;  %v4058_v31 = vadd.f32 1.0, %v6378_v62 }
 0x740   : > { %v6382_v16 = vpop.eup %6381  ;;  %6391 = vrcp.f32 %v4057_v24  ;;  %v4064_v0 = vadd.f32 1.0, %v6380_v9 }
 0x741   : > { %v6384_v10 = vpop.eup %6383  ;;  %6393 = vrcp.f32 %v4058_v31  ;;  %v4065_v48 = vadd.f32 1.0, %v6382_v16 }
 0x742   : > { %v6386_v30 = vpop.eup %6385  ;;  %6395 = vrcp.f32 %v4064_v0  ;;  %v4071_v47 = vadd.f32 1.0, %v6384_v10 }
 0x743   : > { %6397 = vrcp.f32 %v4065_v48  ;;  %v4072_v26 = vadd.f32 1.0, %v6386_v30 }
 0x744   : > { %6399 = vrcp.f32 %v4071_v47 }
 0x745   : > { %6401 = vrcp.f32 %v4072_v26 }
 0x748   : > { %v6388_v20 = vpop.eup %6387 }
 0x749   : > { %v6390_v49 = vpop.eup %6389  ;;  %4386 = vst [vmem:[%s7719_s30 + $0x2c0] sm:$0xff] %v6388_v20 }
 0x74a   : > { %v6392_v57 = vpop.eup %6391  ;;  %4387 = vst [vmem:[%s7719_s30 + $0x2c8] sm:$0xff] %v6390_v49 }
 0x74b   : > { %v6394_v39 = vpop.eup %6393  ;;  %4393 = vst [vmem:[%s7719_s30 + $0x2f8] sm:$0xff] %v6392_v57 }
 0x74c   : > { %v6396_v25 = vpop.eup %6395  ;;  %4394 = vst [vmem:[%s7719_s30 + $0x300] sm:$0xff] %v6394_v39 }
 0x74d   : > { %v6398_v53 = vpop.eup %6397  ;;  %4400 = vst [vmem:[%s7719_s30 + $0x330] sm:$0xff] %v6396_v25 }
 0x74e   : > { %v6400_v17 = vpop.eup %6399  ;;  %4401 = vst [vmem:[%s7719_s30 + $0x338] sm:$0xff] %v6398_v53 }
 0x74f   : > { %v6402_v41 = vpop.eup %6401  ;;  %4407 = vst [vmem:[%s7719_s30 + $0x368] sm:$0xff] %v6400_v17 }
 0x750   : > { %4408 = vst [vmem:[%s7719_s30 + $0x370] sm:$0xff] %v6402_v41 }
 0x751   : > { %6503 = shalt.err (!%p6500_p5)
}
 0x752   : > { %s6504_s30 = scalar_lea.hbm %s8230_s16, 14336  ;;  %s6508_s13 = scalar_lea.hbm %s8347_s20, 28672 }
 0x753   : > { %p6505_p13 = scmp.ne.s32.totalorder %s8230_s16, %s6504_s30  ;;  %p6509_p6 = scmp.lt.u32.totalorder %s8230_s16, %s8347_s20 }
 0x754   : > { %p6510_p8 = scmp.lt.u32.totalorder %s6508_s13, %s6504_s30  ;;  %p6512_p11 = scmp.lt.u32.totalorder %s6504_s30, %s8230_s16 }
 0x755   : > { %p6506_p2 = pnand %p6505_p13, %p6763_p12 }
 0x756   : > { %p6511_p10 = por %p6510_p8, %p6509_p6 }
 0x757   : > { %p6507_p4 = pneg %p6506_p2 }
 0x758   : > { %p6513_p3 = por %p6512_p11, %p6511_p10 }
 0x75a   : > { %p6514_p7 = pnand %p6513_p3, %p6507_p4 }
 0x75c   : > { %6517 = shalt.err (!%p6514_p7)
}
 0x75d   : > { %s6577_s15 = smov 896   ;;  %s6578_s26 = smov 56  }
 0x75e   : > { %5620 = dma.vmem_to_hbm [thread:$0]  (%p6763_p12), %s8233_s19, 14336, %s8230_s16, %s4604_s28, %s6577_s15, %s6577_s15, %s6578_s26  }
 0x75f PF: > { %s8348_s0 = sld [smem:[#allocation14_spill]]  ;;  %s8349_s1 = sld [smem:[#allocation16_spill]] }
 0x760   : > { %p8351_p1 = scmp.ge.s32.totalorder %s6564_s27, 2 }
 0x765   : > { %s4654_s18 = sand.u32 1, %s8348_s0   ;;  %p8350_p9 = scmp.ne.s32.totalorder %s8349_s1, 0 }
 0x766   : > { %s4655_s30 = scalar_lea.sflag [#allocation4], %s4654_s18 }
 0x767   : > { %p5633_p0 = pnand %p8351_p1, %p8350_p9 }
 0x769   : > { %6543 = dma.done.wait (!%p5633_p0), %s4655_s30, 14336  }
 0x76a   : > { %6545 = vsyncadd (!%p5633_p0), %s4655_s30, 4294952960  ;;  %s4664_s13 = scalar_lea.sflag [#allocation9], %s4654_s18 }
 0x76b   : > { %6547 = dma.done.wait (!%p5633_p0), %s4664_s13, 2048  }
 0x76c   : > { %6549 = vsyncadd (!%p5633_p0), %s4664_s13, 4294965248  ;;  %s8352_s27 = sld [smem:[#allocation17_spill]]  ;;  %s8353_s23 = sld [smem:[#allocation15_spill]] }
 0x76d   : > { %s8354_s26 = sld [smem:[#allocation18_spill]]  ;;  %s8355_s24 = smov %s6556_s25 }
 0x772   : > { %p35_p12 = scmp.ge.s32.totalorder %s8352_s27, 4   ;;  %s8356_s25 = smov %s8353_s23 }
 0x774   :  { %37 = sbr.rel (!%p35_p12) target bundleno = 16 (0x10), region = 153 }
 0x77b   :  { %4669 = vsyncpa [#allocation3], 1 }
 0x77c   :  { %4671 = vsyncpa [#allocation3 + $0x1], 1 }
 0x77d   :  { %4672 = vsyncpa [#allocation6], 1 }
 0x77e   :  { %4673 = vsyncpa [#allocation4], 1 }
 0x77f   :  { %4675 = vsyncpa [#allocation4 + $0x1], 1 }
 0x780   :  { %4676 = vsyncpa [#allocation9], 1 }
 0x781   :  { %4678 = vsyncpa [#allocation9 + $0x1], 1 }

</bundles_post_ra>
